<compile_context>
chip_gen: v7x
topology: tpu7x:2x2x1
jax: 0.10.0
libtpu: 0.0.40
codegen_flags: <defaults>
</compile_context>

<pallas_src>
import jax
import jax.numpy as jnp
from jax.experimental import pallas as pl
from jax.experimental.pallas import tpu as pltpu


# ------------------------- Pallas kernel -------------------------

def word_att_kernel(emb_ref, h0_ref, wih_ref, whh_ref, bx_ref, bn_ref,
                    ww_ref, wb_ref, cw_ref, out_ref, hout_ref, hs_ref):
    BB, H2p = h0_ref.shape            # (batch block rows, 2*Hp)
    Hp = H2p // 2
    TBB = hs_ref.shape[0]
    T = TBB // BB

    emb = emb_ref[0]                  # (T*BB, E) bf16

    # Hoisted input projection for both directions / all gates (off the serial
    # path).  Column layout: [r_f r_b | z_f z_b | n_f n_b], each sub-block Hp
    # wide.  bx already holds b_ih (all gates) + b_hh (r,z gates).
    gx_all = jnp.dot(emb, wih_ref[...],
                     preferred_element_type=jnp.float32) + bx_ref[...]   # (T*BB, 6Hp)

    whh = whh_ref[...]                # (2Hp, 6Hp) bf16, block-diagonal per direction
    bn = bn_ref[...]                  # (1, 2Hp)  f32, n-gate b_hh for both directions

    # Lane mask selecting forward-direction columns within each gate pair.
    col = jax.lax.broadcasted_iota(jnp.int32, (1, 3 * H2p), 1)
    is_fwd_col = (col % H2p) < Hp

    h_cat = h0_ref[...]               # (BB, 2Hp) f32 = [h_f | h_b]

    # Fused, fully-unrolled bidirectional recurrence: one MXU dot per step.
    for s in range(T):
        tf = s                        # forward time index
        tb = T - 1 - s                # backward time index
        gx_t = jnp.where(is_fwd_col,
                         gx_all[tf * BB:(tf + 1) * BB, :],
                         gx_all[tb * BB:(tb + 1) * BB, :])               # (BB, 6Hp)
        gh = jnp.dot(h_cat.astype(jnp.bfloat16), whh,
                     preferred_element_type=jnp.float32)                 # (BB, 6Hp)
        # PyTorch GRU gate order r, z, n; all slices at 2Hp lane boundaries.
        r = jax.nn.sigmoid(gx_t[:, :H2p] + gh[:, :H2p])
        z = jax.nn.sigmoid(gx_t[:, H2p:2 * H2p] + gh[:, H2p:2 * H2p])
        n = jnp.tanh(gx_t[:, 2 * H2p:] + r * (gh[:, 2 * H2p:] + bn))
        h_cat = (1.0 - z) * n + z * h_cat
        # Per-time hidden states into VMEM scratch: fwd half at tf, bwd at tb.
        hs_ref[tf * BB:(tf + 1) * BB, :Hp] = h_cat[:, :Hp]
        hs_ref[tb * BB:(tb + 1) * BB, Hp:] = h_cat[:, Hp:]

    hout_ref[...] = h_cat             # final [h_f | h_b]

    # ---- word attention, straight from scratch ----
    f_all = hs_ref[...]                                                  # (T*BB, 2Hp)
    u = jnp.tanh(jnp.dot(f_all.astype(jnp.bfloat16), ww_ref[...],
                         preferred_element_type=jnp.float32) + wb_ref[...])  # (T*BB, Up)
    # scores: VPU multiply + lane (XLU) reduction instead of an N=1 matmul.
    s_flat = jnp.tanh(jnp.sum(u * cw_ref[...], axis=-1, keepdims=True))      # (T*BB, 1)

    # Softmax over the time axis: reduce over the leading axis of tile-aligned
    # 3-D views (BB is a multiple of 8, so these reshapes are layout no-ops).
    s3 = s_flat.reshape(T, BB, 1)
    m = s3[0]
    for t in range(1, T):
        m = jnp.maximum(m, s3[t])
    e3 = jnp.exp(s3 - m)
    denom = e3[0]
    for t in range(1, T):
        denom = denom + e3[t]
    alpha3 = e3 / denom                                # exact division

    # Attention-weighted sum over time -> (BB, 2Hp), lane-dense output.
    w3 = (alpha3.reshape(TBB, 1) * f_all).reshape(T, BB, H2p)
    acc = w3[0]
    for t in range(1, T):
        acc = acc + w3[t]
    out_ref[...] = acc


# ------------------------- wrapper -------------------------

def _round_up(x, m):
    return ((x + m - 1) // m) * m


def _prep_weights(params, H, E, Hp, Up):
    """Build fused, lane-padded GRU + attention weight layouts (f32; cast later)."""
    G = 2 * Hp                                        # width of one gate pair [fwd|bwd]
    wih = jnp.zeros((E, 3 * G), jnp.float32)          # input proj, both dirs, all gates
    whh = jnp.zeros((2 * Hp, 3 * G), jnp.float32)     # block-diagonal hidden proj
    bx = jnp.zeros((1, 3 * G), jnp.float32)           # b_ih (all gates) + b_hh (r,z)
    bn = jnp.zeros((1, 2 * Hp), jnp.float32)          # b_hh n-gate (both directions)

    dirs = [(params['w_ih_f'], params['w_hh_f'], params['b_ih_f'], params['b_hh_f']),
            (params['w_ih_b'], params['w_hh_b'], params['b_ih_b'], params['b_hh_b'])]
    for d, (w_ih, w_hh, b_ih, b_hh) in enumerate(dirs):
        for g in range(3):                            # PyTorch gate order: r, z, n
            c0 = g * G + d * Hp
            wih = wih.at[:, c0:c0 + H].set(w_ih[g * H:(g + 1) * H, :].T)
            whh = whh.at[d * Hp:d * Hp + H, c0:c0 + H].set(w_hh[g * H:(g + 1) * H, :].T)
            b = b_ih[g * H:(g + 1) * H]
            if g < 2:                                 # r, z: fold b_hh in as well
                b = b + b_hh[g * H:(g + 1) * H]
            bx = bx.at[0, c0:c0 + H].set(b)
        bn = bn.at[0, d * Hp:d * Hp + H].set(b_hh[2 * H:3 * H])

    ww = jnp.zeros((2 * Hp, Up), jnp.float32)         # word attention projection
    ww = ww.at[:H, :2 * H].set(params['word_weight'][:H])
    ww = ww.at[Hp:Hp + H, :2 * H].set(params['word_weight'][H:])
    wb = jnp.zeros((1, Up), jnp.float32).at[:, :2 * H].set(params['word_bias'])
    cw = jnp.zeros((1, Up), jnp.float32).at[0, :2 * H].set(params['context_weight'][:, 0])
    return wih, whh, bx, bn, ww, wb, cw


def word_att_net(input_ids, hidden_state, params, *, batch_block=8):
    """WordAttNet forward.  input_ids: (T, B) int; hidden_state: (2, B, H)."""
    T, B = input_ids.shape
    E = params['embedding'].shape[1]
    H = hidden_state.shape[-1]

    Hp = _round_up(H, 128)       # lane-aligned per-direction hidden width
    Up = _round_up(2 * H, 128)   # lane-aligned attention projection width
    BB = batch_block             # rows per grid block (multiple of 8 sublanes).
    # VMEM note: per-block footprint ~ T*BB*(2Hp)*4B scratch + gx; raise BB for
    # production batches, halving it on v7x (64 MiB VMEM) vs v5e/v6e (128 MiB).
    assert BB % 8 == 0
    B_pad = _round_up(B, BB)
    n_blk = B_pad // BB

    # Embedding lookup (gather) stays as plain-JAX glue for now.
    # TODO(synk): move the gather in-kernel (scalar-prefetched ids + per-row DMA
    # from an HBM-resident table) to avoid the (T*B, E) HBM round trip.
    ids = jnp.pad(input_ids, ((0, 0), (0, B_pad - B)))
    emb = jnp.take(params['embedding'], ids, axis=0).astype(jnp.float32)  # (T, B_pad, E)
    # Batch-blocked, time-major rows: within a block, row = t*BB + b_local.
    emb_blk = (emb.reshape(T, n_blk, BB, E).transpose(1, 0, 2, 3)
                  .reshape(n_blk, T * BB, E).astype(jnp.bfloat16))

    # Initial hidden state, lane-concatenated [h_f | h_b], zero-padded to 2Hp.
    h0 = jnp.zeros((B_pad, 2 * Hp), jnp.float32)
    h0 = h0.at[:B, :H].set(hidden_state[0].astype(jnp.float32))
    h0 = h0.at[:B, Hp:Hp + H].set(hidden_state[1].astype(jnp.float32))

    wih, whh, bx, bn, ww, wb, cw = _prep_weights(params, H, E, Hp, Up)
    G6 = 6 * Hp

    def full_spec(shape):
        n = len(shape)
        return pl.BlockSpec(shape, lambda i, _n=n: (0,) * _n)

    emb_spec = pl.BlockSpec((1, T * BB, E), lambda i: (i, 0, 0))
    row_spec = pl.BlockSpec((BB, 2 * Hp), lambda i: (i, 0))

    out_p, hout_p = pl.pallas_call(
        word_att_kernel,
        out_shape=(jax.ShapeDtypeStruct((B_pad, 2 * Hp), jnp.float32),
                   jax.ShapeDtypeStruct((B_pad, 2 * Hp), jnp.float32)),
        grid_spec=pltpu.PrefetchScalarGridSpec(
            num_scalar_prefetch=0,
            grid=(n_blk,),
            in_specs=[emb_spec, row_spec,
                      full_spec((E, G6)), full_spec((2 * Hp, G6)),
                      full_spec((1, G6)), full_spec((1, 2 * Hp)),
                      full_spec((2 * Hp, Up)), full_spec((1, Up)),
                      full_spec((1, Up))],
            out_specs=[row_spec, row_spec],
            scratch_shapes=[pltpu.VMEM((T * BB, 2 * Hp), jnp.float32)]),
        compiler_params=pltpu.CompilerParams(
            dimension_semantics=("parallel",)),
    )(emb_blk, h0,
      wih.astype(jnp.bfloat16), whh.astype(jnp.bfloat16), bx, bn,
      ww.astype(jnp.bfloat16), wb, cw)

    # Strip batch and lane padding; reassemble the PyTorch-shaped outputs.
    out = jnp.concatenate([out_p[:B, :H], out_p[:B, Hp:Hp + H]], axis=-1)[None]  # (1,B,2H)
    hout = jnp.stack([hout_p[:B, :H], hout_p[:B, Hp:Hp + H]])                    # (2,B,H)
    return out, hout


# ------------------------- params + pure-JAX reference -------------------------

def init_params(key, vocab, embed_dim, hidden):
    ks = jax.random.split(key, 12)
    std = 0.05

    def nrm(k, shape):
        return (std * jax.random.normal(k, shape)).astype(jnp.float32)

    return {
        'embedding': nrm(ks[0], (vocab, embed_dim)),
        'w_ih_f': nrm(ks[1], (3 * hidden, embed_dim)),
        'w_hh_f': nrm(ks[2], (3 * hidden, hidden)),
        'b_ih_f': nrm(ks[3], (3 * hidden,)),
        'b_hh_f': nrm(ks[4], (3 * hidden,)),
        'w_ih_b': nrm(ks[5], (3 * hidden, embed_dim)),
        'w_hh_b': nrm(ks[6], (3 * hidden, hidden)),
        'b_ih_b': nrm(ks[7], (3 * hidden,)),
        'b_hh_b': nrm(ks[8], (3 * hidden,)),
        'word_weight': nrm(ks[9], (2 * hidden, 2 * hidden)),
        'word_bias': nrm(ks[10], (1, 2 * hidden)),
        'context_weight': nrm(ks[11], (2 * hidden, 1)),
    }


def reference(input_ids, h0, p):
    emb = jnp.take(p['embedding'], input_ids, axis=0).astype(jnp.float32)
    T = emb.shape[0]
    H = h0.shape[-1]

    def cell(x, h, wih, whh, bih, bhh):
        gx = x @ wih.T + bih
        gh = h @ whh.T + bhh
        r = jax.nn.sigmoid(gx[:, :H] + gh[:, :H])
        z = jax.nn.sigmoid(gx[:, H:2 * H] + gh[:, H:2 * H])
        n = jnp.tanh(gx[:, 2 * H:] + r * gh[:, 2 * H:])
        return (1 - z) * n + z * h

    hs_f = []
    h = h0[0]
    for t in range(T):
        h = cell(emb[t], h, p['w_ih_f'], p['w_hh_f'], p['b_ih_f'], p['b_hh_f'])
        hs_f.append(h)
    h_f_final = h

    hs_b = [None] * T
    h = h0[1]
    for t in range(T - 1, -1, -1):
        h = cell(emb[t], h, p['w_ih_b'], p['w_hh_b'], p['b_ih_b'], p['b_hh_b'])
        hs_b[t] = h
    h_b_final = h

    f = jnp.concatenate([jnp.stack(hs_f), jnp.stack(hs_b)], axis=-1)  # (T,B,2H)
    u = jnp.tanh(f @ p['word_weight'] + p['word_bias'])
    s = jnp.tanh(u @ p['context_weight'])[:, :, 0]                    # (T,B)
    alpha = jax.nn.softmax(s, axis=0)
    out = jnp.sum(f * alpha[:, :, None], axis=0, keepdims=True)       # (1,B,2H)
    hout = jnp.stack([h_f_final, h_b_final])                          # (2,B,H)
    return out, hout


# ------------------------- main -------------------------

if __name__ == "__main__":
    # seq, batch, vocab, embed_dim, hidden  (B=12 -> pads to 16, grid of 2 blocks)
    T, B, V, E, H = 8, 12, 100, 32, 32

    key = jax.random.PRNGKey(0)
    kp, ki, kh = jax.random.split(key, 3)
    params = init_params(kp, V, E, H)
    input_ids = jax.random.randint(ki, (T, B), 0, V)
    hidden_state = (0.1 * jax.random.normal(kh, (2, B, H))).astype(jnp.float32)

    out, hout = jax.block_until_ready(word_att_net(input_ids, hidden_state, params))

    with jax.default_matmul_precision("highest"):
        ref_out, ref_hout = reference(input_ids, hidden_state, params)

    assert out.shape == (1, B, 2 * H), out.shape
    assert hout.shape == (2, B, H), hout.shape
    assert jnp.allclose(out, ref_out, atol=1e-2, rtol=1e-2)
    assert jnp.allclose(hout, ref_hout, atol=1e-2, rtol=1e-2)

    print("KERNEL_OK")
</pallas_src>

<mosaic_0001>
module attributes {stable_mosaic.version = 11 : i64} {
  func.func @word_att_kernel(%arg0: i32, %arg1: memref<1x64x32xbf16, #tpu.memory_space<vmem>>, %arg2: memref<8x256xf32, #tpu.memory_space<vmem>>, %arg3: memref<32x768xbf16, #tpu.memory_space<vmem>>, %arg4: memref<256x768xbf16, #tpu.memory_space<vmem>>, %arg5: memref<1x768xf32, #tpu.memory_space<vmem>>, %arg6: memref<1x256xf32, #tpu.memory_space<vmem>>, %arg7: memref<256x128xbf16, #tpu.memory_space<vmem>>, %arg8: memref<1x128xf32, #tpu.memory_space<vmem>>, %arg9: memref<1x128xf32, #tpu.memory_space<vmem>>, %arg10: memref<8x256xf32, #tpu.memory_space<vmem>>, %arg11: memref<8x256xf32, #tpu.memory_space<vmem>>, %arg12: memref<64x256xf32, #tpu.memory_space<vmem>>) attributes {dimension_semantics = [#tpu.dimension_semantics<parallel>], iteration_bounds = array<i64: 2>, scalar_prefetch = 0 : i64, scratch_operands = 1 : i64, tpu.core_type = #tpu.core_type<tc>, window_params = [{transform_indices = @transform_0, window_bounds = array<i64: 1, 64, 32>}, {transform_indices = @transform_1, window_bounds = array<i64: 8, 256>}, {pipeline_mode = #tpu.pipeline_mode<synchronous>, transform_indices = @transform_2, window_bounds = array<i64: 32, 768>}, {pipeline_mode = #tpu.pipeline_mode<synchronous>, transform_indices = @transform_3, window_bounds = array<i64: 256, 768>}, {pipeline_mode = #tpu.pipeline_mode<synchronous>, transform_indices = @transform_4, window_bounds = array<i64: 1, 768>}, {pipeline_mode = #tpu.pipeline_mode<synchronous>, transform_indices = @transform_5, window_bounds = array<i64: 1, 256>}, {pipeline_mode = #tpu.pipeline_mode<synchronous>, transform_indices = @transform_6, window_bounds = array<i64: 256, 128>}, {pipeline_mode = #tpu.pipeline_mode<synchronous>, transform_indices = @transform_7, window_bounds = array<i64: 1, 128>}, {pipeline_mode = #tpu.pipeline_mode<synchronous>, transform_indices = @transform_8, window_bounds = array<i64: 1, 128>}, {transform_indices = @transform_9, window_bounds = array<i64: 8, 256>}, {transform_indices = @transform_10, window_bounds = array<i64: 8, 256>}]} {
    %c0 = arith.constant 0 : index
    %c0_0 = arith.constant 0 : index
    %c0_1 = arith.constant 0 : index
    %0 = vector.load %arg1[%c0, %c0_0, %c0_1] : memref<1x64x32xbf16, #tpu.memory_space<vmem>>, vector<1x64x32xbf16>
    %1 = vector.shape_cast %0 : vector<1x64x32xbf16> to vector<64x32xbf16>
    %c0_2 = arith.constant 0 : index
    %c0_3 = arith.constant 0 : index
    %2 = vector.load %arg3[%c0_2, %c0_3] : memref<32x768xbf16, #tpu.memory_space<vmem>>, vector<32x768xbf16>
    %cst = arith.constant dense<0.000000e+00> : vector<64x768xf32>
    %3 = tpu.matmul %1, %2, %cst {dimension_numbers = #tpu.dot_dimension_numbers<[1], [0], [0], [1], [0, 0, 1, 1], [], []>} : vector<64x32xbf16>, vector<32x768xbf16>, vector<64x768xf32> -> vector<64x768xf32>
    %c0_4 = arith.constant 0 : index
    %c0_5 = arith.constant 0 : index
    %4 = vector.load %arg5[%c0_4, %c0_5] : memref<1x768xf32, #tpu.memory_space<vmem>>, vector<1x768xf32>
    %5 = vector.broadcast %4 : vector<1x768xf32> to vector<64x768xf32>
    %6 = arith.addf %3, %5 : vector<64x768xf32>
    %c0_6 = arith.constant 0 : index
    %c0_7 = arith.constant 0 : index
    %7 = vector.load %arg4[%c0_6, %c0_7] : memref<256x768xbf16, #tpu.memory_space<vmem>>, vector<256x768xbf16>
    %c0_8 = arith.constant 0 : index
    %c0_9 = arith.constant 0 : index
    %8 = vector.load %arg6[%c0_8, %c0_9] : memref<1x256xf32, #tpu.memory_space<vmem>>, vector<1x256xf32>
    %9 = tpu.iota {dimensions = array<i32: 1>} : vector<1x768xi32>
    %c256_i32 = arith.constant 256 : i32
    %c0_i32 = arith.constant 0 : i32
    %10 = arith.cmpi eq, %c256_i32, %c0_i32 : i32
    %c1_i32 = arith.constant 1 : i32
    %11 = arith.select %10, %c1_i32, %c256_i32 : i32
    %12 = vector.broadcast %11 : i32 to vector<1x768xi32>
    %13 = arith.remsi %9, %12 : vector<1x768xi32>
    %c0_i32_10 = arith.constant 0 : i32
    %14 = vector.broadcast %c0_i32_10 : i32 to vector<1x768xi32>
    %15 = arith.cmpi ne, %13, %14 : vector<1x768xi32>
    %c0_i32_11 = arith.constant 0 : i32
    %16 = vector.broadcast %c0_i32_11 : i32 to vector<1x768xi32>
    %17 = arith.cmpi slt, %13, %16 : vector<1x768xi32>
    %c0_i32_12 = arith.constant 0 : i32
    %18 = arith.cmpi slt, %11, %c0_i32_12 : i32
    %19 = vector.broadcast %18 : i1 to vector<1x768xi1>
    %20 = vector.broadcast %19 : vector<1x768xi1> to vector<1x768xi1>
    %21 = arith.xori %17, %20 : vector<1x768xi1>
    %22 = arith.andi %21, %15 : vector<1x768xi1>
    %23 = vector.broadcast %11 : i32 to vector<1x768xi32>
    %24 = arith.addi %13, %23 : vector<1x768xi32>
    %25 = arith.select %22, %24, %13 : vector<1x768xi1>, vector<1x768xi32>
    %c128_i32 = arith.constant 128 : i32
    %26 = vector.broadcast %c128_i32 : i32 to vector<1x768xi32>
    %27 = arith.cmpi slt, %25, %26 : vector<1x768xi32>
    %c0_13 = arith.constant 0 : index
    %c0_14 = arith.constant 0 : index
    %28 = vector.load %arg2[%c0_13, %c0_14] : memref<8x256xf32, #tpu.memory_space<vmem>>, vector<8x256xf32>
    %29 = vector.extract_strided_slice %6 {offsets = [0, 0], sizes = [8, 768], strides = [1, 1]} : vector<64x768xf32> to vector<8x768xf32>
    %30 = vector.extract_strided_slice %6 {offsets = [56, 0], sizes = [8, 768], strides = [1, 1]} : vector<64x768xf32> to vector<8x768xf32>
    %31 = vector.shape_cast %27 : vector<1x768xi1> to vector<1x768xi1>
    %32 = vector.broadcast %31 : vector<1x768xi1> to vector<8x768xi1>
    %33 = arith.select %32, %29, %30 : vector<8x768xi1>, vector<8x768xf32>
    %34 = arith.truncf %28 : vector<8x256xf32> to vector<8x256xbf16>
    %cst_15 = arith.constant dense<0.000000e+00> : vector<8x768xf32>
    %35 = tpu.matmul %34, %7, %cst_15 {dimension_numbers = #tpu.dot_dimension_numbers<[1], [0], [0], [1], [0, 0, 1, 1], [], []>} : vector<8x256xbf16>, vector<256x768xbf16>, vector<8x768xf32> -> vector<8x768xf32>
    %36 = vector.extract_strided_slice %33 {offsets = [0, 0], sizes = [8, 256], strides = [1, 1]} : vector<8x768xf32> to vector<8x256xf32>
    %37 = vector.extract_strided_slice %35 {offsets = [0, 0], sizes = [8, 256], strides = [1, 1]} : vector<8x768xf32> to vector<8x256xf32>
    %38 = arith.addf %36, %37 : vector<8x256xf32>
    %39 = arith.negf %38 : vector<8x256xf32>
    %40 = math.exp %39 : vector<8x256xf32>
    %cst_16 = arith.constant 1.000000e+00 : f32
    %41 = vector.broadcast %cst_16 : f32 to vector<8x256xf32>
    %42 = arith.addf %41, %40 : vector<8x256xf32>
    %43 = arith.divf %41, %42 : vector<8x256xf32>
    %44 = vector.extract_strided_slice %33 {offsets = [0, 256], sizes = [8, 256], strides = [1, 1]} : vector<8x768xf32> to vector<8x256xf32>
    %45 = vector.extract_strided_slice %35 {offsets = [0, 256], sizes = [8, 256], strides = [1, 1]} : vector<8x768xf32> to vector<8x256xf32>
    %46 = arith.addf %44, %45 : vector<8x256xf32>
    %47 = arith.negf %46 : vector<8x256xf32>
    %48 = math.exp %47 : vector<8x256xf32>
    %cst_17 = arith.constant 1.000000e+00 : f32
    %49 = vector.broadcast %cst_17 : f32 to vector<8x256xf32>
    %50 = arith.addf %49, %48 : vector<8x256xf32>
    %51 = arith.divf %49, %50 : vector<8x256xf32>
    %52 = vector.extract_strided_slice %33 {offsets = [0, 512], sizes = [8, 256], strides = [1, 1]} : vector<8x768xf32> to vector<8x256xf32>
    %53 = vector.extract_strided_slice %35 {offsets = [0, 512], sizes = [8, 256], strides = [1, 1]} : vector<8x768xf32> to vector<8x256xf32>
    %54 = vector.broadcast %8 : vector<1x256xf32> to vector<8x256xf32>
    %55 = arith.addf %53, %54 : vector<8x256xf32>
    %56 = arith.mulf %43, %55 : vector<8x256xf32>
    %57 = arith.addf %52, %56 : vector<8x256xf32>
    %58 = math.tanh %57 : vector<8x256xf32>
    %cst_18 = arith.constant 1.000000e+00 : f32
    %59 = vector.broadcast %cst_18 : f32 to vector<8x256xf32>
    %60 = arith.subf %59, %51 : vector<8x256xf32>
    %61 = arith.mulf %60, %58 : vector<8x256xf32>
    %62 = arith.mulf %51, %28 : vector<8x256xf32>
    %63 = arith.addf %61, %62 : vector<8x256xf32>
    %64 = vector.extract_strided_slice %63 {offsets = [0, 0], sizes = [8, 128], strides = [1, 1]} : vector<8x256xf32> to vector<8x128xf32>
    %c0_19 = arith.constant 0 : index
    %c0_20 = arith.constant 0 : index
    %65 = vector.load %arg12[%c0_19, %c0_20] : memref<64x256xf32, #tpu.memory_space<vmem>>, vector<8x128xf32>
    tpu.vector_store %arg12[%c0_19, %c0_20], %64 {strides = array<i32>} : memref<64x256xf32, #tpu.memory_space<vmem>>, vector<8x128xf32>,
    %66 = vector.extract_strided_slice %63 {offsets = [0, 128], sizes = [8, 128], strides = [1, 1]} : vector<8x256xf32> to vector<8x128xf32>
    %c56 = arith.constant 56 : index
    %c128 = arith.constant 128 : index
    %67 = vector.load %arg12[%c56, %c128] : memref<64x256xf32, #tpu.memory_space<vmem>>, vector<8x128xf32>
    tpu.vector_store %arg12[%c56, %c128], %66 {strides = array<i32>} : memref<64x256xf32, #tpu.memory_space<vmem>>, vector<8x128xf32>,
    %68 = vector.extract_strided_slice %6 {offsets = [8, 0], sizes = [8, 768], strides = [1, 1]} : vector<64x768xf32> to vector<8x768xf32>
    %69 = vector.extract_strided_slice %6 {offsets = [48, 0], sizes = [8, 768], strides = [1, 1]} : vector<64x768xf32> to vector<8x768xf32>
    %70 = vector.shape_cast %27 : vector<1x768xi1> to vector<1x768xi1>
    %71 = vector.broadcast %70 : vector<1x768xi1> to vector<8x768xi1>
    %72 = arith.select %71, %68, %69 : vector<8x768xi1>, vector<8x768xf32>
    %73 = arith.truncf %63 : vector<8x256xf32> to vector<8x256xbf16>
    %cst_21 = arith.constant dense<0.000000e+00> : vector<8x768xf32>
    %74 = tpu.matmul %73, %7, %cst_21 {dimension_numbers = #tpu.dot_dimension_numbers<[1], [0], [0], [1], [0, 0, 1, 1], [], []>} : vector<8x256xbf16>, vector<256x768xbf16>, vector<8x768xf32> -> vector<8x768xf32>
    %75 = vector.extract_strided_slice %72 {offsets = [0, 0], sizes = [8, 256], strides = [1, 1]} : vector<8x768xf32> to vector<8x256xf32>
    %76 = vector.extract_strided_slice %74 {offsets = [0, 0], sizes = [8, 256], strides = [1, 1]} : vector<8x768xf32> to vector<8x256xf32>
    %77 = arith.addf %75, %76 : vector<8x256xf32>
    %78 = arith.negf %77 : vector<8x256xf32>
    %79 = math.exp %78 : vector<8x256xf32>
    %cst_22 = arith.constant 1.000000e+00 : f32
    %80 = vector.broadcast %cst_22 : f32 to vector<8x256xf32>
    %81 = arith.addf %80, %79 : vector<8x256xf32>
    %82 = arith.divf %80, %81 : vector<8x256xf32>
    %83 = vector.extract_strided_slice %72 {offsets = [0, 256], sizes = [8, 256], strides = [1, 1]} : vector<8x768xf32> to vector<8x256xf32>
    %84 = vector.extract_strided_slice %74 {offsets = [0, 256], sizes = [8, 256], strides = [1, 1]} : vector<8x768xf32> to vector<8x256xf32>
    %85 = arith.addf %83, %84 : vector<8x256xf32>
    %86 = arith.negf %85 : vector<8x256xf32>
    %87 = math.exp %86 : vector<8x256xf32>
    %cst_23 = arith.constant 1.000000e+00 : f32
    %88 = vector.broadcast %cst_23 : f32 to vector<8x256xf32>
    %89 = arith.addf %88, %87 : vector<8x256xf32>
    %90 = arith.divf %88, %89 : vector<8x256xf32>
    %91 = vector.extract_strided_slice %72 {offsets = [0, 512], sizes = [8, 256], strides = [1, 1]} : vector<8x768xf32> to vector<8x256xf32>
    %92 = vector.extract_strided_slice %74 {offsets = [0, 512], sizes = [8, 256], strides = [1, 1]} : vector<8x768xf32> to vector<8x256xf32>
    %93 = vector.broadcast %8 : vector<1x256xf32> to vector<8x256xf32>
    %94 = arith.addf %92, %93 : vector<8x256xf32>
    %95 = arith.mulf %82, %94 : vector<8x256xf32>
    %96 = arith.addf %91, %95 : vector<8x256xf32>
    %97 = math.tanh %96 : vector<8x256xf32>
    %cst_24 = arith.constant 1.000000e+00 : f32
    %98 = vector.broadcast %cst_24 : f32 to vector<8x256xf32>
    %99 = arith.subf %98, %90 : vector<8x256xf32>
    %100 = arith.mulf %99, %97 : vector<8x256xf32>
    %101 = arith.mulf %90, %63 : vector<8x256xf32>
    %102 = arith.addf %100, %101 : vector<8x256xf32>
    %103 = vector.extract_strided_slice %102 {offsets = [0, 0], sizes = [8, 128], strides = [1, 1]} : vector<8x256xf32> to vector<8x128xf32>
    %c8 = arith.constant 8 : index
    %c0_25 = arith.constant 0 : index
    %104 = vector.load %arg12[%c8, %c0_25] : memref<64x256xf32, #tpu.memory_space<vmem>>, vector<8x128xf32>
    tpu.vector_store %arg12[%c8, %c0_25], %103 {strides = array<i32>} : memref<64x256xf32, #tpu.memory_space<vmem>>, vector<8x128xf32>,
    %105 = vector.extract_strided_slice %102 {offsets = [0, 128], sizes = [8, 128], strides = [1, 1]} : vector<8x256xf32> to vector<8x128xf32>
    %c48 = arith.constant 48 : index
    %c128_26 = arith.constant 128 : index
    %106 = vector.load %arg12[%c48, %c128_26] : memref<64x256xf32, #tpu.memory_space<vmem>>, vector<8x128xf32>
    tpu.vector_store %arg12[%c48, %c128_26], %105 {strides = array<i32>} : memref<64x256xf32, #tpu.memory_space<vmem>>, vector<8x128xf32>,
    %107 = vector.extract_strided_slice %6 {offsets = [16, 0], sizes = [8, 768], strides = [1, 1]} : vector<64x768xf32> to vector<8x768xf32>
    %108 = vector.extract_strided_slice %6 {offsets = [40, 0], sizes = [8, 768], strides = [1, 1]} : vector<64x768xf32> to vector<8x768xf32>
    %109 = vector.shape_cast %27 : vector<1x768xi1> to vector<1x768xi1>
    %110 = vector.broadcast %109 : vector<1x768xi1> to vector<8x768xi1>
    %111 = arith.select %110, %107, %108 : vector<8x768xi1>, vector<8x768xf32>
    %112 = arith.truncf %102 : vector<8x256xf32> to vector<8x256xbf16>
    %cst_27 = arith.constant dense<0.000000e+00> : vector<8x768xf32>
    %113 = tpu.matmul %112, %7, %cst_27 {dimension_numbers = #tpu.dot_dimension_numbers<[1], [0], [0], [1], [0, 0, 1, 1], [], []>} : vector<8x256xbf16>, vector<256x768xbf16>, vector<8x768xf32> -> vector<8x768xf32>
    %114 = vector.extract_strided_slice %111 {offsets = [0, 0], sizes = [8, 256], strides = [1, 1]} : vector<8x768xf32> to vector<8x256xf32>
    %115 = vector.extract_strided_slice %113 {offsets = [0, 0], sizes = [8, 256], strides = [1, 1]} : vector<8x768xf32> to vector<8x256xf32>
    %116 = arith.addf %114, %115 : vector<8x256xf32>
    %117 = arith.negf %116 : vector<8x256xf32>
    %118 = math.exp %117 : vector<8x256xf32>
    %cst_28 = arith.constant 1.000000e+00 : f32
    %119 = vector.broadcast %cst_28 : f32 to vector<8x256xf32>
    %120 = arith.addf %119, %118 : vector<8x256xf32>
    %121 = arith.divf %119, %120 : vector<8x256xf32>
    %122 = vector.extract_strided_slice %111 {offsets = [0, 256], sizes = [8, 256], strides = [1, 1]} : vector<8x768xf32> to vector<8x256xf32>
    %123 = vector.extract_strided_slice %113 {offsets = [0, 256], sizes = [8, 256], strides = [1, 1]} : vector<8x768xf32> to vector<8x256xf32>
    %124 = arith.addf %122, %123 : vector<8x256xf32>
    %125 = arith.negf %124 : vector<8x256xf32>
    %126 = math.exp %125 : vector<8x256xf32>
    %cst_29 = arith.constant 1.000000e+00 : f32
    %127 = vector.broadcast %cst_29 : f32 to vector<8x256xf32>
    %128 = arith.addf %127, %126 : vector<8x256xf32>
    %129 = arith.divf %127, %128 : vector<8x256xf32>
    %130 = vector.extract_strided_slice %111 {offsets = [0, 512], sizes = [8, 256], strides = [1, 1]} : vector<8x768xf32> to vector<8x256xf32>
    %131 = vector.extract_strided_slice %113 {offsets = [0, 512], sizes = [8, 256], strides = [1, 1]} : vector<8x768xf32> to vector<8x256xf32>
    %132 = vector.broadcast %8 : vector<1x256xf32> to vector<8x256xf32>
    %133 = arith.addf %131, %132 : vector<8x256xf32>
    %134 = arith.mulf %121, %133 : vector<8x256xf32>
    %135 = arith.addf %130, %134 : vector<8x256xf32>
    %136 = math.tanh %135 : vector<8x256xf32>
    %cst_30 = arith.constant 1.000000e+00 : f32
    %137 = vector.broadcast %cst_30 : f32 to vector<8x256xf32>
    %138 = arith.subf %137, %129 : vector<8x256xf32>
    %139 = arith.mulf %138, %136 : vector<8x256xf32>
    %140 = arith.mulf %129, %102 : vector<8x256xf32>
    %141 = arith.addf %139, %140 : vector<8x256xf32>
    %142 = vector.extract_strided_slice %141 {offsets = [0, 0], sizes = [8, 128], strides = [1, 1]} : vector<8x256xf32> to vector<8x128xf32>
    %c16 = arith.constant 16 : index
    %c0_31 = arith.constant 0 : index
    %143 = vector.load %arg12[%c16, %c0_31] : memref<64x256xf32, #tpu.memory_space<vmem>>, vector<8x128xf32>
    tpu.vector_store %arg12[%c16, %c0_31], %142 {strides = array<i32>} : memref<64x256xf32, #tpu.memory_space<vmem>>, vector<8x128xf32>,
    %144 = vector.extract_strided_slice %141 {offsets = [0, 128], sizes = [8, 128], strides = [1, 1]} : vector<8x256xf32> to vector<8x128xf32>
    %c40 = arith.constant 40 : index
    %c128_32 = arith.constant 128 : index
    %145 = vector.load %arg12[%c40, %c128_32] : memref<64x256xf32, #tpu.memory_space<vmem>>, vector<8x128xf32>
    tpu.vector_store %arg12[%c40, %c128_32], %144 {strides = array<i32>} : memref<64x256xf32, #tpu.memory_space<vmem>>, vector<8x128xf32>,
    %146 = vector.extract_strided_slice %6 {offsets = [24, 0], sizes = [8, 768], strides = [1, 1]} : vector<64x768xf32> to vector<8x768xf32>
    %147 = vector.extract_strided_slice %6 {offsets = [32, 0], sizes = [8, 768], strides = [1, 1]} : vector<64x768xf32> to vector<8x768xf32>
    %148 = vector.shape_cast %27 : vector<1x768xi1> to vector<1x768xi1>
    %149 = vector.broadcast %148 : vector<1x768xi1> to vector<8x768xi1>
    %150 = arith.select %149, %146, %147 : vector<8x768xi1>, vector<8x768xf32>
    %151 = arith.truncf %141 : vector<8x256xf32> to vector<8x256xbf16>
    %cst_33 = arith.constant dense<0.000000e+00> : vector<8x768xf32>
    %152 = tpu.matmul %151, %7, %cst_33 {dimension_numbers = #tpu.dot_dimension_numbers<[1], [0], [0], [1], [0, 0, 1, 1], [], []>} : vector<8x256xbf16>, vector<256x768xbf16>, vector<8x768xf32> -> vector<8x768xf32>
    %153 = vector.extract_strided_slice %150 {offsets = [0, 0], sizes = [8, 256], strides = [1, 1]} : vector<8x768xf32> to vector<8x256xf32>
    %154 = vector.extract_strided_slice %152 {offsets = [0, 0], sizes = [8, 256], strides = [1, 1]} : vector<8x768xf32> to vector<8x256xf32>
    %155 = arith.addf %153, %154 : vector<8x256xf32>
    %156 = arith.negf %155 : vector<8x256xf32>
    %157 = math.exp %156 : vector<8x256xf32>
    %cst_34 = arith.constant 1.000000e+00 : f32
    %158 = vector.broadcast %cst_34 : f32 to vector<8x256xf32>
    %159 = arith.addf %158, %157 : vector<8x256xf32>
    %160 = arith.divf %158, %159 : vector<8x256xf32>
    %161 = vector.extract_strided_slice %150 {offsets = [0, 256], sizes = [8, 256], strides = [1, 1]} : vector<8x768xf32> to vector<8x256xf32>
    %162 = vector.extract_strided_slice %152 {offsets = [0, 256], sizes = [8, 256], strides = [1, 1]} : vector<8x768xf32> to vector<8x256xf32>
    %163 = arith.addf %161, %162 : vector<8x256xf32>
    %164 = arith.negf %163 : vector<8x256xf32>
    %165 = math.exp %164 : vector<8x256xf32>
    %cst_35 = arith.constant 1.000000e+00 : f32
    %166 = vector.broadcast %cst_35 : f32 to vector<8x256xf32>
    %167 = arith.addf %166, %165 : vector<8x256xf32>
    %168 = arith.divf %166, %167 : vector<8x256xf32>
    %169 = vector.extract_strided_slice %150 {offsets = [0, 512], sizes = [8, 256], strides = [1, 1]} : vector<8x768xf32> to vector<8x256xf32>
    %170 = vector.extract_strided_slice %152 {offsets = [0, 512], sizes = [8, 256], strides = [1, 1]} : vector<8x768xf32> to vector<8x256xf32>
    %171 = vector.broadcast %8 : vector<1x256xf32> to vector<8x256xf32>
    %172 = arith.addf %170, %171 : vector<8x256xf32>
    %173 = arith.mulf %160, %172 : vector<8x256xf32>
    %174 = arith.addf %169, %173 : vector<8x256xf32>
    %175 = math.tanh %174 : vector<8x256xf32>
    %cst_36 = arith.constant 1.000000e+00 : f32
    %176 = vector.broadcast %cst_36 : f32 to vector<8x256xf32>
    %177 = arith.subf %176, %168 : vector<8x256xf32>
    %178 = arith.mulf %177, %175 : vector<8x256xf32>
    %179 = arith.mulf %168, %141 : vector<8x256xf32>
    %180 = arith.addf %178, %179 : vector<8x256xf32>
    %181 = vector.extract_strided_slice %180 {offsets = [0, 0], sizes = [8, 128], strides = [1, 1]} : vector<8x256xf32> to vector<8x128xf32>
    %c24 = arith.constant 24 : index
    %c0_37 = arith.constant 0 : index
    %182 = vector.load %arg12[%c24, %c0_37] : memref<64x256xf32, #tpu.memory_space<vmem>>, vector<8x128xf32>
    tpu.vector_store %arg12[%c24, %c0_37], %181 {strides = array<i32>} : memref<64x256xf32, #tpu.memory_space<vmem>>, vector<8x128xf32>,
    %183 = vector.extract_strided_slice %180 {offsets = [0, 128], sizes = [8, 128], strides = [1, 1]} : vector<8x256xf32> to vector<8x128xf32>
    %c32 = arith.constant 32 : index
    %c128_38 = arith.constant 128 : index
    %184 = vector.load %arg12[%c32, %c128_38] : memref<64x256xf32, #tpu.memory_space<vmem>>, vector<8x128xf32>
    tpu.vector_store %arg12[%c32, %c128_38], %183 {strides = array<i32>} : memref<64x256xf32, #tpu.memory_space<vmem>>, vector<8x128xf32>,
    %185 = vector.extract_strided_slice %6 {offsets = [32, 0], sizes = [8, 768], strides = [1, 1]} : vector<64x768xf32> to vector<8x768xf32>
    %186 = vector.extract_strided_slice %6 {offsets = [24, 0], sizes = [8, 768], strides = [1, 1]} : vector<64x768xf32> to vector<8x768xf32>
    %187 = vector.shape_cast %27 : vector<1x768xi1> to vector<1x768xi1>
    %188 = vector.broadcast %187 : vector<1x768xi1> to vector<8x768xi1>
    %189 = arith.select %188, %185, %186 : vector<8x768xi1>, vector<8x768xf32>
    %190 = arith.truncf %180 : vector<8x256xf32> to vector<8x256xbf16>
    %cst_39 = arith.constant dense<0.000000e+00> : vector<8x768xf32>
    %191 = tpu.matmul %190, %7, %cst_39 {dimension_numbers = #tpu.dot_dimension_numbers<[1], [0], [0], [1], [0, 0, 1, 1], [], []>} : vector<8x256xbf16>, vector<256x768xbf16>, vector<8x768xf32> -> vector<8x768xf32>
    %192 = vector.extract_strided_slice %189 {offsets = [0, 0], sizes = [8, 256], strides = [1, 1]} : vector<8x768xf32> to vector<8x256xf32>
    %193 = vector.extract_strided_slice %191 {offsets = [0, 0], sizes = [8, 256], strides = [1, 1]} : vector<8x768xf32> to vector<8x256xf32>
    %194 = arith.addf %192, %193 : vector<8x256xf32>
    %195 = arith.negf %194 : vector<8x256xf32>
    %196 = math.exp %195 : vector<8x256xf32>
    %cst_40 = arith.constant 1.000000e+00 : f32
    %197 = vector.broadcast %cst_40 : f32 to vector<8x256xf32>
    %198 = arith.addf %197, %196 : vector<8x256xf32>
    %199 = arith.divf %197, %198 : vector<8x256xf32>
    %200 = vector.extract_strided_slice %189 {offsets = [0, 256], sizes = [8, 256], strides = [1, 1]} : vector<8x768xf32> to vector<8x256xf32>
    %201 = vector.extract_strided_slice %191 {offsets = [0, 256], sizes = [8, 256], strides = [1, 1]} : vector<8x768xf32> to vector<8x256xf32>
    %202 = arith.addf %200, %201 : vector<8x256xf32>
    %203 = arith.negf %202 : vector<8x256xf32>
    %204 = math.exp %203 : vector<8x256xf32>
    %cst_41 = arith.constant 1.000000e+00 : f32
    %205 = vector.broadcast %cst_41 : f32 to vector<8x256xf32>
    %206 = arith.addf %205, %204 : vector<8x256xf32>
    %207 = arith.divf %205, %206 : vector<8x256xf32>
    %208 = vector.extract_strided_slice %189 {offsets = [0, 512], sizes = [8, 256], strides = [1, 1]} : vector<8x768xf32> to vector<8x256xf32>
    %209 = vector.extract_strided_slice %191 {offsets = [0, 512], sizes = [8, 256], strides = [1, 1]} : vector<8x768xf32> to vector<8x256xf32>
    %210 = vector.broadcast %8 : vector<1x256xf32> to vector<8x256xf32>
    %211 = arith.addf %209, %210 : vector<8x256xf32>
    %212 = arith.mulf %199, %211 : vector<8x256xf32>
    %213 = arith.addf %208, %212 : vector<8x256xf32>
    %214 = math.tanh %213 : vector<8x256xf32>
    %cst_42 = arith.constant 1.000000e+00 : f32
    %215 = vector.broadcast %cst_42 : f32 to vector<8x256xf32>
    %216 = arith.subf %215, %207 : vector<8x256xf32>
    %217 = arith.mulf %216, %214 : vector<8x256xf32>
    %218 = arith.mulf %207, %180 : vector<8x256xf32>
    %219 = arith.addf %217, %218 : vector<8x256xf32>
    %220 = vector.extract_strided_slice %219 {offsets = [0, 0], sizes = [8, 128], strides = [1, 1]} : vector<8x256xf32> to vector<8x128xf32>
    %c32_43 = arith.constant 32 : index
    %c0_44 = arith.constant 0 : index
    %221 = vector.load %arg12[%c32_43, %c0_44] : memref<64x256xf32, #tpu.memory_space<vmem>>, vector<8x128xf32>
    tpu.vector_store %arg12[%c32_43, %c0_44], %220 {strides = array<i32>} : memref<64x256xf32, #tpu.memory_space<vmem>>, vector<8x128xf32>,
    %222 = vector.extract_strided_slice %219 {offsets = [0, 128], sizes = [8, 128], strides = [1, 1]} : vector<8x256xf32> to vector<8x128xf32>
    %c24_45 = arith.constant 24 : index
    %c128_46 = arith.constant 128 : index
    %223 = vector.load %arg12[%c24_45, %c128_46] : memref<64x256xf32, #tpu.memory_space<vmem>>, vector<8x128xf32>
    tpu.vector_store %arg12[%c24_45, %c128_46], %222 {strides = array<i32>} : memref<64x256xf32, #tpu.memory_space<vmem>>, vector<8x128xf32>,
    %224 = vector.extract_strided_slice %6 {offsets = [40, 0], sizes = [8, 768], strides = [1, 1]} : vector<64x768xf32> to vector<8x768xf32>
    %225 = vector.extract_strided_slice %6 {offsets = [16, 0], sizes = [8, 768], strides = [1, 1]} : vector<64x768xf32> to vector<8x768xf32>
    %226 = vector.shape_cast %27 : vector<1x768xi1> to vector<1x768xi1>
    %227 = vector.broadcast %226 : vector<1x768xi1> to vector<8x768xi1>
    %228 = arith.select %227, %224, %225 : vector<8x768xi1>, vector<8x768xf32>
    %229 = arith.truncf %219 : vector<8x256xf32> to vector<8x256xbf16>
    %cst_47 = arith.constant dense<0.000000e+00> : vector<8x768xf32>
    %230 = tpu.matmul %229, %7, %cst_47 {dimension_numbers = #tpu.dot_dimension_numbers<[1], [0], [0], [1], [0, 0, 1, 1], [], []>} : vector<8x256xbf16>, vector<256x768xbf16>, vector<8x768xf32> -> vector<8x768xf32>
    %231 = vector.extract_strided_slice %228 {offsets = [0, 0], sizes = [8, 256], strides = [1, 1]} : vector<8x768xf32> to vector<8x256xf32>
    %232 = vector.extract_strided_slice %230 {offsets = [0, 0], sizes = [8, 256], strides = [1, 1]} : vector<8x768xf32> to vector<8x256xf32>
    %233 = arith.addf %231, %232 : vector<8x256xf32>
    %234 = arith.negf %233 : vector<8x256xf32>
    %235 = math.exp %234 : vector<8x256xf32>
    %cst_48 = arith.constant 1.000000e+00 : f32
    %236 = vector.broadcast %cst_48 : f32 to vector<8x256xf32>
    %237 = arith.addf %236, %235 : vector<8x256xf32>
    %238 = arith.divf %236, %237 : vector<8x256xf32>
    %239 = vector.extract_strided_slice %228 {offsets = [0, 256], sizes = [8, 256], strides = [1, 1]} : vector<8x768xf32> to vector<8x256xf32>
    %240 = vector.extract_strided_slice %230 {offsets = [0, 256], sizes = [8, 256], strides = [1, 1]} : vector<8x768xf32> to vector<8x256xf32>
    %241 = arith.addf %239, %240 : vector<8x256xf32>
    %242 = arith.negf %241 : vector<8x256xf32>
    %243 = math.exp %242 : vector<8x256xf32>
    %cst_49 = arith.constant 1.000000e+00 : f32
    %244 = vector.broadcast %cst_49 : f32 to vector<8x256xf32>
    %245 = arith.addf %244, %243 : vector<8x256xf32>
    %246 = arith.divf %244, %245 : vector<8x256xf32>
    %247 = vector.extract_strided_slice %228 {offsets = [0, 512], sizes = [8, 256], strides = [1, 1]} : vector<8x768xf32> to vector<8x256xf32>
    %248 = vector.extract_strided_slice %230 {offsets = [0, 512], sizes = [8, 256], strides = [1, 1]} : vector<8x768xf32> to vector<8x256xf32>
    %249 = vector.broadcast %8 : vector<1x256xf32> to vector<8x256xf32>
    %250 = arith.addf %248, %249 : vector<8x256xf32>
    %251 = arith.mulf %238, %250 : vector<8x256xf32>
    %252 = arith.addf %247, %251 : vector<8x256xf32>
    %253 = math.tanh %252 : vector<8x256xf32>
    %cst_50 = arith.constant 1.000000e+00 : f32
    %254 = vector.broadcast %cst_50 : f32 to vector<8x256xf32>
    %255 = arith.subf %254, %246 : vector<8x256xf32>
    %256 = arith.mulf %255, %253 : vector<8x256xf32>
    %257 = arith.mulf %246, %219 : vector<8x256xf32>
    %258 = arith.addf %256, %257 : vector<8x256xf32>
    %259 = vector.extract_strided_slice %258 {offsets = [0, 0], sizes = [8, 128], strides = [1, 1]} : vector<8x256xf32> to vector<8x128xf32>
    %c40_51 = arith.constant 40 : index
    %c0_52 = arith.constant 0 : index
    %260 = vector.load %arg12[%c40_51, %c0_52] : memref<64x256xf32, #tpu.memory_space<vmem>>, vector<8x128xf32>
    tpu.vector_store %arg12[%c40_51, %c0_52], %259 {strides = array<i32>} : memref<64x256xf32, #tpu.memory_space<vmem>>, vector<8x128xf32>,
    %261 = vector.extract_strided_slice %258 {offsets = [0, 128], sizes = [8, 128], strides = [1, 1]} : vector<8x256xf32> to vector<8x128xf32>
    %c16_53 = arith.constant 16 : index
    %c128_54 = arith.constant 128 : index
    %262 = vector.load %arg12[%c16_53, %c128_54] : memref<64x256xf32, #tpu.memory_space<vmem>>, vector<8x128xf32>
    tpu.vector_store %arg12[%c16_53, %c128_54], %261 {strides = array<i32>} : memref<64x256xf32, #tpu.memory_space<vmem>>, vector<8x128xf32>,
    %263 = vector.extract_strided_slice %6 {offsets = [48, 0], sizes = [8, 768], strides = [1, 1]} : vector<64x768xf32> to vector<8x768xf32>
    %264 = vector.extract_strided_slice %6 {offsets = [8, 0], sizes = [8, 768], strides = [1, 1]} : vector<64x768xf32> to vector<8x768xf32>
    %265 = vector.shape_cast %27 : vector<1x768xi1> to vector<1x768xi1>
    %266 = vector.broadcast %265 : vector<1x768xi1> to vector<8x768xi1>
    %267 = arith.select %266, %263, %264 : vector<8x768xi1>, vector<8x768xf32>
    %268 = arith.truncf %258 : vector<8x256xf32> to vector<8x256xbf16>
    %cst_55 = arith.constant dense<0.000000e+00> : vector<8x768xf32>
    %269 = tpu.matmul %268, %7, %cst_55 {dimension_numbers = #tpu.dot_dimension_numbers<[1], [0], [0], [1], [0, 0, 1, 1], [], []>} : vector<8x256xbf16>, vector<256x768xbf16>, vector<8x768xf32> -> vector<8x768xf32>
    %270 = vector.extract_strided_slice %267 {offsets = [0, 0], sizes = [8, 256], strides = [1, 1]} : vector<8x768xf32> to vector<8x256xf32>
    %271 = vector.extract_strided_slice %269 {offsets = [0, 0], sizes = [8, 256], strides = [1, 1]} : vector<8x768xf32> to vector<8x256xf32>
    %272 = arith.addf %270, %271 : vector<8x256xf32>
    %273 = arith.negf %272 : vector<8x256xf32>
    %274 = math.exp %273 : vector<8x256xf32>
    %cst_56 = arith.constant 1.000000e+00 : f32
    %275 = vector.broadcast %cst_56 : f32 to vector<8x256xf32>
    %276 = arith.addf %275, %274 : vector<8x256xf32>
    %277 = arith.divf %275, %276 : vector<8x256xf32>
    %278 = vector.extract_strided_slice %267 {offsets = [0, 256], sizes = [8, 256], strides = [1, 1]} : vector<8x768xf32> to vector<8x256xf32>
    %279 = vector.extract_strided_slice %269 {offsets = [0, 256], sizes = [8, 256], strides = [1, 1]} : vector<8x768xf32> to vector<8x256xf32>
    %280 = arith.addf %278, %279 : vector<8x256xf32>
    %281 = arith.negf %280 : vector<8x256xf32>
    %282 = math.exp %281 : vector<8x256xf32>
    %cst_57 = arith.constant 1.000000e+00 : f32
    %283 = vector.broadcast %cst_57 : f32 to vector<8x256xf32>
    %284 = arith.addf %283, %282 : vector<8x256xf32>
    %285 = arith.divf %283, %284 : vector<8x256xf32>
    %286 = vector.extract_strided_slice %267 {offsets = [0, 512], sizes = [8, 256], strides = [1, 1]} : vector<8x768xf32> to vector<8x256xf32>
    %287 = vector.extract_strided_slice %269 {offsets = [0, 512], sizes = [8, 256], strides = [1, 1]} : vector<8x768xf32> to vector<8x256xf32>
    %288 = vector.broadcast %8 : vector<1x256xf32> to vector<8x256xf32>
    %289 = arith.addf %287, %288 : vector<8x256xf32>
    %290 = arith.mulf %277, %289 : vector<8x256xf32>
    %291 = arith.addf %286, %290 : vector<8x256xf32>
    %292 = math.tanh %291 : vector<8x256xf32>
    %cst_58 = arith.constant 1.000000e+00 : f32
    %293 = vector.broadcast %cst_58 : f32 to vector<8x256xf32>
    %294 = arith.subf %293, %285 : vector<8x256xf32>
    %295 = arith.mulf %294, %292 : vector<8x256xf32>
    %296 = arith.mulf %285, %258 : vector<8x256xf32>
    %297 = arith.addf %295, %296 : vector<8x256xf32>
    %298 = vector.extract_strided_slice %297 {offsets = [0, 0], sizes = [8, 128], strides = [1, 1]} : vector<8x256xf32> to vector<8x128xf32>
    %c48_59 = arith.constant 48 : index
    %c0_60 = arith.constant 0 : index
    %299 = vector.load %arg12[%c48_59, %c0_60] : memref<64x256xf32, #tpu.memory_space<vmem>>, vector<8x128xf32>
    tpu.vector_store %arg12[%c48_59, %c0_60], %298 {strides = array<i32>} : memref<64x256xf32, #tpu.memory_space<vmem>>, vector<8x128xf32>,
    %300 = vector.extract_strided_slice %297 {offsets = [0, 128], sizes = [8, 128], strides = [1, 1]} : vector<8x256xf32> to vector<8x128xf32>
    %c8_61 = arith.constant 8 : index
    %c128_62 = arith.constant 128 : index
    %301 = vector.load %arg12[%c8_61, %c128_62] : memref<64x256xf32, #tpu.memory_space<vmem>>, vector<8x128xf32>
    tpu.vector_store %arg12[%c8_61, %c128_62], %300 {strides = array<i32>} : memref<64x256xf32, #tpu.memory_space<vmem>>, vector<8x128xf32>,
    %302 = vector.extract_strided_slice %6 {offsets = [56, 0], sizes = [8, 768], strides = [1, 1]} : vector<64x768xf32> to vector<8x768xf32>
    %303 = vector.extract_strided_slice %6 {offsets = [0, 0], sizes = [8, 768], strides = [1, 1]} : vector<64x768xf32> to vector<8x768xf32>
    %304 = vector.shape_cast %27 : vector<1x768xi1> to vector<1x768xi1>
    %305 = vector.broadcast %304 : vector<1x768xi1> to vector<8x768xi1>
    %306 = arith.select %305, %302, %303 : vector<8x768xi1>, vector<8x768xf32>
    %307 = arith.truncf %297 : vector<8x256xf32> to vector<8x256xbf16>
    %cst_63 = arith.constant dense<0.000000e+00> : vector<8x768xf32>
    %308 = tpu.matmul %307, %7, %cst_63 {dimension_numbers = #tpu.dot_dimension_numbers<[1], [0], [0], [1], [0, 0, 1, 1], [], []>} : vector<8x256xbf16>, vector<256x768xbf16>, vector<8x768xf32> -> vector<8x768xf32>
    %309 = vector.extract_strided_slice %306 {offsets = [0, 0], sizes = [8, 256], strides = [1, 1]} : vector<8x768xf32> to vector<8x256xf32>
    %310 = vector.extract_strided_slice %308 {offsets = [0, 0], sizes = [8, 256], strides = [1, 1]} : vector<8x768xf32> to vector<8x256xf32>
    %311 = arith.addf %309, %310 : vector<8x256xf32>
    %312 = arith.negf %311 : vector<8x256xf32>
    %313 = math.exp %312 : vector<8x256xf32>
    %cst_64 = arith.constant 1.000000e+00 : f32
    %314 = vector.broadcast %cst_64 : f32 to vector<8x256xf32>
    %315 = arith.addf %314, %313 : vector<8x256xf32>
    %316 = arith.divf %314, %315 : vector<8x256xf32>
    %317 = vector.extract_strided_slice %306 {offsets = [0, 256], sizes = [8, 256], strides = [1, 1]} : vector<8x768xf32> to vector<8x256xf32>
    %318 = vector.extract_strided_slice %308 {offsets = [0, 256], sizes = [8, 256], strides = [1, 1]} : vector<8x768xf32> to vector<8x256xf32>
    %319 = arith.addf %317, %318 : vector<8x256xf32>
    %320 = arith.negf %319 : vector<8x256xf32>
    %321 = math.exp %320 : vector<8x256xf32>
    %cst_65 = arith.constant 1.000000e+00 : f32
    %322 = vector.broadcast %cst_65 : f32 to vector<8x256xf32>
    %323 = arith.addf %322, %321 : vector<8x256xf32>
    %324 = arith.divf %322, %323 : vector<8x256xf32>
    %325 = vector.extract_strided_slice %306 {offsets = [0, 512], sizes = [8, 256], strides = [1, 1]} : vector<8x768xf32> to vector<8x256xf32>
    %326 = vector.extract_strided_slice %308 {offsets = [0, 512], sizes = [8, 256], strides = [1, 1]} : vector<8x768xf32> to vector<8x256xf32>
    %327 = vector.broadcast %8 : vector<1x256xf32> to vector<8x256xf32>
    %328 = arith.addf %326, %327 : vector<8x256xf32>
    %329 = arith.mulf %316, %328 : vector<8x256xf32>
    %330 = arith.addf %325, %329 : vector<8x256xf32>
    %331 = math.tanh %330 : vector<8x256xf32>
    %cst_66 = arith.constant 1.000000e+00 : f32
    %332 = vector.broadcast %cst_66 : f32 to vector<8x256xf32>
    %333 = arith.subf %332, %324 : vector<8x256xf32>
    %334 = arith.mulf %333, %331 : vector<8x256xf32>
    %335 = arith.mulf %324, %297 : vector<8x256xf32>
    %336 = arith.addf %334, %335 : vector<8x256xf32>
    %337 = vector.extract_strided_slice %336 {offsets = [0, 0], sizes = [8, 128], strides = [1, 1]} : vector<8x256xf32> to vector<8x128xf32>
    %c56_67 = arith.constant 56 : index
    %c0_68 = arith.constant 0 : index
    %338 = vector.load %arg12[%c56_67, %c0_68] : memref<64x256xf32, #tpu.memory_space<vmem>>, vector<8x128xf32>
    tpu.vector_store %arg12[%c56_67, %c0_68], %337 {strides = array<i32>} : memref<64x256xf32, #tpu.memory_space<vmem>>, vector<8x128xf32>,
    %339 = vector.extract_strided_slice %336 {offsets = [0, 128], sizes = [8, 128], strides = [1, 1]} : vector<8x256xf32> to vector<8x128xf32>
    %c0_69 = arith.constant 0 : index
    %c128_70 = arith.constant 128 : index
    %340 = vector.load %arg12[%c0_69, %c128_70] : memref<64x256xf32, #tpu.memory_space<vmem>>, vector<8x128xf32>
    tpu.vector_store %arg12[%c0_69, %c128_70], %339 {strides = array<i32>} : memref<64x256xf32, #tpu.memory_space<vmem>>, vector<8x128xf32>,
    %c0_71 = arith.constant 0 : index
    %c0_72 = arith.constant 0 : index
    %341 = vector.load %arg11[%c0_71, %c0_72] : memref<8x256xf32, #tpu.memory_space<vmem>>, vector<8x256xf32>
    tpu.vector_store %arg11[%c0_71, %c0_72], %336 {strides = array<i32>} : memref<8x256xf32, #tpu.memory_space<vmem>>, vector<8x256xf32>,
    %c0_73 = arith.constant 0 : index
    %c0_74 = arith.constant 0 : index
    %342 = vector.load %arg12[%c0_73, %c0_74] : memref<64x256xf32, #tpu.memory_space<vmem>>, vector<64x256xf32>
    %343 = arith.truncf %342 : vector<64x256xf32> to vector<64x256xbf16>
    %c0_75 = arith.constant 0 : index
    %c0_76 = arith.constant 0 : index
    %344 = vector.load %arg7[%c0_75, %c0_76] : memref<256x128xbf16, #tpu.memory_space<vmem>>, vector<256x128xbf16>
    %cst_77 = arith.constant dense<0.000000e+00> : vector<64x128xf32>
    %345 = tpu.matmul %343, %344, %cst_77 {dimension_numbers = #tpu.dot_dimension_numbers<[1], [0], [0], [1], [0, 0, 1, 1], [], []>} : vector<64x256xbf16>, vector<256x128xbf16>, vector<64x128xf32> -> vector<64x128xf32>
    %c0_78 = arith.constant 0 : index
    %c0_79 = arith.constant 0 : index
    %346 = vector.load %arg8[%c0_78, %c0_79] : memref<1x128xf32, #tpu.memory_space<vmem>>, vector<1x128xf32>
    %347 = vector.broadcast %346 : vector<1x128xf32> to vector<64x128xf32>
    %348 = arith.addf %345, %347 : vector<64x128xf32>
    %349 = math.tanh %348 : vector<64x128xf32>
    %c0_80 = arith.constant 0 : index
    %c0_81 = arith.constant 0 : index
    %350 = vector.load %arg9[%c0_80, %c0_81] : memref<1x128xf32, #tpu.memory_space<vmem>>, vector<1x128xf32>
    %351 = vector.broadcast %350 : vector<1x128xf32> to vector<64x128xf32>
    %352 = arith.mulf %349, %351 : vector<64x128xf32>
    %cst_82 = arith.constant dense<0.000000e+00> : vector<64xf32>
    %353 = vector.multi_reduction <add>, %352, %cst_82 [1] : vector<64x128xf32> to vector<64xf32>
    %354 = vector.shape_cast %353 : vector<64xf32> to vector<64x1xf32>
    %355 = math.tanh %354 : vector<64x1xf32>
    %356 = vector.shape_cast %355 : vector<64x1xf32> to vector<8x8x1xf32>
    %357 = vector.extract_strided_slice %356 {offsets = [0, 0, 0], sizes = [1, 8, 1], strides = [1, 1, 1]} : vector<8x8x1xf32> to vector<1x8x1xf32>
    %358 = vector.shape_cast %357 : vector<1x8x1xf32> to vector<8x1xf32>
    %359 = vector.extract_strided_slice %356 {offsets = [1, 0, 0], sizes = [1, 8, 1], strides = [1, 1, 1]} : vector<8x8x1xf32> to vector<1x8x1xf32>
    %360 = vector.shape_cast %359 : vector<1x8x1xf32> to vector<8x1xf32>
    %361 = arith.maximumf %358, %360 : vector<8x1xf32>
    %362 = vector.extract_strided_slice %356 {offsets = [2, 0, 0], sizes = [1, 8, 1], strides = [1, 1, 1]} : vector<8x8x1xf32> to vector<1x8x1xf32>
    %363 = vector.shape_cast %362 : vector<1x8x1xf32> to vector<8x1xf32>
    %364 = arith.maximumf %361, %363 : vector<8x1xf32>
    %365 = vector.extract_strided_slice %356 {offsets = [3, 0, 0], sizes = [1, 8, 1], strides = [1, 1, 1]} : vector<8x8x1xf32> to vector<1x8x1xf32>
    %366 = vector.shape_cast %365 : vector<1x8x1xf32> to vector<8x1xf32>
    %367 = arith.maximumf %364, %366 : vector<8x1xf32>
    %368 = vector.extract_strided_slice %356 {offsets = [4, 0, 0], sizes = [1, 8, 1], strides = [1, 1, 1]} : vector<8x8x1xf32> to vector<1x8x1xf32>
    %369 = vector.shape_cast %368 : vector<1x8x1xf32> to vector<8x1xf32>
    %370 = arith.maximumf %367, %369 : vector<8x1xf32>
    %371 = vector.extract_strided_slice %356 {offsets = [5, 0, 0], sizes = [1, 8, 1], strides = [1, 1, 1]} : vector<8x8x1xf32> to vector<1x8x1xf32>
    %372 = vector.shape_cast %371 : vector<1x8x1xf32> to vector<8x1xf32>
    %373 = arith.maximumf %370, %372 : vector<8x1xf32>
    %374 = vector.extract_strided_slice %356 {offsets = [6, 0, 0], sizes = [1, 8, 1], strides = [1, 1, 1]} : vector<8x8x1xf32> to vector<1x8x1xf32>
    %375 = vector.shape_cast %374 : vector<1x8x1xf32> to vector<8x1xf32>
    %376 = arith.maximumf %373, %375 : vector<8x1xf32>
    %377 = vector.extract_strided_slice %356 {offsets = [7, 0, 0], sizes = [1, 8, 1], strides = [1, 1, 1]} : vector<8x8x1xf32> to vector<1x8x1xf32>
    %378 = vector.shape_cast %377 : vector<1x8x1xf32> to vector<8x1xf32>
    %379 = arith.maximumf %376, %378 : vector<8x1xf32>
    %380 = vector.shape_cast %379 : vector<8x1xf32> to vector<1x8x1xf32>
    %381 = vector.broadcast %380 : vector<1x8x1xf32> to vector<8x8x1xf32>
    %382 = arith.subf %356, %381 : vector<8x8x1xf32>
    %383 = math.exp %382 : vector<8x8x1xf32>
    %384 = vector.extract_strided_slice %383 {offsets = [0, 0, 0], sizes = [1, 8, 1], strides = [1, 1, 1]} : vector<8x8x1xf32> to vector<1x8x1xf32>
    %385 = vector.shape_cast %384 : vector<1x8x1xf32> to vector<8x1xf32>
    %386 = vector.extract_strided_slice %383 {offsets = [1, 0, 0], sizes = [1, 8, 1], strides = [1, 1, 1]} : vector<8x8x1xf32> to vector<1x8x1xf32>
    %387 = vector.shape_cast %386 : vector<1x8x1xf32> to vector<8x1xf32>
    %388 = arith.addf %385, %387 : vector<8x1xf32>
    %389 = vector.extract_strided_slice %383 {offsets = [2, 0, 0], sizes = [1, 8, 1], strides = [1, 1, 1]} : vector<8x8x1xf32> to vector<1x8x1xf32>
    %390 = vector.shape_cast %389 : vector<1x8x1xf32> to vector<8x1xf32>
    %391 = arith.addf %388, %390 : vector<8x1xf32>
    %392 = vector.extract_strided_slice %383 {offsets = [3, 0, 0], sizes = [1, 8, 1], strides = [1, 1, 1]} : vector<8x8x1xf32> to vector<1x8x1xf32>
    %393 = vector.shape_cast %392 : vector<1x8x1xf32> to vector<8x1xf32>
    %394 = arith.addf %391, %393 : vector<8x1xf32>
    %395 = vector.extract_strided_slice %383 {offsets = [4, 0, 0], sizes = [1, 8, 1], strides = [1, 1, 1]} : vector<8x8x1xf32> to vector<1x8x1xf32>
    %396 = vector.shape_cast %395 : vector<1x8x1xf32> to vector<8x1xf32>
    %397 = arith.addf %394, %396 : vector<8x1xf32>
    %398 = vector.extract_strided_slice %383 {offsets = [5, 0, 0], sizes = [1, 8, 1], strides = [1, 1, 1]} : vector<8x8x1xf32> to vector<1x8x1xf32>
    %399 = vector.shape_cast %398 : vector<1x8x1xf32> to vector<8x1xf32>
    %400 = arith.addf %397, %399 : vector<8x1xf32>
    %401 = vector.extract_strided_slice %383 {offsets = [6, 0, 0], sizes = [1, 8, 1], strides = [1, 1, 1]} : vector<8x8x1xf32> to vector<1x8x1xf32>
    %402 = vector.shape_cast %401 : vector<1x8x1xf32> to vector<8x1xf32>
    %403 = arith.addf %400, %402 : vector<8x1xf32>
    %404 = vector.extract_strided_slice %383 {offsets = [7, 0, 0], sizes = [1, 8, 1], strides = [1, 1, 1]} : vector<8x8x1xf32> to vector<1x8x1xf32>
    %405 = vector.shape_cast %404 : vector<1x8x1xf32> to vector<8x1xf32>
    %406 = arith.addf %403, %405 : vector<8x1xf32>
    %407 = vector.shape_cast %406 : vector<8x1xf32> to vector<1x8x1xf32>
    %408 = vector.broadcast %407 : vector<1x8x1xf32> to vector<8x8x1xf32>
    %409 = arith.divf %383, %408 : vector<8x8x1xf32>
    %410 = vector.shape_cast %409 : vector<8x8x1xf32> to vector<64x1xf32>
    %411 = vector.broadcast %410 : vector<64x1xf32> to vector<64x256xf32>
    %412 = arith.mulf %411, %342 : vector<64x256xf32>
    %413 = vector.shape_cast %412 : vector<64x256xf32> to vector<8x8x256xf32>
    %414 = vector.extract_strided_slice %413 {offsets = [0, 0, 0], sizes = [1, 8, 256], strides = [1, 1, 1]} : vector<8x8x256xf32> to vector<1x8x256xf32>
    %415 = vector.shape_cast %414 : vector<1x8x256xf32> to vector<8x256xf32>
    %416 = vector.extract_strided_slice %413 {offsets = [1, 0, 0], sizes = [1, 8, 256], strides = [1, 1, 1]} : vector<8x8x256xf32> to vector<1x8x256xf32>
    %417 = vector.shape_cast %416 : vector<1x8x256xf32> to vector<8x256xf32>
    %418 = arith.addf %415, %417 : vector<8x256xf32>
    %419 = vector.extract_strided_slice %413 {offsets = [2, 0, 0], sizes = [1, 8, 256], strides = [1, 1, 1]} : vector<8x8x256xf32> to vector<1x8x256xf32>
    %420 = vector.shape_cast %419 : vector<1x8x256xf32> to vector<8x256xf32>
    %421 = arith.addf %418, %420 : vector<8x256xf32>
    %422 = vector.extract_strided_slice %413 {offsets = [3, 0, 0], sizes = [1, 8, 256], strides = [1, 1, 1]} : vector<8x8x256xf32> to vector<1x8x256xf32>
    %423 = vector.shape_cast %422 : vector<1x8x256xf32> to vector<8x256xf32>
    %424 = arith.addf %421, %423 : vector<8x256xf32>
    %425 = vector.extract_strided_slice %413 {offsets = [4, 0, 0], sizes = [1, 8, 256], strides = [1, 1, 1]} : vector<8x8x256xf32> to vector<1x8x256xf32>
    %426 = vector.shape_cast %425 : vector<1x8x256xf32> to vector<8x256xf32>
    %427 = arith.addf %424, %426 : vector<8x256xf32>
    %428 = vector.extract_strided_slice %413 {offsets = [5, 0, 0], sizes = [1, 8, 256], strides = [1, 1, 1]} : vector<8x8x256xf32> to vector<1x8x256xf32>
    %429 = vector.shape_cast %428 : vector<1x8x256xf32> to vector<8x256xf32>
    %430 = arith.addf %427, %429 : vector<8x256xf32>
    %431 = vector.extract_strided_slice %413 {offsets = [6, 0, 0], sizes = [1, 8, 256], strides = [1, 1, 1]} : vector<8x8x256xf32> to vector<1x8x256xf32>
    %432 = vector.shape_cast %431 : vector<1x8x256xf32> to vector<8x256xf32>
    %433 = arith.addf %430, %432 : vector<8x256xf32>
    %434 = vector.extract_strided_slice %413 {offsets = [7, 0, 0], sizes = [1, 8, 256], strides = [1, 1, 1]} : vector<8x8x256xf32> to vector<1x8x256xf32>
    %435 = vector.shape_cast %434 : vector<1x8x256xf32> to vector<8x256xf32>
    %436 = arith.addf %433, %435 : vector<8x256xf32>
    %c0_83 = arith.constant 0 : index
    %c0_84 = arith.constant 0 : index
    %437 = vector.load %arg10[%c0_83, %c0_84] : memref<8x256xf32, #tpu.memory_space<vmem>>, vector<8x256xf32>
    tpu.vector_store %arg10[%c0_83, %c0_84], %436 {strides = array<i32>} : memref<8x256xf32, #tpu.memory_space<vmem>>, vector<8x256xf32>,
    return
  }
  func.func @transform_0(%arg0: i32) -> (i32, i32, i32) {
    %c0_i32 = arith.constant 0 : i32
    %c0_i32_0 = arith.constant 0 : i32
    %c0_i32_1 = arith.constant 0 : i32
    return %arg0, %c0_i32, %c0_i32_0 : i32, i32, i32
  }
  func.func @transform_1(%arg0: i32) -> (i32, i32) {
    %c0_i32 = arith.constant 0 : i32
    %c0_i32_0 = arith.constant 0 : i32
    return %arg0, %c0_i32 : i32, i32
  }
  func.func @transform_2(%arg0: i32) -> (i32, i32) {
    %c0_i32 = arith.constant 0 : i32
    %c0_i32_0 = arith.constant 0 : i32
    %c0_i32_1 = arith.constant 0 : i32
    return %c0_i32, %c0_i32_0 : i32, i32
  }
  func.func @transform_3(%arg0: i32) -> (i32, i32) {
    %c0_i32 = arith.constant 0 : i32
    %c0_i32_0 = arith.constant 0 : i32
    %c0_i32_1 = arith.constant 0 : i32
    return %c0_i32, %c0_i32_0 : i32, i32
  }
  func.func @transform_4(%arg0: i32) -> (i32, i32) {
    %c0_i32 = arith.constant 0 : i32
    %c0_i32_0 = arith.constant 0 : i32
    %c0_i32_1 = arith.constant 0 : i32
    return %c0_i32, %c0_i32_0 : i32, i32
  }
  func.func @transform_5(%arg0: i32) -> (i32, i32) {
    %c0_i32 = arith.constant 0 : i32
    %c0_i32_0 = arith.constant 0 : i32
    %c0_i32_1 = arith.constant 0 : i32
    return %c0_i32, %c0_i32_0 : i32, i32
  }
  func.func @transform_6(%arg0: i32) -> (i32, i32) {
    %c0_i32 = arith.constant 0 : i32
    %c0_i32_0 = arith.constant 0 : i32
    %c0_i32_1 = arith.constant 0 : i32
    return %c0_i32, %c0_i32_0 : i32, i32
  }
  func.func @transform_7(%arg0: i32) -> (i32, i32) {
    %c0_i32 = arith.constant 0 : i32
    %c0_i32_0 = arith.constant 0 : i32
    %c0_i32_1 = arith.constant 0 : i32
    return %c0_i32, %c0_i32_0 : i32, i32
  }
  func.func @transform_8(%arg0: i32) -> (i32, i32) {
    %c0_i32 = arith.constant 0 : i32
    %c0_i32_0 = arith.constant 0 : i32
    %c0_i32_1 = arith.constant 0 : i32
    return %c0_i32, %c0_i32_0 : i32, i32
  }
  func.func @transform_9(%arg0: i32) -> (i32, i32) {
    %c0_i32 = arith.constant 0 : i32
    %c0_i32_0 = arith.constant 0 : i32
    return %arg0, %c0_i32 : i32, i32
  }
  func.func @transform_10(%arg0: i32) -> (i32, i32) {
    %c0_i32 = arith.constant 0 : i32
    %c0_i32_0 = arith.constant 0 : i32
    return %arg0, %c0_i32 : i32, i32
  }
}

</mosaic_0001>

<bundles_post_ra>
// kernel: tpu_custom_call.1
= control target key start
LH: loop header
LB: loop body
LE: loop exit
PB: predicated region body
PF: predicated region fallthrough
CT: control target
= control target key end

     0   :  { %s6521_s0 = inlined_call_operand.vmem [shape: bf16[2,64,32], index: 0, kind: input, shape index: {}]   ;;  %s6522_s1 = inlined_call_operand.hbm [shape: f32[16,256], index: 1, kind: input, shape index: {}]   ;;  %s6523_s2 = inlined_call_operand.vmem [shape: bf16[32,768], index: 2, kind: input, shape index: {}]   ;;  %s6524_s3 = inlined_call_operand.hbm [shape: bf16[256,768], index: 3, kind: input, shape index: {}]   ;;  %s6525_s4 = inlined_call_operand.vmem [shape: f32[1,768], index: 4, kind: input, shape index: {}]   ;;  %s6526_s5 = inlined_call_operand.vmem [shape: f32[1,256], index: 5, kind: input, shape index: {}]   ;;  %s6527_s6 = inlined_call_operand.hbm [shape: bf16[256,128], index: 6, kind: input, shape index: {}]   ;;  %s6528_s7 = inlined_call_operand.vmem [shape: f32[1,128], index: 7, kind: input, shape index: {}]   ;;  %s6529_s8 = inlined_call_operand.vmem [shape: f32[1,128], index: 8, kind: input, shape index: {}]   ;;  %s6530_s9 = inlined_call_operand.hbm [shape: f32[16,256], index: 9, kind: output, shape index: {0}]   ;;  %s6531_s10 = inlined_call_operand.hbm [shape: f32[16,256], index: 10, kind: output, shape index: {1}]  }
   0x1   :  { %6749 = sst [smem:[#allocation111_spill]] %s6522_s1 }
   0x2   :  { %16 = vsyncpa [#allocation4], 0 }
   0x3   :  { %18 = vsyncpa [#allocation4 + $0x1], 0 }
   0x4   :  { %19 = vsyncpa [#allocation7], 0 }
   0x5   :  { %20 = vsyncpa [#allocation5], 0 }
   0x6   :  { %22 = vsyncpa [#allocation5 + $0x1], 0 }
   0x7   :  { %23 = vsyncpa [#allocation11], 0 }
   0x8   :  { %25 = vsyncpa [#allocation11 + $0x1], 0  ;;  %s4581_s13 = smov 0   ;;  %s4583_s14 = smov 0  }
   0x9   :  { %s4585_s15 = smov 0   ;;  %s4587_s16 = smov 0  }
   0xa LB: > { %6750 = sst [smem:[#allocation16_spill]] %s4502_s13  ;;  %s4602_s17 = sadd.s32 4294967295, %s4514_s16   ;;  %s4514_s16 = sphi %s4587_s16, %s7170_s16   ;;  %s4510_s15 = sphi %s4585_s15, %s7169_s15   ;;  %s4506_s14 = sphi %s4583_s14, %s7168_s14   ;;  %s4502_s13 = sphi %s4581_s13, %s7167_s13  }
   0xb   : > { %s3423_s18 = sadd.s32 4294967294, %s4514_s16   ;;  %p77_p0 = scmp.ne.s32.totalorder %s4506_s14, %s4502_s13 }
   0xc   : > { %p6532_p1 = scmp.eq.s32.totalorder %s4602_s17, 0  ;;  %p254_p3 = scmp.eq.s32.totalorder %s3423_s18, 1 }
   0xd   : > { %p3424_p5 = scmp.ge.s32.totalorder %s4514_s16, 1  ;;  %p287_p7 = scmp.lt.s32.totalorder %s4514_s16, 3 }
   0xe   : > { %p4611_p4 = por %p6532_p1, %p77_p0  ;;  %p4616_p6 = por %p254_p3, %p77_p0 }
   0xf   : > { %p4621_p8 = pnand %p3424_p5, %p287_p7  ;;  %s4516_s22 = smov [#allocation6]  }
  0x10   : > { %s6751_s19 = scalar_select %p4611_p4, 1, 0 }
  0x11   : > { %s6752_s20 = scalar_select %p4616_p6, 1, 0 }
  0x12   : > { %s302_s23 = sshll.u32 %s4516_s22, 4  ;;  %p3679_p9 = pneg %p4621_p8  ;;  %s4625_s23 = int_to_ptr.vmem [resolvable:$true] %s302_s23 }
  0x13   : > { %6753 = sst [smem:[#allocation17_spill]] %s6752_s20  ;;  %s4517_s25 = smov [#allocation8]  }
  0x14   : > { %p4632_p11 = pnand %p3679_p9, %p6532_p1  ;;  %s321_s26 = sshll.u32 %s4517_s25, 4  ;;  %s4636_s26 = int_to_ptr.vmem [resolvable:$true] %s321_s26 }
  0x15   : > { %s4326_s29 = scalar_lea.hbm %s6524_s3, 12288 }
  0x16   : > { %p4327_p12 = scmp.ne.s32.totalorder %s6524_s3, %s4326_s29  ;;  %p4328_p13 = pneg %p4632_p11 }
  0x17   : > { %p4333_p5 = scmp.lt.u32.totalorder %s4326_s29, %s6524_s3 }
  0x18   : > { %p4329_p0 = pnand %p4328_p13, %p4327_p12 }
  0x1a   : > { %p4330_p3 = pneg %p4329_p0 }
  0x1c   : > { %p4335_p7 = pnand %p4333_p5, %p4330_p3 }
  0x1e   : > { %4338 = shalt.err (!%p4335_p7)
}
  0x1f   : > { %s4339_s22 = scalar_lea.vmem %s4625_s23, 12288  ;;  %p4347_p2 = scmp.lt.s32.totalorder %s4625_s23, %s4625_s23 }
  0x20   : > { %p4340_p9 = scmp.ne.s32.totalorder %s4625_s23, %s4339_s22  ;;  %p4348_p12 = scmp.lt.s32.totalorder %s4339_s22, %s4339_s22 }
  0x22   : > { %p4342_p10 = pnand %p4340_p9, %p4328_p13  ;;  %p4349_p0 = por %p4348_p12, %p4347_p2 }
  0x24   : > { %p4343_p1 = pneg %p4342_p10 }
  0x26   : > { %p4350_p6 = pnand %p4349_p0, %p4343_p1 }
  0x28   : > { %4353 = shalt.err (!%p4350_p6)
}
  0x29   : > { %s4518_s25 = smov 384   ;;  %s4519_s27 = smov 24  }
  0x2a   : > { %3682 = dma.hbm_to_vmem [thread:$0]  (!%p4632_p11), %s6524_s3, 12288, %s4625_s23, [#allocation7], %s4518_s25, %s4518_s25, %s4519_s27  }
  0x2b   : > { %s4354_s12 = scalar_lea.hbm %s6527_s6, 2048 }
  0x2c   : > { %p4355_p2 = scmp.ne.s32.totalorder %s6527_s6, %s4354_s12  ;;  %p4361_p10 = scmp.lt.u32.totalorder %s4354_s12, %s6527_s6 }
  0x2e   : > { %p4357_p1 = pnand %p4355_p2, %p4328_p13 }
  0x30   : > { %p4358_p6 = pneg %p4357_p1 }
  0x32   : > { %p4363_p3 = pnand %p4361_p10, %p4358_p6 }
  0x34   : > { %4366 = shalt.err (!%p4363_p3)
}
  0x35   : > { %s4367_s23 = scalar_lea.vmem %s4636_s26, 2048  ;;  %p4375_p12 = scmp.lt.s32.totalorder %s4636_s26, %s4636_s26 }
  0x36   : > { %p4368_p5 = scmp.ne.s32.totalorder %s4636_s26, %s4367_s23  ;;  %p4376_p0 = scmp.lt.s32.totalorder %s4367_s23, %s4367_s23 }
  0x38   : > { %p4370_p7 = pnand %p4368_p5, %p4328_p13  ;;  %p4377_p2 = por %p4376_p0, %p4375_p12 }
  0x3a   : > { %p4371_p9 = pneg %p4370_p7 }
  0x3c   : > { %p4378_p1 = pnand %p4377_p2, %p4371_p9 }
  0x3e   : > { %4381 = shalt.err (!%p4378_p1)
}
  0x3f   : > { %s4520_s13 = smov 64   ;;  %s4521_s20 = smov 4  }
  0x40   : > { %3685 = dma.hbm_to_vmem [thread:$0]  (!%p4632_p11), %s6527_s6, 2048, %s4636_s26, [#allocation7], %s4520_s13, %s4520_s13, %s4521_s20  }
  0x41   : > { %s4691_s28 = sadd.s32 1, %s4514_s16   ;;  %s64_s30 = sadd.s32 1, %s4510_s15 }
  0x42   : > { %s61_s29 = ssub.s32 %s4514_s16, %s4691_s28  ;;  %p71_p6 = scmp.ne.s32.totalorder %s4510_s15, %s4506_s14 }
  0x43   : > { %p62_p13 = scmp.eq.s32.totalorder %s61_s29, 0  ;;  %p72_p10 = scmp.eq.s32.totalorder %s4514_s16, 0 }
  0x44   : > { %p6756_p5 = scmp.eq.s32.totalorder %s4602_s17, 1  ;;  %p3699_p9 = scmp.lt.s32.totalorder %s4514_s16, 2 }
  0x45   : > { %s4700_s11 = scalar_select %p62_p13, %s4510_s15, %s64_s30  }
  0x46   : > { %p73_p3 = por %p72_p10, %p71_p6  ;;  %p4704_p7 = por %p6756_p5, %p71_p6 }
  0x47   : > { %s349_s24 = sand.u32 1, %s4510_s15   ;;  %s3621_s26 = sshll.u32 %s4514_s16, 8 }
  0x48   : > { %s6757_s12 = scalar_select %p4704_p7, 1, 0 }
  0x49   : > { %s3428_s18 = sshll.u32 %s349_s24, 4  ;;  %s6758_s1 = sld [smem:[#allocation111_spill]] }
  0x4a   : > { %s353_s20 = scalar_lea.vmem [#allocation3], %s3428_s18  ;;  %p4718_p11 = pnand %p3699_p9, %p73_p3 }
  0x4b   : > { %s361_s25 = sshll.u32 %s353_s20, 4  ;;  %s350_s29 = scalar_lea.sflag [#allocation4], %s349_s24  ;;  %s4716_s25 = int_to_ptr.vmem [resolvable:$true] %s361_s25 }
  0x4c   : > { %p4384_p0 = pneg %p4718_p11 }
  0x4f   : > { %s4714_s13 = scalar_lea.hbm %s6758_s1, %s3621_s26  ;;  %s4387_s22 = scalar_lea.hbm %s6758_s1, 512 }
  0x50   : > { %s4382_s30 = scalar_lea.hbm %s4714_s13, 256  ;;  %p4388_p13 = scmp.lt.u32.totalorder %s4714_s13, %s6758_s1 }
  0x51   : > { %p4383_p12 = scmp.ne.s32.totalorder %s4714_s13, %s4382_s30  ;;  %p4389_p6 = scmp.lt.u32.totalorder %s4387_s22, %s4382_s30 }
  0x52   : > { %p4391_p3 = scmp.lt.u32.totalorder %s4382_s30, %s4714_s13 }
  0x53   : > { %p4385_p2 = pnand %p4384_p0, %p4383_p12  ;;  %p4390_p10 = por %p4389_p6, %p4388_p13 }
  0x55   : > { %p4386_p1 = pneg %p4385_p2  ;;  %p4392_p5 = por %p4391_p3, %p4390_p10 }
  0x57   : > { %p4393_p9 = pnand %p4392_p5, %p4386_p1 }
  0x59   : > { %4396 = shalt.err (!%p4393_p9)
}
  0x5a   : > { %s4397_s24 = scalar_lea.vmem %s4716_s25, 256  ;;  %s4522_s26 = smov [#allocation3]  }
  0x5b   : > { %p4398_p12 = scmp.ne.s32.totalorder %s4716_s25, %s4397_s24  ;;  %s4402_s18 = sshll.u32 %s4522_s26, 4  ;;  %s4403_s18 = int_to_ptr.vmem [resolvable:$false] %s4402_s18 }
  0x5c   : > { %s4404_s23 = scalar_lea.vmem %s4403_s18, 512  ;;  %p4405_p4 = scmp.lt.s32.totalorder %s4716_s25, %s4403_s18 }
  0x5d   : > { %p4400_p2 = pnand %p4398_p12, %p4384_p0  ;;  %p4406_p13 = scmp.lt.s32.totalorder %s4404_s23, %s4397_s24 }
  0x5f   : > { %p4401_p7 = pneg %p4400_p2  ;;  %p4407_p6 = por %p4406_p13, %p4405_p4 }
  0x61   : > { %p4408_p10 = pnand %p4407_p6, %p4401_p7 }
  0x63   : > { %4411 = shalt.err (!%p4408_p10)
}
  0x64   : > { %3689 = dma.hbm_to_vmem [thread:$0]  (!%p4718_p11), %s4714_s13, 256, %s4716_s25, %s350_s29  }
  0x65   : > { %370 = sbr.rel (%p4621_p8) target bundleno = 3080 (0xc08), region = 56 }
  0x6c   : > { %s4750_s30 = sand.u32 1, %s4506_s14   ;;  %p6760_p4 = scmp.ne.s32.totalorder %s6751_s19, 0 }
  0x6d   : > { %s4753_s22 = sshll.u32 %s4750_s30, 4  ;;  %s373_s20 = scalar_lea.sflag [#allocation4], %s4750_s30 }
  0x6e   : > { %4485 = dma.done.wait (%p6760_p4), %s373_s20, 256  }
  0x6f   : > { %4487 = vsyncadd (%p6760_p4), %s373_s20, 4294967040  ;;  %p6761_p7 = scmp.eq.s32.totalorder %s4602_s17, 0 }
  0x71   : > { %4489 = dma.done.wait (%p6761_p7), [#allocation7], 14336   ;;  %p6762_p8 = pmov %p6761_p7 }
  0x72   : > { %p431_p11 = scmp.lt.s32.totalorder %s4602_s17, 1  ;;  %v4523_v0 = vmov 0   ;;  %v3742_v1 = vld [vmem:[%s6523_s2 + $0x4] ss:$24 sps:$4 sm:$0xff]   ;;  %v3746_v3 = vld [vmem:[%s6523_s2] ss:$24 sps:$4 sm:$0xff]  }
  0x73   : > { %4491 = vsyncadd (%p6762_p8), [#allocation7], 4294952960  ;;  %614 = vmatprep.mubr.bf16.mxu0 %v4523_v0  ;;  %687 = vmatprep.mubr.bf16.mxu1 %v4523_v0  ;;  %v3744_v2 = vld [vmem:[%s6523_s2 + $0xc] ss:$24 sps:$4 sm:$0xff]   ;;  %v3747_v4 = vld [vmem:[%s6523_s2 + $0x8] ss:$24 sps:$4 sm:$0xff]  }
  0x74   : > { %s432_s21 = scalar_select %p431_p11, %s4602_s17, 1  ;;  %582 = vmatprep.subr.bf16.mxu0 %v3742_v1  ;;  %655 = vmatprep.subr.bf16.mxu1 %v3744_v2  ;;  %v3748_v5 = vld [vmem:[%s6523_s2 + $0x34] ss:$24 sps:$4 sm:$0xff]   ;;  %v3752_v7 = vld [vmem:[%s6523_s2 + $0x30] ss:$24 sps:$4 sm:$0xff]   ;;  %vm569_vm0 = vcmask 261120  }
  0x75   : > { %583 = vmatpush1.bf16.msra.mxu0 %v3746_v3  ;;  %656 = vmatpush1.bf16.msra.mxu1 %v3747_v4  ;;  %v3750_v6 = vld [vmem:[%s6523_s2 + $0x3c] ss:$24 sps:$4 sm:$0xff]   ;;  %v3753_v8 = vld [vmem:[%s6523_s2 + $0x38] ss:$24 sps:$4 sm:$0xff]   ;;  %v4856_v25 = vld [vmem:[#allocation6 + $0xc] ss:$24 sps:$4 sm:$0xff]  }
  0x76   : > { %s3622_s29 = sshll.u32 %s432_s21, 5  ;;  %584 = vmatprep.subr.bf16.mxu0 %v3748_v5  ;;  %657 = vmatprep.subr.bf16.mxu1 %v3750_v6  ;;  %v4801_v10 = vld [vmem:[#allocation6 + $0x4] ss:$24 sps:$4 sm:$0xff]   ;;  %v4803_v11 = vld [vmem:[#allocation6] ss:$24 sps:$4 sm:$0xff]   ;;  %s6763_s26 = scalar_lea.vmem [#allocation3], %s4753_s22 }
  0x77   : > { %s4793_s18 = scalar_lea.vmem %s6521_s0, %s3622_s29  ;;  %v4806_v12 = vld [vmem:[#allocation6 + $0x34] ss:$24 sps:$4 sm:$0xff]   ;;  %v4813_v13 = vld [vmem:[#allocation6 + $0x30] ss:$24 sps:$4 sm:$0xff]   ;;  %v4817_v14 = vld [vmem:[#allocation6 + $0x64] ss:$24 sps:$4 sm:$0xff]  }
  0x78   : > { %v4799_v9 = vld [vmem:[%s4793_s18] sm:$0xff]   ;;  %v4821_v15 = vld [vmem:[%s4793_s18 + $0x8] sm:$0xff]   ;;  %v4853_v24 = vld [vmem:[%s4793_s18 + $0x10] sm:$0xff]   ;;  %s6400_s20 = scalar_lea.vmem [#allocation10], %s4753_s22  ;;  %s3623_s27 = sshll.u32 %s4602_s17, 8 }
  0x79   : > { %585 = vmatpush1.bf16.msra.mxu0 %v3752_v7  ;;  %658 = vmatpush1.bf16.msra.mxu1 %v3753_v8  ;;  %v4823_v16 = vld [vmem:[#allocation6 + $0x60] ss:$24 sps:$4 sm:$0xff]   ;;  %v3774_v17 = vld [vmem:[%s6523_s2 + $0x14] ss:$24 sps:$4 sm:$0xff]   ;;  %v3772_v19 = vld [vmem:[%s6523_s2 + $0x10] ss:$24 sps:$4 sm:$0xff]   ;;  %s6434_s23 = scalar_lea.hbm %s6531_s10, %s3623_s27 }
  0x7a   : > { %1485 = vmatprep.subr.bf16.mxu1 %v4801_v10  ;;  %v4830_v18 = vld [vmem:[#allocation6 + $0x94] ss:$24 sps:$4 sm:$0xff]   ;;  %728 = vmatprep.subr.bf16.mxu0 %v3774_v17  ;;  %v4837_v20 = vld [vmem:[#allocation6 + $0x90] ss:$24 sps:$4 sm:$0xff]   ;;  %v4839_v21 = vld [vmem:[#allocation6 + $0xc4] ss:$24 sps:$4 sm:$0xff]  }
  0x7b   : > { %v3782_v22 = vld [vmem:[%s6523_s2 + $0x40] ss:$24 sps:$4 sm:$0xff]   ;;  %v3784_v23 = vld [vmem:[%s6523_s2 + $0x44] ss:$24 sps:$4 sm:$0xff]   ;;  %v4862_v27 = vld [vmem:[#allocation6 + $0xf4] ss:$24 sps:$4 sm:$0xff]  }
  0x7c   : > { %3455 = vmatmul.mubr.msk.bf16.vlgmr.msra.gmra.mrb[0].mxu0 %vm569_vm0, %v4799_v9  ;;  %3459 = vmatmul.mubr.msk.bf16.vlgmr.msra.gmra.mrb[0].mxu1 %vm569_vm0, %v4799_v9  ;;  %v4859_v26 = vld [vmem:[#allocation6 + $0xc0] ss:$24 sps:$4 sm:$0xff]   ;;  %v4870_v28 = vld [vmem:[#allocation6 + $0xf0] ss:$24 sps:$4 sm:$0xff]   ;;  %v4874_v29 = vld [vmem:[#allocation6 + $0x124] ss:$24 sps:$4 sm:$0xff]  }
  0x7d   : > { %1486 = vmatpush1.bf16.msra.mxu1 %v4803_v11  ;;  %624 = vmatprep.mubr.bf16.mxu0 %v4523_v0  ;;  %v4878_v30 = vld [vmem:[%s4793_s18 + $0x18] sm:$0xff]   ;;  %v4884_v32 = vld [vmem:[#allocation6 + $0x154] ss:$24 sps:$4 sm:$0xff]   ;;  %v4891_v33 = vld [vmem:[#allocation6 + $0x150] ss:$24 sps:$4 sm:$0xff]   ;;  %s6765_s18 = smov %s6763_s26  ;;  %s3290_s1 = sshll.u32 %s6400_s20, 4  ;;  %s3291_s1 = int_to_ptr.vmem [resolvable:$true] %s3290_s1 }
  0x7e   : > { %1487 = vmatprep.subr.bf16.mxu1 %v4806_v12  ;;  %697 = vmatprep.mubr.bf16.mxu1 %v4523_v0  ;;  %v4881_v31 = vld [vmem:[#allocation6 + $0x120] ss:$24 sps:$4 sm:$0xff]   ;;  %v4895_v34 = vld [vmem:[#allocation6 + $0x184] ss:$24 sps:$4 sm:$0xff]   ;;  %v4905_v38 = vld [vmem:[#allocation6 + $0x1b4] ss:$24 sps:$4 sm:$0xff]  }
  0x7f   : > { %729 = vmatpush1.bf16.msra.mxu0 %v3772_v19  ;;  %v4897_v35 = vld [vmem:[#allocation6 + $0x8] ss:$24 sps:$4 sm:$0xff]   ;;  %v4902_v37 = vld [vmem:[#allocation6 + $0x3c] ss:$24 sps:$4 sm:$0xff]   ;;  %v4909_v39 = vld [vmem:[#allocation6 + $0x38] ss:$24 sps:$4 sm:$0xff]  }
  0x80   : > { %730 = vmatprep.subr.bf16.mxu0 %v3784_v23  ;;  %v4900_v36 = vld [vmem:[#allocation6 + $0x180] ss:$24 sps:$4 sm:$0xff]   ;;  %v4911_v40 = vld [vmem:[#allocation6 + $0x1b0] ss:$24 sps:$4 sm:$0xff]   ;;  %v4921_v42 = vld [vmem:[#allocation6 + $0x6c] ss:$24 sps:$4 sm:$0xff]  }
  0x81   : > { %1488 = vmatpush1.bf16.msra.mxu1 %v4813_v13  ;;  %v4917_v41 = vld [vmem:[%s6763_s26 + $0x8] sm:$0xff]  ;;  %v5007_v3 = vld [vmem:[%s6765_s18] sm:$0xff]  ;;  %s3262_s24 = scalar_lea.sflag [#allocation11], %s4750_s30  ;;  %s4412_s29 = scalar_lea.vmem %s3291_s1, 256 }
  0x82   : > { %1489 = vmatprep.subr.bf16.mxu1 %v4817_v14  ;;  %6764 = vst [vmem:[#allocation18_spill] sm:$0xff] %v4917_v41  ;;  %v4923_v43 = vld [vmem:[#allocation6 + $0x1e4] ss:$24 sps:$4 sm:$0xff]   ;;  %v4927_v44 = vpack.c.bf16 %v4917_v41, %v4917_v41  ;;  %v4933_v45 = vld [vmem:[#allocation6 + $0x68] ss:$24 sps:$4 sm:$0xff]   ;;  %6766 = vst [vmem:[#allocation19_spill] sm:$0xff] %v5007_v3  ;;  %v5018_v6 = vpack.c.bf16 %v5007_v3, %v5007_v3  ;;  %p4413_p0 = scmp.ne.s32.totalorder %s3291_s1, %s4412_s29 }
  0x83   : > { %731 = vmatpush1.bf16.msra.mxu0 %v3782_v22  ;;  %v4935_v46 = vld [vmem:[#allocation6 + $0x1e0] ss:$24 sps:$4 sm:$0xff]   ;;  %v4939_v47 = vld [vmem:[#allocation6 + $0x9c] ss:$24 sps:$4 sm:$0xff]   ;;  %v4949_v50 = vld [vmem:[#allocation6 + $0x210] ss:$24 sps:$4 sm:$0xff]  }
  0x84   : > { %3456 = vmatmul.mubr.msk.bf16.gmra.mrb[4].mxu0 %vm569_vm0, %v4821_v15  ;;  %3460 = vmatmul.mubr.msk.bf16.gmra.mrb[4].mxu1 %vm569_vm0, %v4821_v15  ;;  %v4941_v48 = vld [vmem:[#allocation6 + $0x214] ss:$24 sps:$4 sm:$0xff]   ;;  %v4947_v49 = vld [vmem:[#allocation6 + $0x98] ss:$24 sps:$4 sm:$0xff]   ;;  %v4955_v52 = vld [vmem:[#allocation6 + $0x244] ss:$24 sps:$4 sm:$0xff]  }
  0x85   : > { %1490 = vmatpush1.bf16.msra.mxu1 %v4823_v16  ;;  %634 = vmatprep.mubr.bf16.mxu0 %v4523_v0  ;;  %v4953_v51 = vld [vmem:[#allocation6 + $0xcc] ss:$24 sps:$4 sm:$0xff]   ;;  %v4960_v53 = vld [vmem:[#allocation6 + $0xc8] ss:$24 sps:$4 sm:$0xff]   ;;  %v4966_v55 = vld [vmem:[#allocation6 + $0xfc] ss:$24 sps:$4 sm:$0xff]  }
  0x86   : > { %1491 = vmatprep.subr.bf16.mxu1 %v4830_v18  ;;  %707 = vmatprep.mubr.bf16.mxu1 %v4523_v0  ;;  %v4962_v54 = vld [vmem:[#allocation6 + $0x240] ss:$24 sps:$4 sm:$0xff]   ;;  %v4968_v56 = vld [vmem:[#allocation6 + $0x274] ss:$24 sps:$4 sm:$0xff]   ;;  %v4976_v58 = vld [vmem:[#allocation6 + $0x270] ss:$24 sps:$4 sm:$0xff]  }
  0x87   : > { %1526 = vmatprep.subr.bf16.mxu0 %v4856_v25  ;;  %v4974_v57 = vld [vmem:[#allocation6 + $0xf8] ss:$24 sps:$4 sm:$0xff]   ;;  %v4980_v59 = vld [vmem:[#allocation6 + $0x12c] ss:$24 sps:$4 sm:$0xff]   ;;  %v4987_v61 = vld [vmem:[#allocation6 + $0x128] ss:$24 sps:$4 sm:$0xff]  }
  0x88   : > { %v4982_v60 = vld [vmem:[#allocation6 + $0x2a4] ss:$24 sps:$4 sm:$0xff]   ;;  %v4989_v62 = vld [vmem:[#allocation6 + $0x2a0] ss:$24 sps:$4 sm:$0xff]   ;;  %v4995_v1 = vld [vmem:[#allocation6 + $0x2d4] ss:$24 sps:$4 sm:$0xff]  }
  0x89   : > { %1492 = vmatpush1.bf16.msra.mxu1 %v4837_v20  ;;  %v4993_v63 = vld [vmem:[#allocation6 + $0x15c] ss:$24 sps:$4 sm:$0xff]   ;;  %v4997_v2 = vld [vmem:[#allocation6 + $0x158] ss:$24 sps:$4 sm:$0xff]   ;;  %v5011_v4 = vld [vmem:[#allocation6 + $0x18c] ss:$24 sps:$4 sm:$0xff]  }
  0x8a   : > { %1493 = vmatprep.subr.bf16.mxu1 %v4839_v21  ;;  %v5013_v5 = vld [vmem:[#allocation6 + $0x14] ss:$24 sps:$4 sm:$0xff]   ;;  %v5022_v7 = vld [vmem:[#allocation6 + $0x188] ss:$24 sps:$4 sm:$0xff]   ;;  %v5033_v17 = vld [vmem:[#allocation6 + $0x1b8] ss:$24 sps:$4 sm:$0xff]  }
  0x8b   : > { %6767 = vst [vmem:[#allocation20_spill] sm:$0xff] %v5022_v7  ;;  %v5024_v8 = vld [vmem:[#allocation6 + $0x10] ss:$24 sps:$4 sm:$0xff]   ;;  %v5037_v19 = vld [vmem:[#allocation6 + $0x40] ss:$24 sps:$4 sm:$0xff]   ;;  %p7162_p1 = scmp.ne.s32.totalorder %s6757_s12, 0 }
  0x8c   : > { %3457 = vmatmul.mubr.msk.bf16.gmra.mrb[8].mxu0 %vm569_vm0, %v4853_v24  ;;  %3461 = vmatmul.mubr.msk.bf16.gmra.mrb[8].mxu1 %vm569_vm0, %v4853_v24  ;;  %6768 = vst [vmem:[#allocation21_spill] sm:$0xff] %v5024_v8  ;;  %6771 = vst [vmem:[#allocation24_spill] sm:$0xff] %v5037_v19  ;;  %v5039_v22 = vld [vmem:[#allocation6 + $0x1ec] ss:$24 sps:$4 sm:$0xff]   ;;  %v5050_v41 = vld [vmem:[#allocation6 + $0x21c] ss:$24 sps:$4 sm:$0xff]  }
  0x8d   : > { %1494 = vmatpush1.bf16.msra.mxu1 %v4859_v26  ;;  %644 = vmatprep.mubr.bf16.mxu0 %v4523_v0  ;;  %6772 = vst [vmem:[#allocation25_spill] sm:$0xff] %v5039_v22  ;;  %v5041_v23 = vld [vmem:[#allocation6 + $0x74] ss:$24 sps:$4 sm:$0xff]   ;;  %6776 = vst [vmem:[#allocation29_spill] sm:$0xff] %v5050_v41  ;;  %v5052_v3 = vld [vmem:[#allocation6 + $0xa4] ss:$24 sps:$4 sm:$0xff]   ;;  %p4414_p3 = pnand %p4413_p0, %p7162_p1 }
  0x8e   : > { %1495 = vmatprep.subr.bf16.mxu1 %v4862_v27  ;;  %717 = vmatprep.mubr.bf16.mxu1 %v4523_v0  ;;  %6773 = vst [vmem:[#allocation26_spill] sm:$0xff] %v5041_v23  ;;  %6777 = vst [vmem:[#allocation30_spill] sm:$0xff] %v5052_v3  ;;  %s4524_s13 = smov [#allocation10]  }
  0x8f   : > { %p4415_p5 = pneg %p4414_p3  ;;  %s4416_s25 = sshll.u32 %s4524_s13, 4  ;;  %s4417_s25 = int_to_ptr.vmem [resolvable:$false] %s4416_s25 }
  0x90   : > { %s4418_s21 = scalar_lea.vmem %s4417_s25, 512  ;;  %p4419_p9 = scmp.lt.s32.totalorder %s3291_s1, %s4417_s25 }
  0x91   : > { %1496 = vmatpush1.bf16.msra.mxu1 %v4870_v28  ;;  %p4420_p12 = scmp.lt.s32.totalorder %s4418_s21, %s4412_s29 }
  0x92   : > { %1497 = vmatprep.subr.bf16.mxu1 %v4874_v29 }
  0x93   : > { %p4421_p2 = por %p4420_p12, %p4419_p9 }
  0x94   : > { %3458 = vmatmul.mubr.msk.bf16.gmra.mrb[12].mxu0 %vm569_vm0, %v4878_v30  ;;  %3462 = vmatmul.mubr.msk.bf16.gmra.mrb[12].mxu1 %vm569_vm0, %v4878_v30 }
  0x95   : > { %1498 = vmatpush1.bf16.msra.mxu1 %v4881_v31  ;;  %760 = vmatprep.mubr.bf16.mxu0 %v4523_v0  ;;  %p4422_p13 = pnand %p4421_p2, %p4415_p5 }
  0x96   : > { %1499 = vmatprep.subr.bf16.mxu1 %v4884_v32  ;;  %1517 = vmatprep.mubr.bf16.mxu1 %v4927_v44 }
  0x99   : > { %1500 = vmatpush1.bf16.msra.mxu1 %v4891_v33 }
  0x9a   : > { %1501 = vmatprep.subr.bf16.mxu1 %v4895_v34 }
  0x9c   : > { %3463 = vmatmul.mubr.msk.bf16.vlgmr.msra.gmra.mrb[16].mxu0 %vm569_vm0, %v4799_v9  ;;  %v5028_v9 = vld [vmem:[#allocation6 + $0x1bc] ss:$24 sps:$4 sm:$0xff]  }
  0x9d   : > { %1527 = vmatpush1.bf16.msra.mxu0 %v4897_v35  ;;  %1502 = vmatpush1.bf16.msra.mxu1 %v4900_v36  ;;  %6769 = vst [vmem:[#allocation22_spill] sm:$0xff] %v5028_v9 }
  0x9e   : > { %1528 = vmatprep.subr.bf16.mxu0 %v4902_v37  ;;  %1503 = vmatprep.subr.bf16.mxu1 %v4905_v38 }
  0x9f   : > { %770 = vmatprep.mubr.bf16.mxu0 %v4523_v0 }
  0xa1   : > { %1529 = vmatpush1.bf16.msra.mxu0 %v4909_v39  ;;  %1504 = vmatpush1.bf16.msra.mxu1 %v4911_v40 }
  0xa2   : > { %1530 = vmatprep.subr.bf16.mxu0 %v4921_v42  ;;  %1505 = vmatprep.subr.bf16.mxu1 %v4923_v43 }
  0xa4   : > { %3464 = vmatmul.mubr.msk.bf16.gmra.mrb[20].mxu0 %vm569_vm0, %v4821_v15  ;;  %v5030_v15 = vld [vmem:[#allocation6 + $0x44] ss:$24 sps:$4 sm:$0xff]  }
  0xa5   : > { %1531 = vmatpush1.bf16.msra.mxu0 %v4933_v45  ;;  %1506 = vmatpush1.bf16.msra.mxu1 %v4935_v46  ;;  %6770 = vst [vmem:[#allocation23_spill] sm:$0xff] %v5030_v15 }
  0xa6   : > { %1532 = vmatprep.subr.bf16.mxu0 %v4939_v47  ;;  %1507 = vmatprep.subr.bf16.mxu1 %v4941_v48 }
  0xa7   : > { %780 = vmatprep.mubr.bf16.mxu0 %v4523_v0 }
  0xa9   : > { %1533 = vmatpush1.bf16.msra.mxu0 %v4947_v49  ;;  %1508 = vmatpush1.bf16.msra.mxu1 %v4949_v50 }
  0xaa   : > { %1534 = vmatprep.subr.bf16.mxu0 %v4953_v51  ;;  %1509 = vmatprep.subr.bf16.mxu1 %v4955_v52 }
  0xac   : > { %3465 = vmatmul.mubr.msk.bf16.gmra.mrb[24].mxu0 %vm569_vm0, %v4853_v24  ;;  %v5045_v24 = vld [vmem:[#allocation6 + $0x1e8] ss:$24 sps:$4 sm:$0xff]  }
  0xad   : > { %1535 = vmatpush1.bf16.msra.mxu0 %v4960_v53  ;;  %1510 = vmatpush1.bf16.msra.mxu1 %v4962_v54  ;;  %6774 = vst [vmem:[#allocation27_spill] sm:$0xff] %v5045_v24 }
  0xae   : > { %1536 = vmatprep.subr.bf16.mxu0 %v4966_v55  ;;  %1511 = vmatprep.subr.bf16.mxu1 %v4968_v56 }
  0xaf   : > { %790 = vmatprep.mubr.bf16.mxu0 %v4523_v0  ;;  %v5003_v0 = vld [vmem:[#allocation6 + $0x2d0] ss:$24 sps:$4 sm:$0xff]  }
  0xb1   : > { %1537 = vmatpush1.bf16.msra.mxu0 %v4974_v57  ;;  %1512 = vmatpush1.bf16.msra.mxu1 %v4976_v58 }
  0xb2   : > { %1538 = vmatprep.subr.bf16.mxu0 %v4980_v59  ;;  %1513 = vmatprep.subr.bf16.mxu1 %v4982_v60 }
  0xb4   : > { %3466 = vmatmul.mubr.msk.bf16.gmra.mrb[28].mxu0 %vm569_vm0, %v4878_v30  ;;  %v5047_v30 = vld [vmem:[#allocation6 + $0x70] ss:$24 sps:$4 sm:$0xff]  }
  0xb5   : > { %1539 = vmatpush1.bf16.msra.mxu0 %v4987_v61  ;;  %1514 = vmatpush1.bf16.msra.mxu1 %v4989_v62  ;;  %6775 = vst [vmem:[#allocation28_spill] sm:$0xff] %v5047_v30 }
  0xb6   : > { %1540 = vmatprep.subr.bf16.mxu0 %v4993_v63  ;;  %1515 = vmatprep.subr.bf16.mxu1 %v4995_v1 }
  0xb7   : > { %1558 = vmatprep.mubr.bf16.mxu0 %v4927_v44 }
  0xb9   : > { %1541 = vmatpush1.bf16.msra.mxu0 %v4997_v2  ;;  %1516 = vmatpush1.bf16.msra.mxu1 %v5003_v0 }
  0xba   : > { %1542 = vmatprep.subr.bf16.mxu0 %v5011_v4  ;;  %1567 = vmatprep.subr.bf16.mxu1 %v5013_v5 }
  0xbc   : > { %1518 = vmatmul.mubr.bf16.vlgmr.msra.gmra.mrb[16].mxu1 %v5018_v6 }
  0xbd   : > { %1543 = vmatpush1.bf16.msra.mxu0 %v5022_v7  ;;  %1568 = vmatpush1.bf16.msra.mxu1 %v5024_v8  ;;  %v5058_v8 = vld [vmem:[#allocation6 + $0x218] ss:$24 sps:$4 sm:$0xff]   ;;  %v5064_v7 = vld [vmem:[#allocation6 + $0xd4] ss:$24 sps:$4 sm:$0xff]  }
  0xbe   : > { %1544 = vmatprep.subr.bf16.mxu0 %v5028_v9  ;;  %1569 = vmatprep.subr.bf16.mxu1 %v5030_v15  ;;  %6778 = vst [vmem:[#allocation31_spill] sm:$0xff] %v5058_v8  ;;  %v5060_v15 = vld [vmem:[#allocation6 + $0xa0] ss:$24 sps:$4 sm:$0xff]   ;;  %v5062_v9 = vld [vmem:[#allocation6 + $0x24c] ss:$24 sps:$4 sm:$0xff]   ;;  %6781 = vst [vmem:[#allocation34_spill] sm:$0xff] %v5064_v7 }
  0xbf   : > { %1599 = vmatprep.mubr.bf16.mxu1 %v4927_v44  ;;  %6779 = vst [vmem:[#allocation32_spill] sm:$0xff] %v5060_v15  ;;  %6780 = vst [vmem:[#allocation33_spill] sm:$0xff] %v5062_v9  ;;  %v5072_v44 = vld [vmem:[#allocation6 + $0x248] ss:$24 sps:$4 sm:$0xff]  }
  0xc0   : > { %6782 = vst [vmem:[#allocation35_spill] sm:$0xff] %v5072_v44 }
  0xc1   : > { %1545 = vmatpush1.bf16.msra.mxu0 %v5033_v17  ;;  %1570 = vmatpush1.bf16.msra.mxu1 %v5037_v19  ;;  %v5078_v19 = vld [vmem:[#allocation6 + $0x27c] ss:$24 sps:$4 sm:$0xff]  }
  0xc2   : > { %1546 = vmatprep.subr.bf16.mxu0 %v5039_v22  ;;  %1571 = vmatprep.subr.bf16.mxu1 %v5041_v23  ;;  %v5074_v23 = vld [vmem:[#allocation6 + $0xd0] ss:$24 sps:$4 sm:$0xff]   ;;  %6784 = vst [vmem:[#allocation37_spill] sm:$0xff] %v5078_v19 }
  0xc3   : > { %6783 = vst [vmem:[#allocation36_spill] sm:$0xff] %v5074_v23 }
  0xc5   : > { %1547 = vmatpush1.bf16.msra.mxu0 %v5045_v24  ;;  %1572 = vmatpush1.bf16.msra.mxu1 %v5047_v30  ;;  %v5080_v24 = vld [vmem:[#allocation6 + $0x104] ss:$24 sps:$4 sm:$0xff]   ;;  %v5086_v30 = vld [vmem:[#allocation6 + $0x100] ss:$24 sps:$4 sm:$0xff]  }
  0xc6   : > { %1548 = vmatprep.subr.bf16.mxu0 %v5050_v41  ;;  %1573 = vmatprep.subr.bf16.mxu1 %v5052_v3  ;;  %6785 = vst [vmem:[#allocation38_spill] sm:$0xff] %v5080_v24  ;;  %v5084_v3 = vld [vmem:[#allocation6 + $0x278] ss:$24 sps:$4 sm:$0xff]   ;;  %6787 = vst [vmem:[#allocation40_spill] sm:$0xff] %v5086_v30 }
  0xc7   : > { %6786 = vst [vmem:[#allocation39_spill] sm:$0xff] %v5084_v3 }
  0xc9   : > { %1549 = vmatpush1.bf16.msra.mxu0 %v5058_v8  ;;  %1574 = vmatpush1.bf16.msra.mxu1 %v5060_v15  ;;  %v5090_v15 = vld [vmem:[#allocation6 + $0x2ac] ss:$24 sps:$4 sm:$0xff]  }
  0xca   : > { %1550 = vmatprep.subr.bf16.mxu0 %v5062_v9  ;;  %1575 = vmatprep.subr.bf16.mxu1 %v5064_v7  ;;  %6788 = vst [vmem:[#allocation41_spill] sm:$0xff] %v5090_v15  ;;  %v5092_v9 = vld [vmem:[#allocation6 + $0x134] ss:$24 sps:$4 sm:$0xff]   ;;  %v5096_v7 = vld [vmem:[#allocation6 + $0x2a8] ss:$24 sps:$4 sm:$0xff]  }
  0xcb   : > { %6789 = vst [vmem:[#allocation42_spill] sm:$0xff] %v5092_v9  ;;  %6790 = vst [vmem:[#allocation43_spill] sm:$0xff] %v5096_v7 }
  0xcd   : > { %1551 = vmatpush1.bf16.msra.mxu0 %v5072_v44  ;;  %1576 = vmatpush1.bf16.msra.mxu1 %v5074_v23  ;;  %v5098_v44 = vld [vmem:[#allocation6 + $0x130] ss:$24 sps:$4 sm:$0xff]   ;;  %v5102_v23 = vld [vmem:[#allocation6 + $0x2dc] ss:$24 sps:$4 sm:$0xff]  }
  0xce   : > { %1552 = vmatprep.subr.bf16.mxu0 %v5078_v19  ;;  %1577 = vmatprep.subr.bf16.mxu1 %v5080_v24  ;;  %6791 = vst [vmem:[#allocation44_spill] sm:$0xff] %v5098_v44  ;;  %6792 = vst [vmem:[#allocation45_spill] sm:$0xff] %v5102_v23  ;;  %v5104_v19 = vld [vmem:[#allocation6 + $0x164] ss:$24 sps:$4 sm:$0xff]   ;;  %v5108_v24 = vld [vmem:[#allocation6 + $0x2d8] ss:$24 sps:$4 sm:$0xff]  }
  0xcf   : > { %6793 = vst [vmem:[#allocation46_spill] sm:$0xff] %v5104_v19  ;;  %6794 = vst [vmem:[#allocation47_spill] sm:$0xff] %v5108_v24 }
  0xd1   : > { %1553 = vmatpush1.bf16.msra.mxu0 %v5084_v3  ;;  %1578 = vmatpush1.bf16.msra.mxu1 %v5086_v30  ;;  %v5110_v3 = vld [vmem:[#allocation6 + $0x160] ss:$24 sps:$4 sm:$0xff]   ;;  %v5114_v30 = vld [vmem:[#allocation6 + $0x194] ss:$24 sps:$4 sm:$0xff]  }
  0xd2   : > { %1554 = vmatprep.subr.bf16.mxu0 %v5090_v15  ;;  %1579 = vmatprep.subr.bf16.mxu1 %v5092_v9  ;;  %6795 = vst [vmem:[#allocation48_spill] sm:$0xff] %v5110_v3  ;;  %6796 = vst [vmem:[#allocation49_spill] sm:$0xff] %v5114_v30  ;;  %v5118_v9 = vld [vmem:[#allocation6 + $0x190] ss:$24 sps:$4 sm:$0xff]  }
  0xd5   : > { %1555 = vmatpush1.bf16.msra.mxu0 %v5096_v7  ;;  %1580 = vmatpush1.bf16.msra.mxu1 %v5098_v44  ;;  %v5121_v7 = vld [vmem:[#allocation6 + $0x1c4] ss:$24 sps:$4 sm:$0xff]   ;;  %v5126_v44 = vld [vmem:[#allocation6 + $0x1c0] ss:$24 sps:$4 sm:$0xff]  }
  0xd6   : > { %1556 = vmatprep.subr.bf16.mxu0 %v5102_v23  ;;  %1581 = vmatprep.subr.bf16.mxu1 %v5104_v19  ;;  %v5130_v19 = vld [vmem:[#allocation6 + $0x1f4] ss:$24 sps:$4 sm:$0xff]  }
  0xd9   : > { %1557 = vmatpush1.bf16.msra.mxu0 %v5108_v24  ;;  %1582 = vmatpush1.bf16.msra.mxu1 %v5110_v3  ;;  %v5138_v3 = vld [vmem:[#allocation6 + $0x224] ss:$24 sps:$4 sm:$0xff]  }
  0xda   : > { %1583 = vmatprep.subr.bf16.mxu1 %v5114_v30  ;;  %1673 = vmatprep.subr.bf16.mxu0 %v4801_v10  ;;  %v5134_v30 = vld [vmem:[#allocation6 + $0x1f0] ss:$24 sps:$4 sm:$0xff]  }
  0xdc   : > { %1559 = vmatmul.mubr.bf16.vlgmr.msra.gmra.mrb[32].mxu0 %v5018_v6 }
  0xdd   : > { %1584 = vmatpush1.bf16.msra.mxu1 %v5118_v9  ;;  %1674 = vmatpush1.bf16.msra.mxu0 %v4803_v11  ;;  %v5142_v11 = vld [vmem:[#allocation6 + $0x220] ss:$24 sps:$4 sm:$0xff]  }
  0xde   : > { %1585 = vmatprep.subr.bf16.mxu1 %v5121_v7  ;;  %1675 = vmatprep.subr.bf16.mxu0 %v4806_v12  ;;  %v5146_v12 = vld [vmem:[#allocation6 + $0x254] ss:$24 sps:$4 sm:$0xff]  }
  0xe1   : > { %1586 = vmatpush1.bf16.msra.mxu1 %v5126_v44  ;;  %1676 = vmatpush1.bf16.msra.mxu0 %v4813_v13  ;;  %v5150_v13 = vld [vmem:[#allocation6 + $0x250] ss:$24 sps:$4 sm:$0xff]  }
  0xe2   : > { %1587 = vmatprep.subr.bf16.mxu1 %v5130_v19  ;;  %1677 = vmatprep.subr.bf16.mxu0 %v4817_v14  ;;  %v5154_v14 = vld [vmem:[#allocation6 + $0x284] ss:$24 sps:$4 sm:$0xff]  }
  0xe5   : > { %1588 = vmatpush1.bf16.msra.mxu1 %v5134_v30  ;;  %1678 = vmatpush1.bf16.msra.mxu0 %v4823_v16  ;;  %v5158_v16 = vld [vmem:[#allocation6 + $0x280] ss:$24 sps:$4 sm:$0xff]  }
  0xe6   : > { %1589 = vmatprep.subr.bf16.mxu1 %v5138_v3  ;;  %1679 = vmatprep.subr.bf16.mxu0 %v4830_v18  ;;  %v5162_v18 = vld [vmem:[#allocation6 + $0x2b4] ss:$24 sps:$4 sm:$0xff]  }
  0xe9   : > { %1590 = vmatpush1.bf16.msra.mxu1 %v5142_v11  ;;  %1680 = vmatpush1.bf16.msra.mxu0 %v4837_v20  ;;  %v5166_v20 = vld [vmem:[#allocation6 + $0x2b0] ss:$24 sps:$4 sm:$0xff]  }
  0xea   : > { %1591 = vmatprep.subr.bf16.mxu1 %v5146_v12  ;;  %1681 = vmatprep.subr.bf16.mxu0 %v4839_v21  ;;  %v5170_v21 = vld [vmem:[#allocation6 + $0x2e4] ss:$24 sps:$4 sm:$0xff]  }
  0xed   : > { %1592 = vmatpush1.bf16.msra.mxu1 %v5150_v13  ;;  %1682 = vmatpush1.bf16.msra.mxu0 %v4859_v26  ;;  %v5174_v26 = vld [vmem:[#allocation6 + $0x2e0] ss:$24 sps:$4 sm:$0xff]  }
  0xee   : > { %1593 = vmatprep.subr.bf16.mxu1 %v5154_v14  ;;  %1683 = vmatprep.subr.bf16.mxu0 %v4862_v27  ;;  %v6798_v27 = vld [vmem:[#allocation22_spill] sm:$0xff] }
  0xf1   : > { %1594 = vmatpush1.bf16.msra.mxu1 %v5158_v16  ;;  %1684 = vmatpush1.bf16.msra.mxu0 %v4870_v28  ;;  %v6799_v28 = vld [vmem:[#allocation27_spill] sm:$0xff] }
  0xf2   : > { %1595 = vmatprep.subr.bf16.mxu1 %v5162_v18  ;;  %1685 = vmatprep.subr.bf16.mxu0 %v4874_v29  ;;  %v6800_v29 = vld [vmem:[#allocation33_spill] sm:$0xff] }
  0xf5   : > { %1596 = vmatpush1.bf16.msra.mxu1 %v5166_v20  ;;  %1686 = vmatpush1.bf16.msra.mxu0 %v4881_v31  ;;  %v6801_v31 = vld [vmem:[#allocation35_spill] sm:$0xff] }
  0xf6   : > { %1597 = vmatprep.subr.bf16.mxu1 %v5170_v21  ;;  %1687 = vmatprep.subr.bf16.mxu0 %v4884_v32  ;;  %v6802_v32 = vld [vmem:[#allocation37_spill] sm:$0xff] }
  0xf9   : > { %1598 = vmatpush1.bf16.msra.mxu1 %v5174_v26  ;;  %1688 = vmatpush1.bf16.msra.mxu0 %v4891_v33  ;;  %v6803_v33 = vld [vmem:[#allocation39_spill] sm:$0xff] }
  0xfa   : > { %1714 = vmatprep.subr.bf16.mxu1 %v4856_v25  ;;  %1689 = vmatprep.subr.bf16.mxu0 %v4895_v34  ;;  %v6797_v25 = vld [vmem:[#allocation20_spill] sm:$0xff]  ;;  %v6804_v34 = vld [vmem:[#allocation43_spill] sm:$0xff] }
  0xfc   : > { %1600 = vmatmul.mubr.bf16.vlgmr.msra.gmra.mrb[20].mxu1 %v5018_v6 }
  0xfd   : > { %1715 = vmatpush1.bf16.msra.mxu1 %v4897_v35  ;;  %1690 = vmatpush1.bf16.msra.mxu0 %v4900_v36  ;;  %v459_v35 = vlaneseq }
  0xfe   : > { %1716 = vmatprep.subr.bf16.mxu1 %v4902_v37  ;;  %1691 = vmatprep.subr.bf16.mxu0 %v4905_v38 }
  0xff   : > { %v5232_v36 = vshrl.u32 %v459_v35, 7 }
 0x101   : > { %1717 = vmatpush1.bf16.msra.mxu1 %v4909_v39  ;;  %1692 = vmatpush1.bf16.msra.mxu0 %v4911_v40  ;;  %v473_v37 = vsub.s32 3, %v5232_v36  ;;  %v6581_v38 = vsub.s32 1, %v5232_v36  ;;  %v5239_v39 = vld [vmem:[%s6525_s4] sm:$0x3f]  ;;  %v469_v40 = vsub.s32 2, %v5232_v36 }
 0x102   : > { %1718 = vmatprep.subr.bf16.mxu1 %v4921_v42  ;;  %1693 = vmatprep.subr.bf16.mxu0 %v4923_v43  ;;  %v6582_v42 = vsub.s32 0, %v5232_v36 }
 0x103   : > { %v5244_v43 = vrot.slane %v5239_v39, %v473_v37 }
 0x105   : > { %1719 = vmatpush1.bf16.msra.mxu1 %v4933_v45  ;;  %1694 = vmatpush1.bf16.msra.mxu0 %v4935_v46  ;;  %v5252_v45 = vrot.slane %v5239_v39, %v469_v40  ;;  %v5257_v46 = vrot.slane %v5239_v39, %v6582_v42 }
 0x106   : > { %1720 = vmatprep.subr.bf16.mxu1 %v4939_v47  ;;  %1695 = vmatprep.subr.bf16.mxu0 %v4941_v48 }
 0x109   : > { %1721 = vmatpush1.bf16.msra.mxu1 %v4947_v49  ;;  %1696 = vmatpush1.bf16.msra.mxu0 %v4949_v50 }
 0x10a   : > { %1722 = vmatprep.subr.bf16.mxu1 %v4953_v51  ;;  %1697 = vmatprep.subr.bf16.mxu0 %v4955_v52 }
 0x10d   : > { %1723 = vmatpush1.bf16.msra.mxu1 %v4960_v53  ;;  %1698 = vmatpush1.bf16.msra.mxu0 %v4962_v54 }
 0x10e   : > { %1724 = vmatprep.subr.bf16.mxu1 %v4966_v55  ;;  %1699 = vmatprep.subr.bf16.mxu0 %v4968_v56 }
 0x111   : > { %1725 = vmatpush1.bf16.msra.mxu1 %v4974_v57  ;;  %1700 = vmatpush1.bf16.msra.mxu0 %v4976_v58 }
 0x112   : > { %1726 = vmatprep.subr.bf16.mxu1 %v4980_v59  ;;  %1701 = vmatprep.subr.bf16.mxu0 %v4982_v60 }
 0x115   : > { %1727 = vmatpush1.bf16.msra.mxu1 %v4987_v61  ;;  %1702 = vmatpush1.bf16.msra.mxu0 %v4989_v62 }
 0x116   : > { %1728 = vmatprep.subr.bf16.mxu1 %v4993_v63  ;;  %1703 = vmatprep.subr.bf16.mxu0 %v4995_v1 }
 0x119   : > { %1729 = vmatpush1.bf16.msra.mxu1 %v4997_v2  ;;  %1704 = vmatpush1.bf16.msra.mxu0 %v5003_v0 }
 0x11a   : > { %1730 = vmatprep.subr.bf16.mxu1 %v5011_v4  ;;  %1755 = vmatprep.subr.bf16.mxu0 %v5013_v5 }
 0x11d   : > { %1731 = vmatpush1.bf16.msra.mxu1 %v6797_v25 }
 0x11e   : > { %1732 = vmatprep.subr.bf16.mxu1 %v6798_v27 }
 0x121   : > { %1733 = vmatpush1.bf16.msra.mxu1 %v5033_v17 }
 0x122   : > { %1734 = vmatprep.subr.bf16.mxu1 %v5039_v22 }
 0x125   : > { %1735 = vmatpush1.bf16.msra.mxu1 %v6799_v28 }
 0x126   : > { %1736 = vmatprep.subr.bf16.mxu1 %v5050_v41 }
 0x129   : > { %1737 = vmatpush1.bf16.msra.mxu1 %v5058_v8 }
 0x12a   : > { %1738 = vmatprep.subr.bf16.mxu1 %v6800_v29 }
 0x12d   : > { %1739 = vmatpush1.bf16.msra.mxu1 %v6801_v31 }
 0x12e   : > { %1740 = vmatprep.subr.bf16.mxu1 %v6802_v32 }
 0x131   : > { %1741 = vmatpush1.bf16.msra.mxu1 %v6803_v33 }
 0x132   : > { %1742 = vmatprep.subr.bf16.mxu1 %v5090_v15 }
 0x135   : > { %1743 = vmatpush1.bf16.msra.mxu1 %v6804_v34 }
 0x136   : > { %1744 = vmatprep.subr.bf16.mxu1 %v5102_v23 }
 0x139   : > { %1745 = vmatpush1.bf16.msra.mxu1 %v5108_v24 }
 0x13a   : > { %1850 = vmatprep.subr.bf16.mxu1 %v4801_v10  ;;  %v5249_v10 = vrot.slane %v5239_v39, %v6581_v38 }
 0x14f   : > { %v5259_v47 = vpop.f32.mrb[0].mxu1  ;;  %v5261_v49 = vpop.f32.mrb[0].mxu0 }
 0x150   : > { %v691_v51 = vpop.f32.mrb[1].mxu1  ;;  %v618_v53 = vpop.f32.mrb[1].mxu0 }
 0x151   : > { %v5264_v55 = vadd.f32 %v691_v51, %v5244_v43  ;;  %v693_v6 = vpop.f32.mrb[2].mxu1  ;;  %v5267_v35 = vadd.f32 %v618_v53, %v5249_v10  ;;  %v620_v37 = vpop.f32.mrb[2].mxu0 }
 0x152   : > { %v5270_v40 = vadd.f32 %v693_v6, %v5252_v45  ;;  %v695_v38 = vpop.f32.mrb[3].mxu1  ;;  %v5273_v42 = vadd.f32 %v620_v37, %v5257_v46  ;;  %v622_v24 = vpop.f32.mrb[3].mxu0 }
 0x153   : > { %6805 = vst [vmem:[#allocation20_spill] sm:$0xff] %v5264_v55  ;;  %6806 = vst [vmem:[#allocation22_spill] sm:$0xff] %v5267_v35  ;;  %v5276_v23 = vadd.f32 %v695_v38, %v5244_v43  ;;  %v5279_v34 = vadd.f32 %v622_v24, %v5249_v10 }
 0x154   : > { %6807 = vst [vmem:[#allocation50_spill] sm:$0xff] %v5270_v40  ;;  %6808 = vst [vmem:[#allocation51_spill] sm:$0xff] %v5273_v42 }
 0x155   : > { %6809 = vst [vmem:[#allocation52_spill] sm:$0xff] %v5276_v23  ;;  %6810 = vst [vmem:[#allocation53_spill] sm:$0xff] %v5279_v34 }
 0x157   : > { %v626_v51 = vpop.f32.mrb[4].mxu0  ;;  %v699_v55 = vpop.f32.mrb[4].mxu1 }
 0x158   : > { %v5282_v53 = vadd.f32 %v626_v51, %v5257_v46  ;;  %v628_v35 = vpop.f32.mrb[5].mxu0  ;;  %v5285_v6 = vadd.f32 %v699_v55, %v5252_v45  ;;  %v701_v40 = vpop.f32.mrb[5].mxu1 }
 0x159   : > { %v5288_v37 = vadd.f32 %v628_v35, %v5249_v10  ;;  %v630_v42 = vpop.f32.mrb[6].mxu0  ;;  %v5291_v38 = vadd.f32 %v701_v40, %v5244_v43  ;;  %v703_v23 = vpop.f32.mrb[6].mxu1 }
 0x15a   : > { %6811 = vst [vmem:[#allocation54_spill] sm:$0xff] %v5282_v53  ;;  %6812 = vst [vmem:[#allocation55_spill] sm:$0xff] %v5285_v6  ;;  %v5294_v24 = vadd.f32 %v630_v42, %v5257_v46  ;;  %v632_v34 = vpop.f32.mrb[7].mxu0  ;;  %v5297_v51 = vadd.f32 %v703_v23, %v5252_v45  ;;  %v705_v53 = vpop.f32.mrb[7].mxu1 }
 0x15b   : > { %6813 = vst [vmem:[#allocation56_spill] sm:$0xff] %v5288_v37  ;;  %6814 = vst [vmem:[#allocation57_spill] sm:$0xff] %v5291_v38  ;;  %v5300_v55 = vadd.f32 %v632_v34, %v5249_v10  ;;  %v5303_v6 = vadd.f32 %v705_v53, %v5244_v43 }
 0x15c   : > { %6815 = vst [vmem:[#allocation58_spill] sm:$0xff] %v5294_v24  ;;  %6816 = vst [vmem:[#allocation59_spill] sm:$0xff] %v5297_v51 }
 0x15d   : > { %6817 = vst [vmem:[#allocation60_spill] sm:$0xff] %v5300_v55  ;;  %6818 = vst [vmem:[#allocation61_spill] sm:$0xff] %v5303_v6 }
 0x15f   : > { %v636_v35 = vpop.f32.mrb[8].mxu0  ;;  %v709_v37 = vpop.f32.mrb[8].mxu1 }
 0x160   : > { %v5306_v40 = vadd.f32 %v636_v35, %v5257_v46  ;;  %v638_v38 = vpop.f32.mrb[9].mxu0  ;;  %v5309_v42 = vadd.f32 %v709_v37, %v5252_v45  ;;  %v711_v24 = vpop.f32.mrb[9].mxu1 }
 0x161   : > { %v5312_v23 = vadd.f32 %v638_v38, %v5249_v10  ;;  %v640_v51 = vpop.f32.mrb[10].mxu0  ;;  %v5315_v34 = vadd.f32 %v711_v24, %v5244_v43  ;;  %v713_v55 = vpop.f32.mrb[10].mxu1 }
 0x162   : > { %6819 = vst [vmem:[#allocation62_spill] sm:$0xff] %v5306_v40  ;;  %6820 = vst [vmem:[#allocation63_spill] sm:$0xff] %v5309_v42  ;;  %v5318_v53 = vadd.f32 %v640_v51, %v5257_v46  ;;  %v642_v6 = vpop.f32.mrb[11].mxu0  ;;  %v5321_v35 = vadd.f32 %v713_v55, %v5252_v45  ;;  %v715_v40 = vpop.f32.mrb[11].mxu1 }
 0x163   : > { %6821 = vst [vmem:[#allocation64_spill] sm:$0xff] %v5312_v23  ;;  %6822 = vst [vmem:[#allocation65_spill] sm:$0xff] %v5315_v34  ;;  %v5324_v37 = vadd.f32 %v642_v6, %v5249_v10  ;;  %v5327_v42 = vadd.f32 %v715_v40, %v5244_v43  ;;  %v481_v6 = vsub.s32 5, %v5232_v36 }
 0x164   : > { %6823 = vst [vmem:[#allocation66_spill] sm:$0xff] %v5318_v53  ;;  %6824 = vst [vmem:[#allocation67_spill] sm:$0xff] %v5321_v35 }
 0x165   : > { %6825 = vst [vmem:[#allocation68_spill] sm:$0xff] %v5324_v37  ;;  %6826 = vst [vmem:[#allocation69_spill] sm:$0xff] %v5327_v42 }
 0x167   : > { %v646_v38 = vpop.f32.mrb[12].mxu0  ;;  %v719_v23 = vpop.f32.mrb[12].mxu1 }
 0x168   : > { %v5330_v24 = vadd.f32 %v646_v38, %v5257_v46  ;;  %v648_v34 = vpop.f32.mrb[13].mxu0  ;;  %v5333_v51 = vadd.f32 %v719_v23, %v5252_v45  ;;  %v721_v53 = vpop.f32.mrb[13].mxu1 }
 0x169   : > { %v5336_v55 = vadd.f32 %v648_v34, %v5249_v10  ;;  %v650_v35 = vpop.f32.mrb[14].mxu0  ;;  %v5340_v37 = vadd.f32 %v721_v53, %v5244_v43  ;;  %v723_v40 = vpop.f32.mrb[14].mxu1  ;;  %v5350_v34 = vrot.slane %v5239_v39, %v481_v6 }
 0x16a   : > { %6827 = vst [vmem:[#allocation70_spill] sm:$0xff] %v5330_v24  ;;  %6828 = vst [vmem:[#allocation71_spill] sm:$0xff] %v5333_v51  ;;  %v5343_v42 = vadd.f32 %v650_v35, %v5257_v46  ;;  %v652_v38 = vpop.f32.mrb[15].mxu0  ;;  %v477_v24 = vsub.s32 4, %v5232_v36  ;;  %v5347_v23 = vadd.f32 %v723_v40, %v5252_v45  ;;  %v725_v51 = vpop.f32.mrb[15].mxu1 }
 0x16b   : > { %6829 = vst [vmem:[#allocation72_spill] sm:$0xff] %v5336_v55  ;;  %6830 = vst [vmem:[#allocation73_spill] sm:$0xff] %v5340_v37 }
 0x16c   : > { %6831 = vst [vmem:[#allocation74_spill] sm:$0xff] %v5343_v42  ;;  %6832 = vst [vmem:[#allocation75_spill] sm:$0xff] %v5347_v23  ;;  %v5353_v55 = vrot.slane %v5239_v39, %v477_v24 }
 0x16f   : > { %v5355_v15 = vpop.f32.mrb[16].mxu0 }
 0x170   : > { %v764_v53 = vpop.f32.mrb[17].mxu0 }
 0x171   : > { %v5358_v37 = vadd.f32 %v764_v53, %v5350_v34  ;;  %v766_v35 = vpop.f32.mrb[18].mxu0 }
 0x172   : > { %v5361_v42 = vadd.f32 %v766_v35, %v5353_v55  ;;  %v768_v33 = vpop.f32.mrb[19].mxu0 }
 0x173   : > { %6833 = vst [vmem:[#allocation76_spill] sm:$0xff] %v5358_v37  ;;  %v5364_v40 = vadd.f32 %v768_v33, %v5350_v34 }
 0x174   : > { %6834 = vst [vmem:[#allocation77_spill] sm:$0xff] %v5361_v42 }
 0x175   : > { %6835 = vst [vmem:[#allocation78_spill] sm:$0xff] %v5364_v40 }
 0x177   : > { %v772_v23 = vpop.f32.mrb[20].mxu0 }
 0x178   : > { %v5367_v6 = vadd.f32 %v772_v23, %v5353_v55  ;;  %v774_v39 = vpop.f32.mrb[21].mxu0 }
 0x179   : > { %v5370_v24 = vadd.f32 %v774_v39, %v5350_v34  ;;  %v776_v32 = vpop.f32.mrb[22].mxu0 }
 0x17a   : > { %6836 = vst [vmem:[#allocation79_spill] sm:$0xff] %v5367_v6  ;;  %v5373_v53 = vadd.f32 %v776_v32, %v5353_v55  ;;  %v778_v37 = vpop.f32.mrb[23].mxu0 }
 0x17b   : > { %6837 = vst [vmem:[#allocation80_spill] sm:$0xff] %v5370_v24  ;;  %v5376_v35 = vadd.f32 %v778_v37, %v5350_v34 }
 0x17c   : > { %6838 = vst [vmem:[#allocation81_spill] sm:$0xff] %v5373_v53 }
 0x17d   : > { %6839 = vst [vmem:[#allocation82_spill] sm:$0xff] %v5376_v35 }
 0x17f   : > { %v782_v42 = vpop.f32.mrb[24].mxu0 }
 0x180   : > { %v5379_v33 = vadd.f32 %v782_v42, %v5353_v55  ;;  %v784_v40 = vpop.f32.mrb[25].mxu0 }
 0x181   : > { %v5382_v23 = vadd.f32 %v784_v40, %v5350_v34  ;;  %v786_v6 = vpop.f32.mrb[26].mxu0 }
 0x182   : > { %6840 = vst [vmem:[#allocation83_spill] sm:$0xff] %v5379_v33  ;;  %v5385_v39 = vadd.f32 %v786_v6, %v5353_v55  ;;  %v788_v24 = vpop.f32.mrb[27].mxu0  ;;  %v617_v6 = vadd.f32 %v5261_v49, %v5257_v46 }
 0x183   : > { %6841 = vst [vmem:[#allocation84_spill] sm:$0xff] %v5382_v23  ;;  %v5388_v32 = vadd.f32 %v788_v24, %v5350_v34 }
 0x184   : > { %6842 = vst [vmem:[#allocation85_spill] sm:$0xff] %v5385_v39  ;;  %v653_v39 = vadd.f32 %v652_v38, %v5249_v10 }
 0x185   : > { %6843 = vst [vmem:[#allocation86_spill] sm:$0xff] %v5388_v32 }
 0x187   : > { %v792_v53 = vpop.f32.mrb[28].mxu0 }
 0x188   : > { %v5391_v37 = vadd.f32 %v792_v53, %v5353_v55  ;;  %v794_v35 = vpop.f32.mrb[29].mxu0 }
 0x189   : > { %v5394_v42 = vadd.f32 %v794_v35, %v5350_v34  ;;  %v796_v33 = vpop.f32.mrb[30].mxu0  ;;  %v690_v35 = vadd.f32 %v5259_v47, %v5252_v45 }
 0x18a   : > { %6844 = vst [vmem:[#allocation87_spill] sm:$0xff] %v5391_v37  ;;  %v5397_v40 = vadd.f32 %v796_v33, %v5353_v55  ;;  %v798_v23 = vpop.f32.mrb[31].mxu0 }
 0x18b   : > { %6845 = vst [vmem:[#allocation88_spill] sm:$0xff] %v5394_v42  ;;  %v726_v42 = vadd.f32 %v725_v51, %v5244_v43 }
 0x18c   : > { %6846 = vst [vmem:[#allocation89_spill] sm:$0xff] %v5397_v40 }
 0x18f   : > { %v1519_v24 = vpop.f32.mrb[16].mxu1 }
 0x190   : > { %v1608_v32 = vadd.f32 %v1519_v24, %v617_v6  ;;  %v1521_v31 = vpop.f32.mrb[17].mxu1 }
 0x191   : > { %v1609_v29 = vadd.f32 %v1521_v31, %v653_v39  ;;  %v1523_v53 = vpop.f32.mrb[18].mxu1 }
 0x192   : > { %v1524_v37 = vpop.f32.mrb[19].mxu1  ;;  %v3563_v22 = vmul.f32 -1.442695, %v1608_v32 }
 0x193   : > { %v3564_v49 = vmul.f32 -1.442695, %v1609_v29  ;;  %v6847_v29 = vsub.s32 0, %v5232_v36 }
 0x194   : > { %3924 = vpow2.f32 %v3563_v22 }
 0x195   : > { %3926 = vpow2.f32 %v3564_v49 }
 0x19e   : > { %v3925_v31 = vpop.eup %3924 }
 0x19f   : > { %v3927_v39 = vpop.eup %3926  ;;  %v1616_v37 = vadd.f32 1.0, %v3925_v31 }
 0x1a0   : > { %v1617_v45 = vadd.f32 1.0, %v3927_v39 }
 0x1af   : > { %v1560_v8 = vpop.f32.mrb[32].mxu0 }
 0x1b0   : > { %v1622_v33 = vadd.f32 %v1560_v8, %v690_v35  ;;  %v1562_v40 = vpop.f32.mrb[33].mxu0  ;;  %v897_v8 = vld [vmem:[%s6526_s5] sm:$0x3] }
 0x1b1   : > { %v1623_v41 = vadd.f32 %v1562_v40, %v726_v42  ;;  %v1564_v28 = vpop.f32.mrb[34].mxu0  ;;  %v5410_v22 = vrot.slane %v897_v8, %v6847_v29 }
 0x1b2   : > { %v1565_v46 = vpop.f32.mrb[35].mxu0  ;;  %v3565_v10 = vmul.f32 -1.442695, %v1622_v33 }
 0x1b3   : > { %v3566_v38 = vmul.f32 -1.442695, %v1623_v41  ;;  %v6848_v41 = vsub.s32 1, %v5232_v36  ;;  %v763_v46 = vadd.f32 %v5355_v15, %v5353_v55  ;;  %v799_v36 = vadd.f32 %v798_v23, %v5350_v34 }
 0x1b4   : > { %3928 = vpow2.f32 %v3565_v10 }
 0x1b5   : > { %3930 = vpow2.f32 %v3566_v38  ;;  %v5414_v47 = vrot.slane %v897_v8, %v6848_v41  ;;  %v6849_v41 = vld [vmem:[#allocation19_spill] sm:$0xff] }
 0x1b6   : > { %3932 = vrcp.f32 %v1616_v37 }
 0x1b7   : > { %3934 = vrcp.f32 %v1617_v45 }
 0x1be   : > { %v3929_v28 = vpop.eup %3928 }
 0x1bf   : > { %v3931_v43 = vpop.eup %3930  ;;  %v1630_v51 = vadd.f32 1.0, %v3929_v28 }
 0x1c0   : > { %v1631_v32 = vadd.f32 1.0, %v3931_v43  ;;  %v3933_v24 = vpop.eup %3932 }
 0x1c1   : > { %v3935_v33 = vpop.eup %3934  ;;  %3936 = vrcp.f32 %v1630_v51  ;;  %v6850_v51 = vld [vmem:[#allocation18_spill] sm:$0xff] }
 0x1c2   : > { %3938 = vrcp.f32 %v1631_v32 }
 0x1cb   : > { %v3937_v37 = vpop.eup %3936 }
 0x1cc   : > { %v3939_v45 = vpop.eup %3938  ;;  %v1655_v8 = vsub.f32 1.0, %v3937_v37 }
 0x1cd   : > { %v1656_v43 = vsub.f32 1.0, %v3939_v45 }
 0x1cf   : > { %v1601_v42 = vpop.f32.mrb[20].mxu1 }
 0x1d0   : > { %v1647_v40 = vadd.f32 %v5410_v22, %v1601_v42  ;;  %v1603_v6 = vpop.f32.mrb[21].mxu1  ;;  %v1659_v42 = vmul.f32 %v3937_v37, %v6849_v41  ;;  %v5456_v37 = vld [vmem:[#allocation6 + $0x94] ss:$24 sps:$4 sm:$0xff]   ;;  %v6862_v41 = vld [vmem:[#allocation38_spill] sm:$0xff] }
 0x1d1   : > { %v1648_v53 = vadd.f32 %v5414_v47, %v1603_v6  ;;  %v1605_v35 = vpop.f32.mrb[22].mxu1 }
 0x1d2   : > { %v1649_v49 = vmul.f32 %v3933_v24, %v1647_v40  ;;  %v1606_v10 = vpop.f32.mrb[23].mxu1  ;;  %v1660_v40 = vmul.f32 %v3939_v45, %v6850_v51  ;;  %v6853_v24 = vld [vmem:[#allocation21_spill] sm:$0xff]  ;;  %v6859_v45 = vld [vmem:[#allocation32_spill] sm:$0xff]  ;;  %v6864_v51 = vld [vmem:[#allocation42_spill] sm:$0xff] }
 0x1d3   : > { %v1650_v38 = vmul.f32 %v3935_v33, %v1648_v53  ;;  %v6854_v53 = vld [vmem:[#allocation23_spill] sm:$0xff]  ;;  %v5437_v35 = vld [vmem:[#allocation6] ss:$24 sps:$4 sm:$0xff]  }
 0x1d4   : > { %v1651_v31 = vadd.f32 %v1649_v49, %v763_v46  ;;  %v5440_v33 = vld [vmem:[#allocation6 + $0x34] ss:$24 sps:$4 sm:$0xff]   ;;  %v6856_v49 = vld [vmem:[#allocation26_spill] sm:$0xff]  ;;  %v5445_v10 = vld [vmem:[#allocation6 + $0x30] ss:$24 sps:$4 sm:$0xff]  }
 0x1d5   : > { %v1652_v39 = vadd.f32 %v1650_v38, %v799_v36  ;;  %v6855_v46 = vld [vmem:[#allocation24_spill] sm:$0xff]  ;;  %v5448_v36 = vld [vmem:[#allocation6 + $0x64] ss:$24 sps:$4 sm:$0xff]  }
 0x1d6   : > { %3940 = vtanh.f32 %v1651_v31  ;;  %v6857_v38 = vld [vmem:[#allocation28_spill] sm:$0xff]  ;;  %v6858_v31 = vld [vmem:[#allocation30_spill] sm:$0xff] }
 0x1d7   : > { %3942 = vtanh.f32 %v1652_v39  ;;  %v5453_v39 = vld [vmem:[#allocation6 + $0x60] ss:$24 sps:$4 sm:$0xff]  }
 0x1e0   : > { %v3941_v28 = vpop.eup %3940 }
 0x1e1   : > { %v3943_v29 = vpop.eup %3942  ;;  %v1657_v15 = vmul.f32 %v3941_v28, %v1655_v8  ;;  %v6860_v8 = vld [vmem:[#allocation34_spill] sm:$0xff]  ;;  %v5461_v28 = vld [vmem:[#allocation6 + $0x90] ss:$24 sps:$4 sm:$0xff]  }
 0x1e2   : > { %v1658_v55 = vmul.f32 %v3943_v29, %v1656_v43  ;;  %v5464_v43 = vld [vmem:[#allocation6 + $0xc4] ss:$24 sps:$4 sm:$0xff]   ;;  %v6861_v29 = vld [vmem:[#allocation36_spill] sm:$0xff] }
 0x1e3   : > { %v5423_v6 = vadd.f32 %v1659_v42, %v1657_v15  ;;  %v5469_v42 = vld [vmem:[#allocation6 + $0xc0] ss:$24 sps:$4 sm:$0xff]   ;;  %v5472_v15 = vld [vmem:[#allocation6 + $0xf4] ss:$24 sps:$4 sm:$0xff]  }
 0x1e4   : > { %v5425_v34 = vadd.f32 %v1660_v40, %v1658_v55  ;;  %v6863_v55 = vld [vmem:[#allocation40_spill] sm:$0xff] }
 0x1e5   : > { %6851 = vst [vmem:[#allocation19_spill] sm:$0xff] %v5423_v6  ;;  %v5431_v32 = vpack.c.bf16 %v5423_v6, %v5423_v6  ;;  %v5477_v40 = vld [vmem:[#allocation6 + $0xf0] ss:$24 sps:$4 sm:$0xff]  }
 0x1e6   : > { %6852 = vst [vmem:[#allocation18_spill] sm:$0xff] %v5425_v34  ;;  %v1672_v23 = vpack.c.bf16 %v5425_v34, %v5425_v34  ;;  %6865 = vst [vmem:[#allocation21_spill] sm:$0xff] %v5477_v40 }
 0x1e8   : > { %1705 = vmatprep.mubr.bf16.mxu0 %v1672_v23  ;;  %1746 = vmatprep.mubr.bf16.mxu1 %v1672_v23 }
 0x1e9   : > { %1706 = vmatmul.mubr.bf16.vlgmr.msra.gmra.mrb[36].mxu0 %v5431_v32  ;;  %1747 = vmatmul.mubr.bf16.vlgmr.msra.gmra.mrb[24].mxu1 %v5431_v32 }
 0x1ea   : > { %1756 = vmatpush1.bf16.msra.mxu0 %v6853_v24  ;;  %1787 = vmatprep.mubr.bf16.mxu0 %v1672_v23  ;;  %v5480_v23 = vld [vmem:[#allocation6 + $0x124] ss:$24 sps:$4 sm:$0xff]   ;;  %v6867_v24 = vld [vmem:[#allocation44_spill] sm:$0xff] }
 0x1eb   : > { %1757 = vmatprep.subr.bf16.mxu0 %v6854_v53  ;;  %1851 = vmatpush1.bf16.msra.mxu1 %v5437_v35  ;;  %6866 = vst [vmem:[#allocation23_spill] sm:$0xff] %v5480_v23  ;;  %v6868_v53 = vld [vmem:[#allocation46_spill] sm:$0xff] }
 0x1ec   : > { %1852 = vmatprep.subr.bf16.mxu1 %v5440_v33 }
 0x1ee   : > { %1758 = vmatpush1.bf16.msra.mxu0 %v6855_v46  ;;  %v5485_v46 = vld [vmem:[#allocation6 + $0x120] ss:$24 sps:$4 sm:$0xff]  }
 0x1ef   : > { %1759 = vmatprep.subr.bf16.mxu0 %v6856_v49  ;;  %1853 = vmatpush1.bf16.msra.mxu1 %v5445_v10  ;;  %6869 = vst [vmem:[#allocation24_spill] sm:$0xff] %v5485_v46  ;;  %v5488_v49 = vld [vmem:[#allocation6 + $0x154] ss:$24 sps:$4 sm:$0xff]  }
 0x1f0   : > { %1854 = vmatprep.subr.bf16.mxu1 %v5448_v36  ;;  %6870 = vst [vmem:[#allocation26_spill] sm:$0xff] %v5488_v49 }
 0x1f2   : > { %1760 = vmatpush1.bf16.msra.mxu0 %v6857_v38  ;;  %v6871_v38 = vld [vmem:[#allocation48_spill] sm:$0xff] }
 0x1f3   : > { %1761 = vmatprep.subr.bf16.mxu0 %v6858_v31  ;;  %1855 = vmatpush1.bf16.msra.mxu1 %v5453_v39  ;;  %v6872_v31 = vld [vmem:[#allocation49_spill] sm:$0xff] }
 0x1f4   : > { %1856 = vmatprep.subr.bf16.mxu1 %v5456_v37 }
 0x1f6   : > { %1762 = vmatpush1.bf16.msra.mxu0 %v6859_v45 }
 0x1f7   : > { %1763 = vmatprep.subr.bf16.mxu0 %v6860_v8  ;;  %1857 = vmatpush1.bf16.msra.mxu1 %v5461_v28 }
 0x1f8   : > { %1858 = vmatprep.subr.bf16.mxu1 %v5464_v43 }
 0x1fa   : > { %1764 = vmatpush1.bf16.msra.mxu0 %v6861_v29 }
 0x1fb   : > { %1765 = vmatprep.subr.bf16.mxu0 %v6862_v41  ;;  %1859 = vmatpush1.bf16.msra.mxu1 %v5469_v42 }
 0x1fc   : > { %1860 = vmatprep.subr.bf16.mxu1 %v5472_v15 }
 0x1fe   : > { %1766 = vmatpush1.bf16.msra.mxu0 %v6863_v55 }
 0x1ff   : > { %1767 = vmatprep.subr.bf16.mxu0 %v6864_v51  ;;  %1861 = vmatpush1.bf16.msra.mxu1 %v5477_v40  ;;  %v5493_v40 = vld [vmem:[#allocation6 + $0x150] ss:$24 sps:$4 sm:$0xff]  }
 0x200   : > { %1862 = vmatprep.subr.bf16.mxu1 %v5480_v23  ;;  %6873 = vst [vmem:[#allocation28_spill] sm:$0xff] %v5493_v40  ;;  %v5496_v23 = vld [vmem:[#allocation6 + $0x184] ss:$24 sps:$4 sm:$0xff]  }
 0x201   : > { %6874 = vst [vmem:[#allocation30_spill] sm:$0xff] %v5496_v23 }
 0x202   : > { %1768 = vmatpush1.bf16.msra.mxu0 %v6867_v24 }
 0x203   : > { %1769 = vmatprep.subr.bf16.mxu0 %v6868_v53  ;;  %1863 = vmatpush1.bf16.msra.mxu1 %v5485_v46  ;;  %v5501_v46 = vld [vmem:[#allocation6 + $0x180] ss:$24 sps:$4 sm:$0xff]  }
 0x204   : > { %1864 = vmatprep.subr.bf16.mxu1 %v5488_v49  ;;  %6875 = vst [vmem:[#allocation32_spill] sm:$0xff] %v5501_v46  ;;  %v5504_v49 = vld [vmem:[#allocation6 + $0x1b4] ss:$24 sps:$4 sm:$0xff]  }
 0x206   : > { %1770 = vmatpush1.bf16.msra.mxu0 %v6871_v38 }
 0x207   : > { %1771 = vmatprep.subr.bf16.mxu0 %v6872_v31  ;;  %1865 = vmatpush1.bf16.msra.mxu1 %v5493_v40  ;;  %v5509_v40 = vld [vmem:[#allocation6 + $0x1b0] ss:$24 sps:$4 sm:$0xff]  }
 0x208   : > { %1866 = vmatprep.subr.bf16.mxu1 %v5496_v23  ;;  %v5512_v23 = vld [vmem:[#allocation6 + $0x1e4] ss:$24 sps:$4 sm:$0xff]  }
 0x209   : > { %6876 = vst [vmem:[#allocation34_spill] sm:$0xff] %v5512_v23 }
 0x20a   : > { %1772 = vmatpush1.bf16.msra.mxu0 %v5118_v9 }
 0x20b   : > { %1773 = vmatprep.subr.bf16.mxu0 %v5121_v7  ;;  %1867 = vmatpush1.bf16.msra.mxu1 %v5501_v46  ;;  %v5517_v46 = vld [vmem:[#allocation6 + $0x1e0] ss:$24 sps:$4 sm:$0xff]  }
 0x20c   : > { %1868 = vmatprep.subr.bf16.mxu1 %v5504_v49  ;;  %6877 = vst [vmem:[#allocation36_spill] sm:$0xff] %v5517_v46 }
 0x20e   : > { %1774 = vmatpush1.bf16.msra.mxu0 %v5126_v44 }
 0x20f   : > { %1775 = vmatprep.subr.bf16.mxu0 %v5130_v19  ;;  %1869 = vmatpush1.bf16.msra.mxu1 %v5509_v40 }
 0x210   : > { %1870 = vmatprep.subr.bf16.mxu1 %v5512_v23 }
 0x212   : > { %1776 = vmatpush1.bf16.msra.mxu0 %v5134_v30 }
 0x213   : > { %1777 = vmatprep.subr.bf16.mxu0 %v5138_v3  ;;  %1871 = vmatpush1.bf16.msra.mxu1 %v5517_v46 }
 0x214   : > { %1872 = vmatprep.subr.bf16.mxu1 %v4941_v48  ;;  %v5538_v48 = vld [vmem:[#allocation6 + $0xc] ss:$24 sps:$4 sm:$0xff]  }
 0x215   : > { %6878 = vst [vmem:[#allocation38_spill] sm:$0xff] %v5538_v48 }
 0x216   : > { %1778 = vmatpush1.bf16.msra.mxu0 %v5142_v11 }
 0x217   : > { %1779 = vmatprep.subr.bf16.mxu0 %v5146_v12  ;;  %1873 = vmatpush1.bf16.msra.mxu1 %v4949_v50  ;;  %v5544_v50 = vld [vmem:[#allocation6 + $0x8] ss:$24 sps:$4 sm:$0xff]  }
 0x218   : > { %1874 = vmatprep.subr.bf16.mxu1 %v4955_v52  ;;  %6879 = vst [vmem:[#allocation40_spill] sm:$0xff] %v5544_v50  ;;  %v5547_v52 = vld [vmem:[#allocation6 + $0x3c] ss:$24 sps:$4 sm:$0xff]  }
 0x219   : > { %6880 = vst [vmem:[#allocation42_spill] sm:$0xff] %v5547_v52 }
 0x21a   : > { %1780 = vmatpush1.bf16.msra.mxu0 %v5150_v13 }
 0x21b   : > { %1781 = vmatprep.subr.bf16.mxu0 %v5154_v14  ;;  %1875 = vmatpush1.bf16.msra.mxu1 %v4962_v54  ;;  %v5550_v54 = vld [vmem:[#allocation6 + $0x38] ss:$24 sps:$4 sm:$0xff]  }
 0x21c   : > { %1876 = vmatprep.subr.bf16.mxu1 %v4968_v56  ;;  %6881 = vst [vmem:[#allocation44_spill] sm:$0xff] %v5550_v54  ;;  %v5553_v56 = vld [vmem:[#allocation6 + $0x6c] ss:$24 sps:$4 sm:$0xff]  }
 0x21d   : > { %6882 = vst [vmem:[#allocation46_spill] sm:$0xff] %v5553_v56 }
 0x21e   : > { %1782 = vmatpush1.bf16.msra.mxu0 %v5158_v16 }
 0x21f   : > { %1783 = vmatprep.subr.bf16.mxu0 %v5162_v18  ;;  %1877 = vmatpush1.bf16.msra.mxu1 %v4976_v58  ;;  %v5556_v58 = vld [vmem:[#allocation6 + $0x68] ss:$24 sps:$4 sm:$0xff]  }
 0x220   : > { %1878 = vmatprep.subr.bf16.mxu1 %v4982_v60  ;;  %6883 = vst [vmem:[#allocation48_spill] sm:$0xff] %v5556_v58  ;;  %v5559_v60 = vld [vmem:[#allocation6 + $0x9c] ss:$24 sps:$4 sm:$0xff]  }
 0x221   : > { %6884 = vst [vmem:[#allocation49_spill] sm:$0xff] %v5559_v60 }
 0x222   : > { %1784 = vmatpush1.bf16.msra.mxu0 %v5166_v20 }
 0x223   : > { %1785 = vmatprep.subr.bf16.mxu0 %v5170_v21  ;;  %1879 = vmatpush1.bf16.msra.mxu1 %v4989_v62  ;;  %v5562_v62 = vld [vmem:[#allocation6 + $0x98] ss:$24 sps:$4 sm:$0xff]  }
 0x224   : > { %1880 = vmatprep.subr.bf16.mxu1 %v4995_v1  ;;  %6885 = vst [vmem:[#allocation90_spill] sm:$0xff] %v5562_v62  ;;  %v5565_v1 = vld [vmem:[#allocation6 + $0xcc] ss:$24 sps:$4 sm:$0xff]  }
 0x225   : > { %6886 = vst [vmem:[#allocation91_spill] sm:$0xff] %v5565_v1 }
 0x226   : > { %1786 = vmatpush1.bf16.msra.mxu0 %v5174_v26 }
 0x227   : > { %1891 = vmatprep.subr.bf16.mxu0 %v5538_v48  ;;  %1881 = vmatpush1.bf16.msra.mxu1 %v5003_v0  ;;  %v5568_v0 = vld [vmem:[#allocation6 + $0xc8] ss:$24 sps:$4 sm:$0xff]  }
 0x228   : > { %1932 = vmatprep.subr.bf16.mxu1 %v5013_v5  ;;  %6887 = vst [vmem:[#allocation92_spill] sm:$0xff] %v5568_v0  ;;  %v5571_v5 = vld [vmem:[#allocation6 + $0xfc] ss:$24 sps:$4 sm:$0xff]  }
 0x229   : > { %1788 = vmatmul.mubr.bf16.vlgmr.msra.gmra.mrb[40].mxu0 %v5431_v32  ;;  %6888 = vst [vmem:[#allocation93_spill] sm:$0xff] %v5571_v5  ;;  %v6889_v32 = vld [vmem:[#allocation25_spill] sm:$0xff] }
 0x22a   : > { %1892 = vmatpush1.bf16.msra.mxu0 %v5544_v50 }
 0x22b   : > { %1893 = vmatprep.subr.bf16.mxu0 %v5547_v52 }
 0x22e   : > { %1894 = vmatpush1.bf16.msra.mxu0 %v5550_v54 }
 0x22f   : > { %1895 = vmatprep.subr.bf16.mxu0 %v5553_v56 }
 0x232   : > { %1896 = vmatpush1.bf16.msra.mxu0 %v5556_v58 }
 0x233   : > { %1897 = vmatprep.subr.bf16.mxu0 %v5559_v60  ;;  %v6905_v60 = vld [vmem:[#allocation73_spill] sm:$0xff] }
 0x236   : > { %1898 = vmatpush1.bf16.msra.mxu0 %v5562_v62  ;;  %v6904_v62 = vld [vmem:[#allocation72_spill] sm:$0xff] }
 0x237   : > { %1899 = vmatprep.subr.bf16.mxu0 %v5565_v1 }
 0x23a   : > { %1900 = vmatpush1.bf16.msra.mxu0 %v5568_v0  ;;  %v6903_v0 = vld [vmem:[#allocation50_spill] sm:$0xff] }
 0x23b   : > { %1901 = vmatprep.subr.bf16.mxu0 %v5571_v5  ;;  %v6890_v5 = vld [vmem:[#allocation27_spill] sm:$0xff] }
 0x23e   : > { %1902 = vmatpush1.bf16.msra.mxu0 %v4974_v57  ;;  %v6891_v57 = vld [vmem:[#allocation29_spill] sm:$0xff] }
 0x23f   : > { %1903 = vmatprep.subr.bf16.mxu0 %v4980_v59  ;;  %v6892_v59 = vld [vmem:[#allocation31_spill] sm:$0xff] }
 0x242   : > { %1904 = vmatpush1.bf16.msra.mxu0 %v4987_v61  ;;  %v6893_v61 = vld [vmem:[#allocation33_spill] sm:$0xff] }
 0x243   : > { %1905 = vmatprep.subr.bf16.mxu0 %v4993_v63  ;;  %v6894_v63 = vld [vmem:[#allocation35_spill] sm:$0xff] }
 0x246   : > { %1906 = vmatpush1.bf16.msra.mxu0 %v4997_v2  ;;  %v6895_v2 = vld [vmem:[#allocation37_spill] sm:$0xff] }
 0x247   : > { %1907 = vmatprep.subr.bf16.mxu0 %v5011_v4  ;;  %v6896_v4 = vld [vmem:[#allocation39_spill] sm:$0xff] }
 0x24a   : > { %1908 = vmatpush1.bf16.msra.mxu0 %v6797_v25  ;;  %v6897_v25 = vld [vmem:[#allocation41_spill] sm:$0xff] }
 0x24b   : > { %1909 = vmatprep.subr.bf16.mxu0 %v6798_v27  ;;  %v6898_v27 = vld [vmem:[#allocation43_spill] sm:$0xff] }
 0x24e   : > { %1910 = vmatpush1.bf16.msra.mxu0 %v5033_v17  ;;  %v6899_v17 = vld [vmem:[#allocation45_spill] sm:$0xff] }
 0x24f   : > { %1911 = vmatprep.subr.bf16.mxu0 %v6889_v32  ;;  %v6900_v32 = vld [vmem:[#allocation47_spill] sm:$0xff] }
 0x252   : > { %1912 = vmatpush1.bf16.msra.mxu0 %v6890_v5  ;;  %v5595_v5 = vld [vmem:[#allocation6 + $0x4] ss:$24 sps:$4 sm:$0xff]  }
 0x253   : > { %1913 = vmatprep.subr.bf16.mxu0 %v6891_v57  ;;  %6901 = vst [vmem:[#allocation25_spill] sm:$0xff] %v5595_v5 }
 0x256   : > { %1914 = vmatpush1.bf16.msra.mxu0 %v6892_v59 }
 0x257   : > { %1915 = vmatprep.subr.bf16.mxu0 %v6893_v61  ;;  %v6902_v61 = vld [vmem:[#allocation51_spill] sm:$0xff] }
 0x25a   : > { %1916 = vmatpush1.bf16.msra.mxu0 %v6894_v63 }
 0x25b   : > { %1917 = vmatprep.subr.bf16.mxu0 %v6895_v2 }
 0x25e   : > { %1918 = vmatpush1.bf16.msra.mxu0 %v6896_v4 }
 0x25f   : > { %1919 = vmatprep.subr.bf16.mxu0 %v6897_v25 }
 0x262   : > { %1920 = vmatpush1.bf16.msra.mxu0 %v6898_v27 }
 0x263   : > { %1921 = vmatprep.subr.bf16.mxu0 %v6899_v17 }
 0x266   : > { %1922 = vmatpush1.bf16.msra.mxu0 %v6900_v32 }
 0x267   : > { %2027 = vmatprep.subr.bf16.mxu0 %v5595_v5 }
 0x2bc   : > { %v1707_v57 = vpop.f32.mrb[36].mxu0  ;;  %v1748_v59 = vpop.f32.mrb[24].mxu1 }
 0x2bd   : > { %v1796_v63 = vadd.f32 %v1707_v57, %v6902_v61  ;;  %v1810_v2 = vadd.f32 %v1748_v59, %v6903_v0  ;;  %v1709_v1 = vpop.f32.mrb[37].mxu0  ;;  %v1750_v4 = vpop.f32.mrb[25].mxu1 }
 0x2be   : > { %v1797_v25 = vadd.f32 %v1709_v1, %v6904_v62  ;;  %v1811_v27 = vadd.f32 %v1750_v4, %v6905_v60  ;;  %v1711_v58 = vpop.f32.mrb[38].mxu0  ;;  %v1752_v17 = vpop.f32.mrb[26].mxu1 }
 0x2bf   : > { %v1712_v56 = vpop.f32.mrb[39].mxu0  ;;  %v1753_v32 = vpop.f32.mrb[27].mxu1  ;;  %v3567_v54 = vmul.f32 -1.442695, %v1796_v63  ;;  %v3569_v5 = vmul.f32 -1.442695, %v1810_v2 }
 0x2c0   : > { %v3568_v52 = vmul.f32 -1.442695, %v1797_v25  ;;  %v3570_v50 = vmul.f32 -1.442695, %v1811_v27  ;;  %v6906_v25 = vld [vmem:[#allocation77_spill] sm:$0xff]  ;;  %v6907_v17 = vld [vmem:[#allocation88_spill] sm:$0xff] }
 0x2c1   : > { %3944 = vpow2.f32 %v3567_v54 }
 0x2c2   : > { %3946 = vpow2.f32 %v3568_v52 }
 0x2c3   : > { %3948 = vpow2.f32 %v3569_v5 }
 0x2c4   : > { %3950 = vpow2.f32 %v3570_v50 }
 0x2cb   : > { %v3945_v48 = vpop.eup %3944 }
 0x2cc   : > { %v3947_v57 = vpop.eup %3946  ;;  %v1804_v0 = vadd.f32 1.0, %v3945_v48 }
 0x2cd   : > { %v1805_v59 = vadd.f32 1.0, %v3947_v57  ;;  %v3949_v62 = vpop.eup %3948 }
 0x2ce   : > { %3952 = vrcp.f32 %v1804_v0  ;;  %v3951_v60 = vpop.eup %3950  ;;  %v1818_v58 = vadd.f32 1.0, %v3949_v62 }
 0x2cf   : > { %3954 = vrcp.f32 %v1805_v59  ;;  %v1819_v1 = vadd.f32 1.0, %v3951_v60 }
 0x2d0   : > { %3956 = vrcp.f32 %v1818_v58 }
 0x2d1   : > { %3958 = vrcp.f32 %v1819_v1 }
 0x2d8   : > { %v3953_v54 = vpop.eup %3952 }
 0x2d9   : > { %v3955_v4 = vpop.eup %3954 }
 0x2da   : > { %v3957_v57 = vpop.eup %3956 }
 0x2db   : > { %v3959_v0 = vpop.eup %3958  ;;  %v1832_v59 = vsub.f32 1.0, %v3957_v57 }
 0x2dc   : > { %v1833_v60 = vsub.f32 1.0, %v3959_v0 }
 0x2fc   : > { %v1789_v56 = vpop.f32.mrb[40].mxu0 }
 0x2fd   : > { %v1824_v61 = vadd.f32 %v1789_v56, %v5410_v22  ;;  %v1791_v63 = vpop.f32.mrb[41].mxu0 }
 0x2fe   : > { %v1825_v52 = vadd.f32 %v1791_v63, %v5414_v47  ;;  %v1793_v2 = vpop.f32.mrb[42].mxu0  ;;  %v1836_v63 = vmul.f32 %v3957_v57, %v5423_v6  ;;  %v6936_v57 = vld [vmem:[#allocation91_spill] sm:$0xff] }
 0x2ff   : > { %v1826_v5 = vmul.f32 %v3953_v54, %v1824_v61  ;;  %v1794_v50 = vpop.f32.mrb[43].mxu0  ;;  %v1837_v61 = vmul.f32 %v3959_v0, %v5425_v34  ;;  %v6937_v0 = vld [vmem:[#allocation92_spill] sm:$0xff]  ;;  %v5756_v34 = vld [vmem:[#allocation6 + $0x1ec] ss:$24 sps:$4 sm:$0xff]   ;;  %v5759_v6 = vld [vmem:[#allocation6 + $0x1e8] ss:$24 sps:$4 sm:$0xff]  }
 0x300   : > { %v1827_v48 = vmul.f32 %v3955_v4, %v1825_v52  ;;  %v5623_v50 = vld [vmem:[#allocation6 + $0x44] ss:$24 sps:$4 sm:$0xff]  }
 0x301   : > { %v1828_v27 = vadd.f32 %v1826_v5, %v6906_v25  ;;  %v5620_v5 = vld [vmem:[#allocation6 + $0x10] ss:$24 sps:$4 sm:$0xff]   ;;  %v5631_v25 = vld [vmem:[#allocation6 + $0x74] ss:$24 sps:$4 sm:$0xff]  }
 0x302   : > { %v1829_v32 = vadd.f32 %v1827_v48, %v6907_v17  ;;  %v5628_v48 = vld [vmem:[#allocation6 + $0x40] ss:$24 sps:$4 sm:$0xff]   ;;  %v5639_v17 = vld [vmem:[#allocation6 + $0xa4] ss:$24 sps:$4 sm:$0xff]  }
 0x303   : > { %3960 = vtanh.f32 %v1828_v27  ;;  %v5636_v27 = vld [vmem:[#allocation6 + $0x70] ss:$24 sps:$4 sm:$0xff]  }
 0x304   : > { %3962 = vtanh.f32 %v1829_v32  ;;  %v6910_v32 = vld [vmem:[#allocation21_spill] sm:$0xff] }
 0x30d   : > { %v3961_v62 = vpop.eup %3960 }
 0x30e   : > { %v3963_v56 = vpop.eup %3962  ;;  %v1834_v2 = vmul.f32 %v3961_v62, %v1832_v59  ;;  %v6938_v59 = vld [vmem:[#allocation93_spill] sm:$0xff] }
 0x30f   : > { %v1835_v58 = vmul.f32 %v3963_v56, %v1833_v60  ;;  %v5729_v62 = vld [vmem:[#allocation6 + $0xf8] ss:$24 sps:$4 sm:$0xff]   ;;  %v5732_v60 = vld [vmem:[#allocation6 + $0x12c] ss:$24 sps:$4 sm:$0xff]   ;;  %v5735_v56 = vld [vmem:[#allocation6 + $0x128] ss:$24 sps:$4 sm:$0xff]  }
 0x310   : > { %v5608_v1 = vadd.f32 %v1836_v63, %v1834_v2  ;;  %6939 = vst [vmem:[#allocation72_spill] sm:$0xff] %v5729_v62  ;;  %6940 = vst [vmem:[#allocation73_spill] sm:$0xff] %v5732_v60  ;;  %v5738_v63 = vld [vmem:[#allocation6 + $0x15c] ss:$24 sps:$4 sm:$0xff]   ;;  %v5741_v2 = vld [vmem:[#allocation6 + $0x158] ss:$24 sps:$4 sm:$0xff]  }
 0x311   : > { %v5610_v54 = vadd.f32 %v1837_v61, %v1835_v58  ;;  %6941 = vst [vmem:[#allocation77_spill] sm:$0xff] %v5735_v56  ;;  %6942 = vst [vmem:[#allocation88_spill] sm:$0xff] %v5738_v63  ;;  %v5744_v58 = vld [vmem:[#allocation6 + $0x18c] ss:$24 sps:$4 sm:$0xff]   ;;  %v5747_v61 = vld [vmem:[#allocation6 + $0x188] ss:$24 sps:$4 sm:$0xff]  }
 0x312   : > { %6908 = vst [vmem:[#allocation27_spill] sm:$0xff] %v5608_v1  ;;  %v5616_v4 = vpack.c.bf16 %v5608_v1, %v5608_v1  ;;  %6943 = vst [vmem:[#allocation21_spill] sm:$0xff] %v5741_v2 }
 0x313   : > { %6909 = vst [vmem:[#allocation29_spill] sm:$0xff] %v5610_v54  ;;  %v1849_v52 = vpack.c.bf16 %v5610_v54, %v5610_v54 }
 0x315   : > { %1882 = vmatprep.mubr.bf16.mxu1 %v1849_v52  ;;  %1923 = vmatprep.mubr.bf16.mxu0 %v1849_v52 }
 0x316   : > { %1883 = vmatmul.mubr.bf16.vlgmr.msra.gmra.mrb[28].mxu1 %v5616_v4  ;;  %1924 = vmatmul.mubr.bf16.vlgmr.msra.gmra.mrb[44].mxu0 %v5616_v4 }
 0x317   : > { %1933 = vmatpush1.bf16.msra.mxu1 %v5620_v5  ;;  %1964 = vmatprep.mubr.bf16.mxu1 %v1849_v52  ;;  %v5750_v52 = vld [vmem:[#allocation6 + $0x1bc] ss:$24 sps:$4 sm:$0xff]  }
 0x318   : > { %1934 = vmatprep.subr.bf16.mxu1 %v5623_v50  ;;  %2028 = vmatpush1.bf16.msra.mxu0 %v5437_v35 }
 0x319   : > { %2029 = vmatprep.subr.bf16.mxu0 %v5440_v33 }
 0x31b   : > { %1935 = vmatpush1.bf16.msra.mxu1 %v5628_v48 }
 0x31c   : > { %1936 = vmatprep.subr.bf16.mxu1 %v5631_v25  ;;  %2030 = vmatpush1.bf16.msra.mxu0 %v5445_v10 }
 0x31d   : > { %2031 = vmatprep.subr.bf16.mxu0 %v5448_v36 }
 0x31f   : > { %1937 = vmatpush1.bf16.msra.mxu1 %v5636_v27 }
 0x320   : > { %1938 = vmatprep.subr.bf16.mxu1 %v5639_v17  ;;  %2032 = vmatpush1.bf16.msra.mxu0 %v5453_v39 }
 0x321   : > { %2033 = vmatprep.subr.bf16.mxu0 %v5456_v37 }
 0x323   : > { %1939 = vmatpush1.bf16.msra.mxu1 %v6859_v45  ;;  %v6911_v45 = vld [vmem:[#allocation23_spill] sm:$0xff] }
 0x324   : > { %1940 = vmatprep.subr.bf16.mxu1 %v6860_v8  ;;  %2034 = vmatpush1.bf16.msra.mxu0 %v5461_v28  ;;  %v6912_v8 = vld [vmem:[#allocation24_spill] sm:$0xff]  ;;  %6944 = vst [vmem:[#allocation23_spill] sm:$0xff] %v5744_v58 }
 0x325   : > { %2035 = vmatprep.subr.bf16.mxu0 %v5464_v43  ;;  %6945 = vst [vmem:[#allocation24_spill] sm:$0xff] %v5747_v61 }
 0x327   : > { %1941 = vmatpush1.bf16.msra.mxu1 %v6861_v29  ;;  %v6913_v29 = vld [vmem:[#allocation26_spill] sm:$0xff] }
 0x328   : > { %1942 = vmatprep.subr.bf16.mxu1 %v6862_v41  ;;  %2036 = vmatpush1.bf16.msra.mxu0 %v5469_v42  ;;  %v6914_v41 = vld [vmem:[#allocation28_spill] sm:$0xff]  ;;  %6946 = vst [vmem:[#allocation26_spill] sm:$0xff] %v5750_v52 }
 0x329   : > { %2037 = vmatprep.subr.bf16.mxu0 %v5472_v15 }
 0x32b   : > { %1943 = vmatpush1.bf16.msra.mxu1 %v6863_v55  ;;  %v6915_v55 = vld [vmem:[#allocation30_spill] sm:$0xff] }
 0x32c   : > { %1944 = vmatprep.subr.bf16.mxu1 %v6864_v51  ;;  %2038 = vmatpush1.bf16.msra.mxu0 %v6910_v32  ;;  %v6916_v51 = vld [vmem:[#allocation32_spill] sm:$0xff]  ;;  %6948 = vst [vmem:[#allocation30_spill] sm:$0xff] %v5756_v34 }
 0x32d   : > { %2039 = vmatprep.subr.bf16.mxu0 %v6911_v45  ;;  %6949 = vst [vmem:[#allocation32_spill] sm:$0xff] %v5759_v6 }
 0x32f   : > { %1945 = vmatpush1.bf16.msra.mxu1 %v6867_v24  ;;  %v6931_v24 = vld [vmem:[#allocation44_spill] sm:$0xff] }
 0x330   : > { %1946 = vmatprep.subr.bf16.mxu1 %v6868_v53  ;;  %2040 = vmatpush1.bf16.msra.mxu0 %v6912_v8  ;;  %v6932_v53 = vld [vmem:[#allocation46_spill] sm:$0xff] }
 0x331   : > { %2041 = vmatprep.subr.bf16.mxu0 %v6913_v29 }
 0x333   : > { %1947 = vmatpush1.bf16.msra.mxu1 %v6871_v38  ;;  %v6934_v38 = vld [vmem:[#allocation49_spill] sm:$0xff] }
 0x334   : > { %1948 = vmatprep.subr.bf16.mxu1 %v6872_v31  ;;  %2042 = vmatpush1.bf16.msra.mxu0 %v6914_v41  ;;  %v6935_v31 = vld [vmem:[#allocation90_spill] sm:$0xff] }
 0x335   : > { %2043 = vmatprep.subr.bf16.mxu0 %v6915_v55 }
 0x337   : > { %1949 = vmatpush1.bf16.msra.mxu1 %v5118_v9  ;;  %v5675_v9 = vld [vmem:[#allocation6 + $0x214] ss:$24 sps:$4 sm:$0xff]  }
 0x338   : > { %1950 = vmatprep.subr.bf16.mxu1 %v5121_v7  ;;  %2044 = vmatpush1.bf16.msra.mxu0 %v6916_v51  ;;  %6917 = vst [vmem:[#allocation31_spill] sm:$0xff] %v5675_v9  ;;  %v5680_v7 = vld [vmem:[#allocation6 + $0x210] ss:$24 sps:$4 sm:$0xff]  }
 0x339   : > { %2045 = vmatprep.subr.bf16.mxu0 %v5504_v49  ;;  %6918 = vst [vmem:[#allocation33_spill] sm:$0xff] %v5680_v7 }
 0x33b   : > { %1951 = vmatpush1.bf16.msra.mxu1 %v5126_v44  ;;  %v5696_v44 = vld [vmem:[#allocation6 + $0x270] ss:$24 sps:$4 sm:$0xff]  }
 0x33c   : > { %1952 = vmatprep.subr.bf16.mxu1 %v5130_v19  ;;  %2046 = vmatpush1.bf16.msra.mxu0 %v5509_v40  ;;  %v5683_v19 = vld [vmem:[#allocation6 + $0x244] ss:$24 sps:$4 sm:$0xff]   ;;  %6922 = vst [vmem:[#allocation41_spill] sm:$0xff] %v5696_v44 }
 0x33d   : > { %2047 = vmatprep.subr.bf16.mxu0 %v5512_v23  ;;  %6919 = vst [vmem:[#allocation35_spill] sm:$0xff] %v5683_v19 }
 0x33f   : > { %1953 = vmatpush1.bf16.msra.mxu1 %v5134_v30  ;;  %v5691_v30 = vld [vmem:[#allocation6 + $0x274] ss:$24 sps:$4 sm:$0xff]  }
 0x340   : > { %1954 = vmatprep.subr.bf16.mxu1 %v5138_v3  ;;  %2048 = vmatpush1.bf16.msra.mxu0 %v5517_v46  ;;  %v5688_v3 = vld [vmem:[#allocation6 + $0x240] ss:$24 sps:$4 sm:$0xff]   ;;  %6921 = vst [vmem:[#allocation39_spill] sm:$0xff] %v5691_v30 }
 0x341   : > { %2049 = vmatprep.subr.bf16.mxu0 %v5675_v9  ;;  %6920 = vst [vmem:[#allocation37_spill] sm:$0xff] %v5688_v3 }
 0x343   : > { %1955 = vmatpush1.bf16.msra.mxu1 %v5142_v11  ;;  %v5699_v11 = vld [vmem:[#allocation6 + $0x2a4] ss:$24 sps:$4 sm:$0xff]  }
 0x344   : > { %1956 = vmatprep.subr.bf16.mxu1 %v5146_v12  ;;  %2050 = vmatpush1.bf16.msra.mxu0 %v5680_v7  ;;  %6923 = vst [vmem:[#allocation43_spill] sm:$0xff] %v5699_v11  ;;  %v5704_v12 = vld [vmem:[#allocation6 + $0x2a0] ss:$24 sps:$4 sm:$0xff]  }
 0x345   : > { %2051 = vmatprep.subr.bf16.mxu0 %v5683_v19  ;;  %6924 = vst [vmem:[#allocation45_spill] sm:$0xff] %v5704_v12 }
 0x347   : > { %1957 = vmatpush1.bf16.msra.mxu1 %v5150_v13  ;;  %v5707_v13 = vld [vmem:[#allocation6 + $0x2d4] ss:$24 sps:$4 sm:$0xff]  }
 0x348   : > { %1958 = vmatprep.subr.bf16.mxu1 %v5154_v14  ;;  %2052 = vmatpush1.bf16.msra.mxu0 %v5688_v3  ;;  %6925 = vst [vmem:[#allocation47_spill] sm:$0xff] %v5707_v13  ;;  %v6926_v14 = vld [vmem:[#allocation38_spill] sm:$0xff] }
 0x349   : > { %2053 = vmatprep.subr.bf16.mxu0 %v5691_v30 }
 0x34b   : > { %1959 = vmatpush1.bf16.msra.mxu1 %v5158_v16  ;;  %v5712_v16 = vld [vmem:[#allocation6 + $0x2d0] ss:$24 sps:$4 sm:$0xff]  }
 0x34c   : > { %1960 = vmatprep.subr.bf16.mxu1 %v5162_v18  ;;  %2054 = vmatpush1.bf16.msra.mxu0 %v5696_v44  ;;  %6927 = vst [vmem:[#allocation51_spill] sm:$0xff] %v5712_v16  ;;  %v5715_v18 = vld [vmem:[#allocation6 + $0x14] ss:$24 sps:$4 sm:$0xff]  }
 0x34d   : > { %2055 = vmatprep.subr.bf16.mxu0 %v5699_v11  ;;  %6928 = vst [vmem:[#allocation50_spill] sm:$0xff] %v5715_v18 }
 0x34f   : > { %1961 = vmatpush1.bf16.msra.mxu1 %v5166_v20  ;;  %v6929_v20 = vld [vmem:[#allocation40_spill] sm:$0xff] }
 0x350   : > { %1962 = vmatprep.subr.bf16.mxu1 %v5170_v21  ;;  %2056 = vmatpush1.bf16.msra.mxu0 %v5704_v12  ;;  %v6930_v21 = vld [vmem:[#allocation42_spill] sm:$0xff] }
 0x351   : > { %2057 = vmatprep.subr.bf16.mxu0 %v5707_v13 }
 0x353   : > { %1963 = vmatpush1.bf16.msra.mxu1 %v5174_v26  ;;  %v6933_v26 = vld [vmem:[#allocation48_spill] sm:$0xff] }
 0x354   : > { %2068 = vmatprep.subr.bf16.mxu1 %v6926_v14  ;;  %2058 = vmatpush1.bf16.msra.mxu0 %v5712_v16 }
 0x355   : > { %2109 = vmatprep.subr.bf16.mxu0 %v5715_v18 }
 0x356   : > { %1965 = vmatmul.mubr.bf16.vlgmr.msra.gmra.mrb[32].mxu1 %v5616_v4  ;;  %v5753_v4 = vld [vmem:[#allocation6 + $0x1b8] ss:$24 sps:$4 sm:$0xff]  }
 0x357   : > { %2069 = vmatpush1.bf16.msra.mxu1 %v6929_v20  ;;  %6947 = vst [vmem:[#allocation28_spill] sm:$0xff] %v5753_v4 }
 0x358   : > { %2070 = vmatprep.subr.bf16.mxu1 %v6930_v21 }
 0x35b   : > { %2071 = vmatpush1.bf16.msra.mxu1 %v6931_v24 }
 0x35c   : > { %2072 = vmatprep.subr.bf16.mxu1 %v6932_v53 }
 0x35f   : > { %2073 = vmatpush1.bf16.msra.mxu1 %v6933_v26 }
 0x360   : > { %2074 = vmatprep.subr.bf16.mxu1 %v6934_v38 }
 0x363   : > { %2075 = vmatpush1.bf16.msra.mxu1 %v6935_v31 }
 0x364   : > { %2076 = vmatprep.subr.bf16.mxu1 %v6936_v57  ;;  %v6964_v57 = vld [vmem:[#allocation69_spill] sm:$0xff] }
 0x367   : > { %2077 = vmatpush1.bf16.msra.mxu1 %v6937_v0  ;;  %v6963_v0 = vld [vmem:[#allocation68_spill] sm:$0xff] }
 0x368   : > { %2078 = vmatprep.subr.bf16.mxu1 %v6938_v59 }
 0x36b   : > { %2079 = vmatpush1.bf16.msra.mxu1 %v5729_v62 }
 0x36c   : > { %2080 = vmatprep.subr.bf16.mxu1 %v5732_v60  ;;  %v6962_v60 = vld [vmem:[#allocation55_spill] sm:$0xff] }
 0x36f   : > { %2081 = vmatpush1.bf16.msra.mxu1 %v5735_v56 }
 0x370   : > { %2082 = vmatprep.subr.bf16.mxu1 %v5738_v63  ;;  %v6961_v63 = vld [vmem:[#allocation54_spill] sm:$0xff] }
 0x373   : > { %2083 = vmatpush1.bf16.msra.mxu1 %v5741_v2 }
 0x374   : > { %2084 = vmatprep.subr.bf16.mxu1 %v5744_v58  ;;  %v5762_v58 = vld [vmem:[#allocation6 + $0x21c] ss:$24 sps:$4 sm:$0xff]  }
 0x375   : > { %6950 = vst [vmem:[#allocation94_spill] sm:$0xff] %v5762_v58 }
 0x377   : > { %2085 = vmatpush1.bf16.msra.mxu1 %v5747_v61  ;;  %v5765_v61 = vld [vmem:[#allocation6 + $0x218] ss:$24 sps:$4 sm:$0xff]  }
 0x378   : > { %2086 = vmatprep.subr.bf16.mxu1 %v5750_v52  ;;  %6951 = vst [vmem:[#allocation95_spill] sm:$0xff] %v5765_v61  ;;  %v5768_v52 = vld [vmem:[#allocation6 + $0x24c] ss:$24 sps:$4 sm:$0xff]  }
 0x379   : > { %6952 = vst [vmem:[#allocation96_spill] sm:$0xff] %v5768_v52 }
 0x37b   : > { %2087 = vmatpush1.bf16.msra.mxu1 %v5753_v4  ;;  %v5771_v4 = vld [vmem:[#allocation6 + $0x248] ss:$24 sps:$4 sm:$0xff]  }
 0x37c   : > { %2088 = vmatprep.subr.bf16.mxu1 %v5756_v34  ;;  %6953 = vst [vmem:[#allocation97_spill] sm:$0xff] %v5771_v4  ;;  %v5774_v34 = vld [vmem:[#allocation6 + $0x27c] ss:$24 sps:$4 sm:$0xff]  }
 0x37d   : > { %6954 = vst [vmem:[#allocation98_spill] sm:$0xff] %v5774_v34 }
 0x37f   : > { %2089 = vmatpush1.bf16.msra.mxu1 %v5759_v6  ;;  %v5777_v6 = vld [vmem:[#allocation6 + $0x278] ss:$24 sps:$4 sm:$0xff]  }
 0x380   : > { %2090 = vmatprep.subr.bf16.mxu1 %v5762_v58  ;;  %6955 = vst [vmem:[#allocation99_spill] sm:$0xff] %v5777_v6  ;;  %v5780_v58 = vld [vmem:[#allocation6 + $0x2ac] ss:$24 sps:$4 sm:$0xff]  }
 0x381   : > { %6956 = vst [vmem:[#allocation100_spill] sm:$0xff] %v5780_v58 }
 0x383   : > { %2091 = vmatpush1.bf16.msra.mxu1 %v5765_v61  ;;  %v5783_v61 = vld [vmem:[#allocation6 + $0x2a8] ss:$24 sps:$4 sm:$0xff]  }
 0x384   : > { %2092 = vmatprep.subr.bf16.mxu1 %v5768_v52  ;;  %6957 = vst [vmem:[#allocation101_spill] sm:$0xff] %v5783_v61  ;;  %v5786_v52 = vld [vmem:[#allocation6 + $0x2dc] ss:$24 sps:$4 sm:$0xff]  }
 0x385   : > { %6958 = vst [vmem:[#allocation102_spill] sm:$0xff] %v5786_v52 }
 0x387   : > { %2093 = vmatpush1.bf16.msra.mxu1 %v5771_v4  ;;  %v5789_v4 = vld [vmem:[#allocation6 + $0x2d8] ss:$24 sps:$4 sm:$0xff]  }
 0x388   : > { %2094 = vmatprep.subr.bf16.mxu1 %v5774_v34  ;;  %6959 = vst [vmem:[#allocation103_spill] sm:$0xff] %v5789_v4  ;;  %v6960_v34 = vld [vmem:[#allocation25_spill] sm:$0xff] }
 0x38b   : > { %2095 = vmatpush1.bf16.msra.mxu1 %v5777_v6 }
 0x38c   : > { %2096 = vmatprep.subr.bf16.mxu1 %v5780_v58 }
 0x38f   : > { %2097 = vmatpush1.bf16.msra.mxu1 %v5783_v61 }
 0x390   : > { %2098 = vmatprep.subr.bf16.mxu1 %v5786_v52 }
 0x393   : > { %2099 = vmatpush1.bf16.msra.mxu1 %v5789_v4 }
 0x394   : > { %2204 = vmatprep.subr.bf16.mxu1 %v6960_v34 }
 0x3e9   : > { %v1884_v2 = vpop.f32.mrb[28].mxu1  ;;  %v1925_v6 = vpop.f32.mrb[44].mxu0 }
 0x3ea   : > { %v1973_v56 = vadd.f32 %v1884_v2, %v6961_v63  ;;  %v1987_v58 = vadd.f32 %v1925_v6, %v6962_v60  ;;  %v1886_v62 = vpop.f32.mrb[29].mxu1  ;;  %v1927_v59 = vpop.f32.mrb[45].mxu0 }
 0x3eb   : > { %v1974_v61 = vadd.f32 %v1886_v62, %v6963_v0  ;;  %v1988_v31 = vadd.f32 %v1927_v59, %v6964_v57  ;;  %v1888_v38 = vpop.f32.mrb[30].mxu1  ;;  %v1929_v52 = vpop.f32.mrb[46].mxu0 }
 0x3ec   : > { %v1889_v26 = vpop.f32.mrb[31].mxu1  ;;  %v1930_v53 = vpop.f32.mrb[47].mxu0  ;;  %v3571_v24 = vmul.f32 -1.442695, %v1973_v56  ;;  %v3573_v34 = vmul.f32 -1.442695, %v1987_v58 }
 0x3ed   : > { %v3572_v4 = vmul.f32 -1.442695, %v1974_v61  ;;  %v3574_v21 = vmul.f32 -1.442695, %v1988_v31  ;;  %v6965_v58 = vld [vmem:[#allocation79_spill] sm:$0xff]  ;;  %v6966_v52 = vld [vmem:[#allocation86_spill] sm:$0xff] }
 0x3ee   : > { %3964 = vpow2.f32 %v3571_v24 }
 0x3ef   : > { %3966 = vpow2.f32 %v3572_v4 }
 0x3f0   : > { %3968 = vpow2.f32 %v3573_v34 }
 0x3f1   : > { %3970 = vpow2.f32 %v3574_v21 }
 0x3f8   : > { %v3965_v20 = vpop.eup %3964 }
 0x3f9   : > { %v3967_v63 = vpop.eup %3966  ;;  %v1981_v6 = vadd.f32 1.0, %v3965_v20 }
 0x3fa   : > { %v1982_v60 = vadd.f32 1.0, %v3967_v63  ;;  %v3969_v0 = vpop.eup %3968 }
 0x3fb   : > { %3972 = vrcp.f32 %v1981_v6  ;;  %v3971_v57 = vpop.eup %3970  ;;  %v1995_v38 = vadd.f32 1.0, %v3969_v0 }
 0x3fc   : > { %3974 = vrcp.f32 %v1982_v60  ;;  %v1996_v59 = vadd.f32 1.0, %v3971_v57 }
 0x3fd   : > { %3976 = vrcp.f32 %v1995_v38 }
 0x3fe   : > { %3978 = vrcp.f32 %v1996_v59 }
 0x405   : > { %v3973_v24 = vpop.eup %3972 }
 0x406   : > { %v3975_v2 = vpop.eup %3974 }
 0x407   : > { %v3977_v63 = vpop.eup %3976 }
 0x408   : > { %v3979_v6 = vpop.eup %3978  ;;  %v2009_v60 = vsub.f32 1.0, %v3977_v63 }
 0x409   : > { %v2010_v57 = vsub.f32 1.0, %v3979_v6 }
 0x429   : > { %v1966_v26 = vpop.f32.mrb[32].mxu1 }
 0x42a   : > { %v2001_v53 = vadd.f32 %v1966_v26, %v5410_v22  ;;  %v1968_v62 = vpop.f32.mrb[33].mxu1 }
 0x42b   : > { %v2002_v56 = vadd.f32 %v1968_v62, %v5414_v47  ;;  %v1970_v31 = vpop.f32.mrb[34].mxu1  ;;  %v2013_v62 = vmul.f32 %v3977_v63, %v5608_v1  ;;  %v5854_v63 = vld [vmem:[#allocation6 + $0x164] ss:$24 sps:$4 sm:$0xff]  }
 0x42c   : > { %v2003_v34 = vmul.f32 %v3973_v24, %v2001_v53  ;;  %v1971_v21 = vpop.f32.mrb[35].mxu1  ;;  %v2014_v53 = vmul.f32 %v3979_v6, %v5610_v54  ;;  %v5859_v6 = vld [vmem:[#allocation6 + $0x160] ss:$24 sps:$4 sm:$0xff]   ;;  %v5899_v54 = vld [vmem:[#allocation6 + $0x250] ss:$24 sps:$4 sm:$0xff]  }
 0x42d   : > { %v2004_v20 = vmul.f32 %v3975_v2, %v2002_v56  ;;  %v5830_v21 = vld [vmem:[#allocation6 + $0xd4] ss:$24 sps:$4 sm:$0xff]   ;;  %6973 = vst [vmem:[#allocation104_spill] sm:$0xff] %v5899_v54  ;;  %v5902_v1 = vld [vmem:[#allocation6 + $0x284] ss:$24 sps:$4 sm:$0xff]  }
 0x42e   : > { %v2005_v61 = vadd.f32 %v2003_v34, %v6965_v58  ;;  %v5827_v34 = vld [vmem:[#allocation6 + $0xa0] ss:$24 sps:$4 sm:$0xff]   ;;  %v5838_v58 = vld [vmem:[#allocation6 + $0x104] ss:$24 sps:$4 sm:$0xff]   ;;  %6974 = vst [vmem:[#allocation105_spill] sm:$0xff] %v5902_v1 }
 0x42f   : > { %v2006_v4 = vadd.f32 %v2004_v20, %v6966_v52  ;;  %v5835_v20 = vld [vmem:[#allocation6 + $0xd0] ss:$24 sps:$4 sm:$0xff]   ;;  %v5846_v52 = vld [vmem:[#allocation6 + $0x134] ss:$24 sps:$4 sm:$0xff]  }
 0x430   : > { %3980 = vtanh.f32 %v2005_v61  ;;  %v5843_v61 = vld [vmem:[#allocation6 + $0x100] ss:$24 sps:$4 sm:$0xff]  }
 0x431   : > { %3982 = vtanh.f32 %v2006_v4  ;;  %v5851_v4 = vld [vmem:[#allocation6 + $0x130] ss:$24 sps:$4 sm:$0xff]  }
 0x43a   : > { %v3981_v0 = vpop.eup %3980 }
 0x43b   : > { %v3983_v26 = vpop.eup %3982  ;;  %v2011_v31 = vmul.f32 %v3981_v0, %v2009_v60  ;;  %v5862_v60 = vld [vmem:[#allocation6 + $0x194] ss:$24 sps:$4 sm:$0xff]   ;;  %v5867_v0 = vld [vmem:[#allocation6 + $0x190] ss:$24 sps:$4 sm:$0xff]  }
 0x43c   : > { %v2012_v38 = vmul.f32 %v3983_v26, %v2010_v57  ;;  %v5870_v57 = vld [vmem:[#allocation6 + $0x1c4] ss:$24 sps:$4 sm:$0xff]   ;;  %v5875_v26 = vld [vmem:[#allocation6 + $0x1c0] ss:$24 sps:$4 sm:$0xff]  }
 0x43d   : > { %v5803_v59 = vadd.f32 %v2013_v62, %v2011_v31  ;;  %v5878_v62 = vld [vmem:[#allocation6 + $0x1f4] ss:$24 sps:$4 sm:$0xff]   ;;  %v5883_v31 = vld [vmem:[#allocation6 + $0x1f0] ss:$24 sps:$4 sm:$0xff]  }
 0x43e   : > { %v5805_v24 = vadd.f32 %v2014_v53, %v2012_v38  ;;  %6969 = vst [vmem:[#allocation68_spill] sm:$0xff] %v5883_v31  ;;  %v5886_v38 = vld [vmem:[#allocation6 + $0x224] ss:$24 sps:$4 sm:$0xff]   ;;  %v5891_v53 = vld [vmem:[#allocation6 + $0x220] ss:$24 sps:$4 sm:$0xff]  }
 0x43f   : > { %6967 = vst [vmem:[#allocation54_spill] sm:$0xff] %v5803_v59  ;;  %v5811_v2 = vpack.c.bf16 %v5803_v59, %v5803_v59  ;;  %6970 = vst [vmem:[#allocation69_spill] sm:$0xff] %v5886_v38 }
 0x440   : > { %6968 = vst [vmem:[#allocation55_spill] sm:$0xff] %v5805_v24  ;;  %v2026_v56 = vpack.c.bf16 %v5805_v24, %v5805_v24  ;;  %6971 = vst [vmem:[#allocation79_spill] sm:$0xff] %v5891_v53 }
 0x442   : > { %2059 = vmatprep.mubr.bf16.mxu0 %v2026_v56  ;;  %2100 = vmatprep.mubr.bf16.mxu1 %v2026_v56 }
 0x443   : > { %2060 = vmatmul.mubr.bf16.vlgmr.msra.gmra.mrb[48].mxu0 %v5811_v2  ;;  %2101 = vmatmul.mubr.bf16.vlgmr.msra.gmra.mrb[36].mxu1 %v5811_v2 }
 0x444   : > { %2110 = vmatpush1.bf16.msra.mxu0 %v5620_v5  ;;  %2141 = vmatprep.mubr.bf16.mxu0 %v2026_v56  ;;  %v5894_v56 = vld [vmem:[#allocation6 + $0x254] ss:$24 sps:$4 sm:$0xff]  }
 0x445   : > { %2111 = vmatprep.subr.bf16.mxu0 %v5623_v50  ;;  %2205 = vmatpush1.bf16.msra.mxu1 %v5437_v35  ;;  %6972 = vst [vmem:[#allocation86_spill] sm:$0xff] %v5894_v56 }
 0x446   : > { %2206 = vmatprep.subr.bf16.mxu1 %v5440_v33 }
 0x448   : > { %2112 = vmatpush1.bf16.msra.mxu0 %v5628_v48 }
 0x449   : > { %2113 = vmatprep.subr.bf16.mxu0 %v5631_v25  ;;  %2207 = vmatpush1.bf16.msra.mxu1 %v5445_v10 }
 0x44a   : > { %2208 = vmatprep.subr.bf16.mxu1 %v5448_v36 }
 0x44c   : > { %2114 = vmatpush1.bf16.msra.mxu0 %v5636_v27 }
 0x44d   : > { %2115 = vmatprep.subr.bf16.mxu0 %v5639_v17  ;;  %2209 = vmatpush1.bf16.msra.mxu1 %v5453_v39 }
 0x44e   : > { %2210 = vmatprep.subr.bf16.mxu1 %v5456_v37 }
 0x450   : > { %2116 = vmatpush1.bf16.msra.mxu0 %v5827_v34 }
 0x451   : > { %2117 = vmatprep.subr.bf16.mxu0 %v5830_v21  ;;  %2211 = vmatpush1.bf16.msra.mxu1 %v5461_v28 }
 0x452   : > { %2212 = vmatprep.subr.bf16.mxu1 %v5464_v43 }
 0x454   : > { %2118 = vmatpush1.bf16.msra.mxu0 %v5835_v20 }
 0x455   : > { %2119 = vmatprep.subr.bf16.mxu0 %v5838_v58  ;;  %2213 = vmatpush1.bf16.msra.mxu1 %v5469_v42 }
 0x456   : > { %2214 = vmatprep.subr.bf16.mxu1 %v5472_v15 }
 0x458   : > { %2120 = vmatpush1.bf16.msra.mxu0 %v5843_v61 }
 0x459   : > { %2121 = vmatprep.subr.bf16.mxu0 %v5846_v52  ;;  %2215 = vmatpush1.bf16.msra.mxu1 %v6910_v32 }
 0x45a   : > { %2216 = vmatprep.subr.bf16.mxu1 %v6911_v45 }
 0x45c   : > { %2122 = vmatpush1.bf16.msra.mxu0 %v5851_v4 }
 0x45d   : > { %2123 = vmatprep.subr.bf16.mxu0 %v5854_v63  ;;  %2217 = vmatpush1.bf16.msra.mxu1 %v6912_v8 }
 0x45e   : > { %2218 = vmatprep.subr.bf16.mxu1 %v6913_v29 }
 0x460   : > { %2124 = vmatpush1.bf16.msra.mxu0 %v5859_v6 }
 0x461   : > { %2125 = vmatprep.subr.bf16.mxu0 %v5862_v60  ;;  %2219 = vmatpush1.bf16.msra.mxu1 %v6914_v41 }
 0x462   : > { %2220 = vmatprep.subr.bf16.mxu1 %v6915_v55 }
 0x464   : > { %2126 = vmatpush1.bf16.msra.mxu0 %v5867_v0 }
 0x465   : > { %2127 = vmatprep.subr.bf16.mxu0 %v5870_v57  ;;  %2221 = vmatpush1.bf16.msra.mxu1 %v6916_v51 }
 0x466   : > { %2222 = vmatprep.subr.bf16.mxu1 %v5504_v49 }
 0x468   : > { %2128 = vmatpush1.bf16.msra.mxu0 %v5875_v26 }
 0x469   : > { %2129 = vmatprep.subr.bf16.mxu0 %v5878_v62  ;;  %2223 = vmatpush1.bf16.msra.mxu1 %v5509_v40 }
 0x46a   : > { %2224 = vmatprep.subr.bf16.mxu1 %v5512_v23 }
 0x46c   : > { %2130 = vmatpush1.bf16.msra.mxu0 %v5883_v31 }
 0x46d   : > { %2131 = vmatprep.subr.bf16.mxu0 %v5886_v38  ;;  %2225 = vmatpush1.bf16.msra.mxu1 %v5517_v46 }
 0x46e   : > { %2226 = vmatprep.subr.bf16.mxu1 %v5675_v9 }
 0x470   : > { %2132 = vmatpush1.bf16.msra.mxu0 %v5891_v53  ;;  %v5907_v53 = vld [vmem:[#allocation6 + $0x280] ss:$24 sps:$4 sm:$0xff]  }
 0x471   : > { %2133 = vmatprep.subr.bf16.mxu0 %v5894_v56  ;;  %2227 = vmatpush1.bf16.msra.mxu1 %v5680_v7  ;;  %6975 = vst [vmem:[#allocation106_spill] sm:$0xff] %v5907_v53  ;;  %v5910_v56 = vld [vmem:[#allocation6 + $0x2b4] ss:$24 sps:$4 sm:$0xff]   ;;  %v7015_v7 = vld [vmem:[#allocation65_spill] sm:$0xff] }
 0x472   : > { %2228 = vmatprep.subr.bf16.mxu1 %v5683_v19  ;;  %6976 = vst [vmem:[#allocation107_spill] sm:$0xff] %v5910_v56  ;;  %v7014_v19 = vld [vmem:[#allocation64_spill] sm:$0xff] }
 0x474   : > { %2134 = vmatpush1.bf16.msra.mxu0 %v5899_v54  ;;  %v5915_v54 = vld [vmem:[#allocation6 + $0x2b0] ss:$24 sps:$4 sm:$0xff]  }
 0x475   : > { %2135 = vmatprep.subr.bf16.mxu0 %v5902_v1  ;;  %2229 = vmatpush1.bf16.msra.mxu1 %v5688_v3  ;;  %6977 = vst [vmem:[#allocation108_spill] sm:$0xff] %v5915_v54  ;;  %v5918_v1 = vld [vmem:[#allocation6 + $0x2e4] ss:$24 sps:$4 sm:$0xff]  }
 0x476   : > { %2230 = vmatprep.subr.bf16.mxu1 %v5691_v30  ;;  %6978 = vst [vmem:[#allocation109_spill] sm:$0xff] %v5918_v1  ;;  %v7013_v30 = vld [vmem:[#allocation59_spill] sm:$0xff] }
 0x478   : > { %2136 = vmatpush1.bf16.msra.mxu0 %v5907_v53  ;;  %v5923_v53 = vld [vmem:[#allocation6 + $0x2e0] ss:$24 sps:$4 sm:$0xff]  }
 0x479   : > { %2137 = vmatprep.subr.bf16.mxu0 %v5910_v56  ;;  %2231 = vmatpush1.bf16.msra.mxu1 %v5696_v44  ;;  %6979 = vst [vmem:[#allocation110_spill] sm:$0xff] %v5923_v53  ;;  %v6985_v44 = vld [vmem:[#allocation49_spill] sm:$0xff]  ;;  %v7012_v56 = vld [vmem:[#allocation58_spill] sm:$0xff] }
 0x47a   : > { %2232 = vmatprep.subr.bf16.mxu1 %v5699_v11  ;;  %v6981_v11 = vld [vmem:[#allocation42_spill] sm:$0xff] }
 0x47c   : > { %2138 = vmatpush1.bf16.msra.mxu0 %v5915_v54  ;;  %v6980_v54 = vld [vmem:[#allocation40_spill] sm:$0xff] }
 0x47d   : > { %2139 = vmatprep.subr.bf16.mxu0 %v5918_v1  ;;  %2233 = vmatpush1.bf16.msra.mxu1 %v5704_v12  ;;  %v6982_v1 = vld [vmem:[#allocation44_spill] sm:$0xff]  ;;  %v6983_v12 = vld [vmem:[#allocation46_spill] sm:$0xff] }
 0x47e   : > { %2234 = vmatprep.subr.bf16.mxu1 %v5707_v13  ;;  %v6984_v13 = vld [vmem:[#allocation48_spill] sm:$0xff] }
 0x480   : > { %2140 = vmatpush1.bf16.msra.mxu0 %v5923_v53  ;;  %v6986_v53 = vld [vmem:[#allocation90_spill] sm:$0xff] }
 0x481   : > { %2245 = vmatprep.subr.bf16.mxu0 %v6926_v14  ;;  %2235 = vmatpush1.bf16.msra.mxu1 %v5712_v16  ;;  %v6987_v14 = vld [vmem:[#allocation91_spill] sm:$0xff]  ;;  %v6988_v16 = vld [vmem:[#allocation92_spill] sm:$0xff] }
 0x482   : > { %2286 = vmatprep.subr.bf16.mxu1 %v5715_v18  ;;  %v6989_v18 = vld [vmem:[#allocation93_spill] sm:$0xff] }
 0x483   : > { %2142 = vmatmul.mubr.bf16.vlgmr.msra.gmra.mrb[52].mxu0 %v5811_v2  ;;  %v6990_v2 = vld [vmem:[#allocation72_spill] sm:$0xff] }
 0x484   : > { %2246 = vmatpush1.bf16.msra.mxu0 %v6980_v54  ;;  %v6991_v54 = vld [vmem:[#allocation73_spill] sm:$0xff] }
 0x485   : > { %2247 = vmatprep.subr.bf16.mxu0 %v6981_v11  ;;  %v6992_v11 = vld [vmem:[#allocation77_spill] sm:$0xff] }
 0x488   : > { %2248 = vmatpush1.bf16.msra.mxu0 %v6982_v1  ;;  %v6993_v1 = vld [vmem:[#allocation88_spill] sm:$0xff] }
 0x489   : > { %2249 = vmatprep.subr.bf16.mxu0 %v6983_v12  ;;  %v6994_v12 = vld [vmem:[#allocation21_spill] sm:$0xff] }
 0x48c   : > { %2250 = vmatpush1.bf16.msra.mxu0 %v6984_v13  ;;  %v6995_v13 = vld [vmem:[#allocation23_spill] sm:$0xff] }
 0x48d   : > { %2251 = vmatprep.subr.bf16.mxu0 %v6985_v44  ;;  %v6996_v44 = vld [vmem:[#allocation24_spill] sm:$0xff] }
 0x490   : > { %2252 = vmatpush1.bf16.msra.mxu0 %v6986_v53  ;;  %v6997_v53 = vld [vmem:[#allocation26_spill] sm:$0xff] }
 0x491   : > { %2253 = vmatprep.subr.bf16.mxu0 %v6987_v14  ;;  %v6998_v14 = vld [vmem:[#allocation28_spill] sm:$0xff] }
 0x494   : > { %2254 = vmatpush1.bf16.msra.mxu0 %v6988_v16  ;;  %v6999_v16 = vld [vmem:[#allocation30_spill] sm:$0xff] }
 0x495   : > { %2255 = vmatprep.subr.bf16.mxu0 %v6989_v18  ;;  %v7000_v18 = vld [vmem:[#allocation32_spill] sm:$0xff] }
 0x498   : > { %2256 = vmatpush1.bf16.msra.mxu0 %v6990_v2  ;;  %v7001_v2 = vld [vmem:[#allocation94_spill] sm:$0xff] }
 0x499   : > { %2257 = vmatprep.subr.bf16.mxu0 %v6991_v54  ;;  %v7002_v54 = vld [vmem:[#allocation95_spill] sm:$0xff] }
 0x49c   : > { %2258 = vmatpush1.bf16.msra.mxu0 %v6992_v11  ;;  %v7003_v11 = vld [vmem:[#allocation96_spill] sm:$0xff] }
 0x49d   : > { %2259 = vmatprep.subr.bf16.mxu0 %v6993_v1  ;;  %v7004_v1 = vld [vmem:[#allocation97_spill] sm:$0xff] }
 0x4a0   : > { %2260 = vmatpush1.bf16.msra.mxu0 %v6994_v12  ;;  %v7005_v12 = vld [vmem:[#allocation98_spill] sm:$0xff] }
 0x4a1   : > { %2261 = vmatprep.subr.bf16.mxu0 %v6995_v13  ;;  %v7006_v13 = vld [vmem:[#allocation99_spill] sm:$0xff] }
 0x4a4   : > { %2262 = vmatpush1.bf16.msra.mxu0 %v6996_v44  ;;  %v7007_v44 = vld [vmem:[#allocation100_spill] sm:$0xff] }
 0x4a5   : > { %2263 = vmatprep.subr.bf16.mxu0 %v6997_v53  ;;  %v7008_v53 = vld [vmem:[#allocation101_spill] sm:$0xff] }
 0x4a8   : > { %2264 = vmatpush1.bf16.msra.mxu0 %v6998_v14  ;;  %v7009_v14 = vld [vmem:[#allocation102_spill] sm:$0xff] }
 0x4a9   : > { %2265 = vmatprep.subr.bf16.mxu0 %v6999_v16  ;;  %v7010_v16 = vld [vmem:[#allocation103_spill] sm:$0xff] }
 0x4ac   : > { %2266 = vmatpush1.bf16.msra.mxu0 %v7000_v18  ;;  %v7011_v18 = vld [vmem:[#allocation25_spill] sm:$0xff] }
 0x4ad   : > { %2267 = vmatprep.subr.bf16.mxu0 %v7001_v2 }
 0x4b0   : > { %2268 = vmatpush1.bf16.msra.mxu0 %v7002_v54 }
 0x4b1   : > { %2269 = vmatprep.subr.bf16.mxu0 %v7003_v11 }
 0x4b4   : > { %2270 = vmatpush1.bf16.msra.mxu0 %v7004_v1 }
 0x4b5   : > { %2271 = vmatprep.subr.bf16.mxu0 %v7005_v12 }
 0x4b8   : > { %2272 = vmatpush1.bf16.msra.mxu0 %v7006_v13 }
 0x4b9   : > { %2273 = vmatprep.subr.bf16.mxu0 %v7007_v44 }
 0x4bc   : > { %2274 = vmatpush1.bf16.msra.mxu0 %v7008_v53 }
 0x4bd   : > { %2275 = vmatprep.subr.bf16.mxu0 %v7009_v14 }
 0x4c0   : > { %2276 = vmatpush1.bf16.msra.mxu0 %v7010_v16 }
 0x4c1   : > { %2381 = vmatprep.subr.bf16.mxu0 %v7011_v18 }
 0x516   : > { %v2061_v2 = vpop.f32.mrb[48].mxu0  ;;  %v2102_v54 = vpop.f32.mrb[36].mxu1 }
 0x517   : > { %v2150_v11 = vadd.f32 %v2061_v2, %v7012_v56  ;;  %v2164_v1 = vadd.f32 %v2102_v54, %v7013_v30  ;;  %v2063_v3 = vpop.f32.mrb[49].mxu0  ;;  %v2104_v12 = vpop.f32.mrb[37].mxu1 }
 0x518   : > { %v2151_v13 = vadd.f32 %v2063_v3, %v7014_v19  ;;  %v2165_v44 = vadd.f32 %v2104_v12, %v7015_v7  ;;  %v2065_v9 = vpop.f32.mrb[50].mxu0  ;;  %v2106_v53 = vpop.f32.mrb[38].mxu1 }
 0x519   : > { %v2066_v46 = vpop.f32.mrb[51].mxu0  ;;  %v2107_v14 = vpop.f32.mrb[39].mxu1  ;;  %v3575_v38 = vmul.f32 -1.442695, %v2150_v11  ;;  %v3577_v18 = vmul.f32 -1.442695, %v2164_v1 }
 0x51a   : > { %v3576_v16 = vmul.f32 -1.442695, %v2151_v13  ;;  %v3578_v31 = vmul.f32 -1.442695, %v2165_v44  ;;  %v7017_v53 = vld [vmem:[#allocation84_spill] sm:$0xff] }
 0x51b   : > { %3984 = vpow2.f32 %v3575_v38 }
 0x51c   : > { %3986 = vpow2.f32 %v3576_v16 }
 0x51d   : > { %3988 = vpow2.f32 %v3577_v18 }
 0x51e   : > { %3990 = vpow2.f32 %v3578_v31  ;;  %v7016_v31 = vld [vmem:[#allocation81_spill] sm:$0xff] }
 0x525   : > { %v3985_v23 = vpop.eup %3984 }
 0x526   : > { %v3987_v56 = vpop.eup %3986  ;;  %v2158_v54 = vadd.f32 1.0, %v3985_v23 }
 0x527   : > { %v2159_v30 = vadd.f32 1.0, %v3987_v56  ;;  %v3989_v19 = vpop.eup %3988 }
 0x528   : > { %3992 = vrcp.f32 %v2158_v54  ;;  %v3991_v7 = vpop.eup %3990  ;;  %v2172_v9 = vadd.f32 1.0, %v3989_v19 }
 0x529   : > { %3994 = vrcp.f32 %v2159_v30  ;;  %v2173_v3 = vadd.f32 1.0, %v3991_v7 }
 0x52a   : > { %3996 = vrcp.f32 %v2172_v9 }
 0x52b   : > { %3998 = vrcp.f32 %v2173_v3 }
 0x532   : > { %v3993_v13 = vpop.eup %3992 }
 0x533   : > { %v3995_v14 = vpop.eup %3994 }
 0x534   : > { %v3997_v56 = vpop.eup %3996 }
 0x535   : > { %v3999_v54 = vpop.eup %3998  ;;  %v2186_v30 = vsub.f32 1.0, %v3997_v56 }
 0x536   : > { %v2187_v7 = vsub.f32 1.0, %v3999_v54 }
 0x556   : > { %v2143_v46 = vpop.f32.mrb[52].mxu0 }
 0x557   : > { %v2178_v11 = vadd.f32 %v2143_v46, %v5410_v22  ;;  %v2145_v12 = vpop.f32.mrb[53].mxu0 }
 0x558   : > { %v2179_v1 = vadd.f32 %v2145_v12, %v5414_v47  ;;  %v2147_v44 = vpop.f32.mrb[54].mxu0  ;;  %v2190_v12 = vmul.f32 %v3997_v56, %v5803_v59  ;;  %v7046_v56 = vld [vmem:[#allocation42_spill] sm:$0xff]  ;;  %v7072_v59 = vld [vmem:[#allocation100_spill] sm:$0xff] }
 0x559   : > { %v2180_v16 = vmul.f32 %v3993_v13, %v2178_v11  ;;  %v2148_v18 = vpop.f32.mrb[55].mxu0  ;;  %v2191_v11 = vmul.f32 %v3999_v54, %v5805_v24  ;;  %v7047_v54 = vld [vmem:[#allocation44_spill] sm:$0xff]  ;;  %v7071_v24 = vld [vmem:[#allocation99_spill] sm:$0xff] }
 0x55a   : > { %v2181_v23 = vmul.f32 %v3995_v14, %v2179_v1  ;;  %v7040_v18 = vld [vmem:[#allocation47_spill] sm:$0xff] }
 0x55b   : > { %v2182_v38 = vadd.f32 %v2180_v16, %v7016_v31  ;;  %v7039_v16 = vld [vmem:[#allocation45_spill] sm:$0xff]  ;;  %v7042_v31 = vld [vmem:[#allocation38_spill] sm:$0xff] }
 0x55c   : > { %v2183_v2 = vadd.f32 %v2181_v23, %v7017_v53  ;;  %v7041_v23 = vld [vmem:[#allocation110_spill] sm:$0xff] }
 0x55d   : > { %4000 = vtanh.f32 %v2182_v38  ;;  %v7043_v38 = vld [vmem:[#allocation51_spill] sm:$0xff]  ;;  %v7044_v53 = vld [vmem:[#allocation50_spill] sm:$0xff] }
 0x55e   : > { %4002 = vtanh.f32 %v2183_v2  ;;  %v7045_v2 = vld [vmem:[#allocation40_spill] sm:$0xff] }
 0x567   : > { %v4001_v19 = vpop.eup %4000 }
 0x568   : > { %v4003_v46 = vpop.eup %4002  ;;  %v2188_v44 = vmul.f32 %v4001_v19, %v2186_v30  ;;  %v7048_v30 = vld [vmem:[#allocation46_spill] sm:$0xff]  ;;  %v7049_v19 = vld [vmem:[#allocation48_spill] sm:$0xff] }
 0x569   : > { %v2189_v9 = vmul.f32 %v4003_v46, %v2187_v7  ;;  %v7050_v7 = vld [vmem:[#allocation49_spill] sm:$0xff]  ;;  %v7051_v46 = vld [vmem:[#allocation90_spill] sm:$0xff] }
 0x56a   : > { %v5972_v3 = vadd.f32 %v2190_v12, %v2188_v44  ;;  %v7052_v12 = vld [vmem:[#allocation91_spill] sm:$0xff]  ;;  %v7053_v44 = vld [vmem:[#allocation92_spill] sm:$0xff] }
 0x56b   : > { %v5974_v13 = vadd.f32 %v2191_v11, %v2189_v9  ;;  %v7054_v9 = vld [vmem:[#allocation93_spill] sm:$0xff]  ;;  %v7055_v11 = vld [vmem:[#allocation72_spill] sm:$0xff] }
 0x56c   : > { %7018 = vst [vmem:[#allocation58_spill] sm:$0xff] %v5972_v3  ;;  %v5980_v14 = vpack.c.bf16 %v5972_v3, %v5972_v3 }
 0x56d   : > { %7019 = vst [vmem:[#allocation59_spill] sm:$0xff] %v5974_v13  ;;  %v2203_v1 = vpack.c.bf16 %v5974_v13, %v5974_v13 }
 0x56f   : > { %2236 = vmatprep.mubr.bf16.mxu1 %v2203_v1  ;;  %2277 = vmatprep.mubr.bf16.mxu0 %v2203_v1 }
 0x570   : > { %2237 = vmatmul.mubr.bf16.vlgmr.msra.gmra.mrb[40].mxu1 %v5980_v14  ;;  %2278 = vmatmul.mubr.bf16.vlgmr.msra.gmra.mrb[56].mxu0 %v5980_v14 }
 0x571   : > { %2287 = vmatpush1.bf16.msra.mxu1 %v5620_v5  ;;  %2318 = vmatprep.mubr.bf16.mxu1 %v2203_v1  ;;  %v7056_v1 = vld [vmem:[#allocation73_spill] sm:$0xff] }
 0x572   : > { %2288 = vmatprep.subr.bf16.mxu1 %v5623_v50  ;;  %2382 = vmatpush1.bf16.msra.mxu0 %v5437_v35  ;;  %v7020_v35 = vld [vmem:[#allocation34_spill] sm:$0xff] }
 0x573   : > { %2383 = vmatprep.subr.bf16.mxu0 %v5440_v33  ;;  %v7021_v33 = vld [vmem:[#allocation68_spill] sm:$0xff] }
 0x575   : > { %2289 = vmatpush1.bf16.msra.mxu1 %v5628_v48 }
 0x576   : > { %2290 = vmatprep.subr.bf16.mxu1 %v5631_v25  ;;  %2384 = vmatpush1.bf16.msra.mxu0 %v5445_v10  ;;  %v7022_v10 = vld [vmem:[#allocation69_spill] sm:$0xff] }
 0x577   : > { %2385 = vmatprep.subr.bf16.mxu0 %v5448_v36  ;;  %v7023_v36 = vld [vmem:[#allocation36_spill] sm:$0xff] }
 0x579   : > { %2291 = vmatpush1.bf16.msra.mxu1 %v5636_v27 }
 0x57a   : > { %2292 = vmatprep.subr.bf16.mxu1 %v5639_v17  ;;  %2386 = vmatpush1.bf16.msra.mxu0 %v5453_v39  ;;  %v7024_v39 = vld [vmem:[#allocation31_spill] sm:$0xff] }
 0x57b   : > { %2387 = vmatprep.subr.bf16.mxu0 %v5456_v37  ;;  %v7025_v37 = vld [vmem:[#allocation79_spill] sm:$0xff] }
 0x57d   : > { %2293 = vmatpush1.bf16.msra.mxu1 %v5827_v34 }
 0x57e   : > { %2294 = vmatprep.subr.bf16.mxu1 %v5830_v21  ;;  %2388 = vmatpush1.bf16.msra.mxu0 %v5461_v28  ;;  %v7026_v28 = vld [vmem:[#allocation86_spill] sm:$0xff] }
 0x57f   : > { %2389 = vmatprep.subr.bf16.mxu0 %v5464_v43  ;;  %v7027_v43 = vld [vmem:[#allocation33_spill] sm:$0xff] }
 0x581   : > { %2295 = vmatpush1.bf16.msra.mxu1 %v5835_v20 }
 0x582   : > { %2296 = vmatprep.subr.bf16.mxu1 %v5838_v58  ;;  %2390 = vmatpush1.bf16.msra.mxu0 %v5469_v42  ;;  %v7028_v42 = vld [vmem:[#allocation35_spill] sm:$0xff] }
 0x583   : > { %2391 = vmatprep.subr.bf16.mxu0 %v5472_v15  ;;  %v7029_v15 = vld [vmem:[#allocation104_spill] sm:$0xff] }
 0x585   : > { %2297 = vmatpush1.bf16.msra.mxu1 %v5843_v61 }
 0x586   : > { %2298 = vmatprep.subr.bf16.mxu1 %v5846_v52  ;;  %2392 = vmatpush1.bf16.msra.mxu0 %v6910_v32  ;;  %v7032_v32 = vld [vmem:[#allocation39_spill] sm:$0xff] }
 0x587   : > { %2393 = vmatprep.subr.bf16.mxu0 %v6911_v45  ;;  %v7033_v45 = vld [vmem:[#allocation106_spill] sm:$0xff] }
 0x589   : > { %2299 = vmatpush1.bf16.msra.mxu1 %v5851_v4 }
 0x58a   : > { %2300 = vmatprep.subr.bf16.mxu1 %v5854_v63  ;;  %2394 = vmatpush1.bf16.msra.mxu0 %v6912_v8  ;;  %v7034_v8 = vld [vmem:[#allocation107_spill] sm:$0xff] }
 0x58b   : > { %2395 = vmatprep.subr.bf16.mxu0 %v6913_v29  ;;  %v7035_v29 = vld [vmem:[#allocation41_spill] sm:$0xff] }
 0x58d   : > { %2301 = vmatpush1.bf16.msra.mxu1 %v5859_v6 }
 0x58e   : > { %2302 = vmatprep.subr.bf16.mxu1 %v5862_v60  ;;  %2396 = vmatpush1.bf16.msra.mxu0 %v6914_v41  ;;  %v7036_v41 = vld [vmem:[#allocation43_spill] sm:$0xff] }
 0x58f   : > { %2397 = vmatprep.subr.bf16.mxu0 %v6915_v55  ;;  %v7037_v55 = vld [vmem:[#allocation108_spill] sm:$0xff] }
 0x591   : > { %2303 = vmatpush1.bf16.msra.mxu1 %v5867_v0 }
 0x592   : > { %2304 = vmatprep.subr.bf16.mxu1 %v5870_v57  ;;  %2398 = vmatpush1.bf16.msra.mxu0 %v6916_v51  ;;  %v7038_v51 = vld [vmem:[#allocation109_spill] sm:$0xff] }
 0x593   : > { %2399 = vmatprep.subr.bf16.mxu0 %v5504_v49  ;;  %v7031_v49 = vld [vmem:[#allocation37_spill] sm:$0xff] }
 0x595   : > { %2305 = vmatpush1.bf16.msra.mxu1 %v5875_v26 }
 0x596   : > { %2306 = vmatprep.subr.bf16.mxu1 %v5878_v62  ;;  %2400 = vmatpush1.bf16.msra.mxu0 %v5509_v40  ;;  %v7030_v40 = vld [vmem:[#allocation105_spill] sm:$0xff] }
 0x597   : > { %2401 = vmatprep.subr.bf16.mxu0 %v7020_v35  ;;  %v7058_v35 = vld [vmem:[#allocation88_spill] sm:$0xff] }
 0x599   : > { %2307 = vmatpush1.bf16.msra.mxu1 %v7021_v33 }
 0x59a   : > { %2308 = vmatprep.subr.bf16.mxu1 %v7022_v10  ;;  %2402 = vmatpush1.bf16.msra.mxu0 %v7023_v36  ;;  %v7059_v36 = vld [vmem:[#allocation21_spill] sm:$0xff] }
 0x59b   : > { %2403 = vmatprep.subr.bf16.mxu0 %v7024_v39 }
 0x59d   : > { %2309 = vmatpush1.bf16.msra.mxu1 %v7025_v37 }
 0x59e   : > { %2310 = vmatprep.subr.bf16.mxu1 %v7026_v28  ;;  %2404 = vmatpush1.bf16.msra.mxu0 %v7027_v43 }
 0x59f   : > { %2405 = vmatprep.subr.bf16.mxu0 %v7028_v42 }
 0x5a1   : > { %2311 = vmatpush1.bf16.msra.mxu1 %v7029_v15 }
 0x5a2   : > { %2312 = vmatprep.subr.bf16.mxu1 %v7030_v40  ;;  %2406 = vmatpush1.bf16.msra.mxu0 %v7031_v49 }
 0x5a3   : > { %2407 = vmatprep.subr.bf16.mxu0 %v7032_v32 }
 0x5a5   : > { %2313 = vmatpush1.bf16.msra.mxu1 %v7033_v45 }
 0x5a6   : > { %2314 = vmatprep.subr.bf16.mxu1 %v7034_v8  ;;  %2408 = vmatpush1.bf16.msra.mxu0 %v7035_v29 }
 0x5a7   : > { %2409 = vmatprep.subr.bf16.mxu0 %v7036_v41 }
 0x5a9   : > { %2315 = vmatpush1.bf16.msra.mxu1 %v7037_v55 }
 0x5aa   : > { %2316 = vmatprep.subr.bf16.mxu1 %v7038_v51  ;;  %2410 = vmatpush1.bf16.msra.mxu0 %v7039_v16 }
 0x5ab   : > { %2411 = vmatprep.subr.bf16.mxu0 %v7040_v18 }
 0x5ad   : > { %2317 = vmatpush1.bf16.msra.mxu1 %v7041_v23 }
 0x5ae   : > { %2422 = vmatprep.subr.bf16.mxu1 %v7042_v31  ;;  %2412 = vmatpush1.bf16.msra.mxu0 %v7043_v38  ;;  %v7060_v31 = vld [vmem:[#allocation23_spill] sm:$0xff] }
 0x5af   : > { %2463 = vmatprep.subr.bf16.mxu0 %v7044_v53 }
 0x5b0   : > { %2319 = vmatmul.mubr.bf16.vlgmr.msra.gmra.mrb[44].mxu1 %v5980_v14  ;;  %v7057_v14 = vld [vmem:[#allocation77_spill] sm:$0xff] }
 0x5b1   : > { %2423 = vmatpush1.bf16.msra.mxu1 %v7045_v2  ;;  %v7061_v2 = vld [vmem:[#allocation24_spill] sm:$0xff] }
 0x5b2   : > { %2424 = vmatprep.subr.bf16.mxu1 %v7046_v56  ;;  %v7062_v56 = vld [vmem:[#allocation26_spill] sm:$0xff] }
 0x5b5   : > { %2425 = vmatpush1.bf16.msra.mxu1 %v7047_v54  ;;  %v7063_v54 = vld [vmem:[#allocation28_spill] sm:$0xff] }
 0x5b6   : > { %2426 = vmatprep.subr.bf16.mxu1 %v7048_v30  ;;  %v7064_v30 = vld [vmem:[#allocation30_spill] sm:$0xff] }
 0x5b9   : > { %2427 = vmatpush1.bf16.msra.mxu1 %v7049_v19  ;;  %v7065_v19 = vld [vmem:[#allocation32_spill] sm:$0xff] }
 0x5ba   : > { %2428 = vmatprep.subr.bf16.mxu1 %v7050_v7  ;;  %v7066_v7 = vld [vmem:[#allocation94_spill] sm:$0xff] }
 0x5bd   : > { %2429 = vmatpush1.bf16.msra.mxu1 %v7051_v46  ;;  %v7067_v46 = vld [vmem:[#allocation95_spill] sm:$0xff] }
 0x5be   : > { %2430 = vmatprep.subr.bf16.mxu1 %v7052_v12  ;;  %v7068_v12 = vld [vmem:[#allocation96_spill] sm:$0xff] }
 0x5c1   : > { %2431 = vmatpush1.bf16.msra.mxu1 %v7053_v44  ;;  %v7069_v44 = vld [vmem:[#allocation97_spill] sm:$0xff] }
 0x5c2   : > { %2432 = vmatprep.subr.bf16.mxu1 %v7054_v9  ;;  %v7070_v9 = vld [vmem:[#allocation98_spill] sm:$0xff] }
 0x5c5   : > { %2433 = vmatpush1.bf16.msra.mxu1 %v7055_v11 }
 0x5c6   : > { %2434 = vmatprep.subr.bf16.mxu1 %v7056_v1 }
 0x5c9   : > { %2435 = vmatpush1.bf16.msra.mxu1 %v7057_v14  ;;  %v7080_v14 = vld [vmem:[#allocation61_spill] sm:$0xff] }
 0x5ca   : > { %2436 = vmatprep.subr.bf16.mxu1 %v7058_v35  ;;  %v7079_v35 = vld [vmem:[#allocation60_spill] sm:$0xff] }
 0x5cd   : > { %2437 = vmatpush1.bf16.msra.mxu1 %v7059_v36 }
 0x5ce   : > { %2438 = vmatprep.subr.bf16.mxu1 %v7060_v31  ;;  %v7078_v31 = vld [vmem:[#allocation63_spill] sm:$0xff] }
 0x5d1   : > { %2439 = vmatpush1.bf16.msra.mxu1 %v7061_v2  ;;  %v7077_v2 = vld [vmem:[#allocation62_spill] sm:$0xff] }
 0x5d2   : > { %2440 = vmatprep.subr.bf16.mxu1 %v7062_v56  ;;  %v7073_v56 = vld [vmem:[#allocation101_spill] sm:$0xff] }
 0x5d5   : > { %2441 = vmatpush1.bf16.msra.mxu1 %v7063_v54  ;;  %v7074_v54 = vld [vmem:[#allocation102_spill] sm:$0xff] }
 0x5d6   : > { %2442 = vmatprep.subr.bf16.mxu1 %v7064_v30  ;;  %v7075_v30 = vld [vmem:[#allocation103_spill] sm:$0xff] }
 0x5d9   : > { %2443 = vmatpush1.bf16.msra.mxu1 %v7065_v19  ;;  %v7076_v19 = vld [vmem:[#allocation25_spill] sm:$0xff] }
 0x5da   : > { %2444 = vmatprep.subr.bf16.mxu1 %v7066_v7 }
 0x5dd   : > { %2445 = vmatpush1.bf16.msra.mxu1 %v7067_v46 }
 0x5de   : > { %2446 = vmatprep.subr.bf16.mxu1 %v7068_v12 }
 0x5e1   : > { %2447 = vmatpush1.bf16.msra.mxu1 %v7069_v44 }
 0x5e2   : > { %2448 = vmatprep.subr.bf16.mxu1 %v7070_v9 }
 0x5e5   : > { %2449 = vmatpush1.bf16.msra.mxu1 %v7071_v24 }
 0x5e6   : > { %2450 = vmatprep.subr.bf16.mxu1 %v7072_v59 }
 0x5e9   : > { %2451 = vmatpush1.bf16.msra.mxu1 %v7073_v56 }
 0x5ea   : > { %2452 = vmatprep.subr.bf16.mxu1 %v7074_v54 }
 0x5ed   : > { %2453 = vmatpush1.bf16.msra.mxu1 %v7075_v30 }
 0x5ee   : > { %2558 = vmatprep.subr.bf16.mxu1 %v7076_v19 }
 0x643   : > { %v2238_v7 = vpop.f32.mrb[40].mxu1  ;;  %v2279_v46 = vpop.f32.mrb[56].mxu0 }
 0x644   : > { %v2327_v12 = vadd.f32 %v2238_v7, %v7077_v2  ;;  %v2341_v44 = vadd.f32 %v2279_v46, %v7078_v31  ;;  %v2240_v36 = vpop.f32.mrb[41].mxu1  ;;  %v2281_v9 = vpop.f32.mrb[57].mxu0 }
 0x645   : > { %v2328_v24 = vadd.f32 %v2240_v36, %v7079_v35  ;;  %v2342_v59 = vadd.f32 %v2281_v9, %v7080_v14  ;;  %v2242_v1 = vpop.f32.mrb[42].mxu1  ;;  %v2283_v56 = vpop.f32.mrb[58].mxu0  ;;  %v7082_v9 = vld [vmem:[#allocation82_spill] sm:$0xff] }
 0x646   : > { %v2243_v11 = vpop.f32.mrb[43].mxu1  ;;  %v2284_v54 = vpop.f32.mrb[59].mxu0  ;;  %v3579_v53 = vmul.f32 -1.442695, %v2327_v12  ;;  %v3581_v19 = vmul.f32 -1.442695, %v2341_v44 }
 0x647   : > { %v3580_v30 = vmul.f32 -1.442695, %v2328_v24  ;;  %v3582_v38 = vmul.f32 -1.442695, %v2342_v59  ;;  %v7081_v12 = vld [vmem:[#allocation83_spill] sm:$0xff] }
 0x648   : > { %4004 = vpow2.f32 %v3579_v53 }
 0x649   : > { %4006 = vpow2.f32 %v3580_v30 }
 0x64a   : > { %4008 = vpow2.f32 %v3581_v19 }
 0x64b   : > { %4010 = vpow2.f32 %v3582_v38 }
 0x652   : > { %v4005_v23 = vpop.eup %4004 }
 0x653   : > { %v4007_v2 = vpop.eup %4006  ;;  %v2335_v31 = vadd.f32 1.0, %v4005_v23 }
 0x654   : > { %v2336_v7 = vadd.f32 1.0, %v4007_v2  ;;  %v4009_v35 = vpop.eup %4008 }
 0x655   : > { %4012 = vrcp.f32 %v2335_v31  ;;  %v4011_v14 = vpop.eup %4010  ;;  %v2349_v1 = vadd.f32 1.0, %v4009_v35 }
 0x656   : > { %4014 = vrcp.f32 %v2336_v7  ;;  %v2350_v36 = vadd.f32 1.0, %v4011_v14 }
 0x657   : > { %4016 = vrcp.f32 %v2349_v1 }
 0x658   : > { %4018 = vrcp.f32 %v2350_v36 }
 0x65f   : > { %v4013_v53 = vpop.eup %4012 }
 0x660   : > { %v4015_v30 = vpop.eup %4014 }
 0x661   : > { %v4017_v2 = vpop.eup %4016 }
 0x662   : > { %v4019_v31 = vpop.eup %4018  ;;  %v2363_v7 = vsub.f32 1.0, %v4017_v2 }
 0x663   : > { %v2364_v14 = vsub.f32 1.0, %v4019_v31 }
 0x683   : > { %v2320_v11 = vpop.f32.mrb[44].mxu1 }
 0x684   : > { %v2355_v56 = vadd.f32 %v2320_v11, %v5410_v22  ;;  %v2322_v24 = vpop.f32.mrb[45].mxu1 }
 0x685   : > { %v2356_v54 = vadd.f32 %v2322_v24, %v5414_v47  ;;  %v2324_v59 = vpop.f32.mrb[46].mxu1  ;;  %v2367_v24 = vmul.f32 %v4017_v2, %v5972_v3  ;;  %v6156_v2 = vld [vmem:[#allocation6 + $0x154] ss:$24 sps:$4 sm:$0xff]   ;;  %v7099_v3 = vld [vmem:[#allocation77_spill] sm:$0xff] }
 0x686   : > { %v2357_v46 = vmul.f32 %v4013_v53, %v2355_v56  ;;  %v2325_v38 = vpop.f32.mrb[47].mxu1  ;;  %v2368_v56 = vmul.f32 %v4019_v31, %v5974_v13  ;;  %v6161_v31 = vld [vmem:[#allocation6 + $0x150] ss:$24 sps:$4 sm:$0xff]   ;;  %v7098_v13 = vld [vmem:[#allocation73_spill] sm:$0xff] }
 0x687   : > { %v2358_v23 = vmul.f32 %v4015_v30, %v2356_v54  ;;  %v6108_v38 = vld [vmem:[#allocation6 + $0x34] ss:$24 sps:$4 sm:$0xff]  }
 0x688   : > { %v2359_v44 = vadd.f32 %v2357_v46, %v7081_v12  ;;  %v6105_v46 = vld [vmem:[#allocation6] ss:$24 sps:$4 sm:$0xff]   ;;  %v6124_v12 = vld [vmem:[#allocation6 + $0x94] ss:$24 sps:$4 sm:$0xff]  }
 0x689   : > { %v2360_v19 = vadd.f32 %v2358_v23, %v7082_v9  ;;  %v6113_v23 = vld [vmem:[#allocation6 + $0x30] ss:$24 sps:$4 sm:$0xff]   ;;  %v6148_v9 = vld [vmem:[#allocation6 + $0x124] ss:$24 sps:$4 sm:$0xff]  }
 0x68a   : > { %4020 = vtanh.f32 %v2359_v44  ;;  %v6145_v44 = vld [vmem:[#allocation6 + $0xf0] ss:$24 sps:$4 sm:$0xff]  }
 0x68b   : > { %4022 = vtanh.f32 %v2360_v19  ;;  %v6153_v19 = vld [vmem:[#allocation6 + $0x120] ss:$24 sps:$4 sm:$0xff]  }
 0x694   : > { %v4021_v35 = vpop.eup %4020 }
 0x695   : > { %v4023_v11 = vpop.eup %4022  ;;  %v2365_v59 = vmul.f32 %v4021_v35, %v2363_v7  ;;  %v6164_v7 = vld [vmem:[#allocation6 + $0x184] ss:$24 sps:$4 sm:$0xff]   ;;  %v6169_v35 = vld [vmem:[#allocation6 + $0x180] ss:$24 sps:$4 sm:$0xff]  }
 0x696   : > { %v2366_v1 = vmul.f32 %v4023_v11, %v2364_v14  ;;  %v6172_v14 = vld [vmem:[#allocation6 + $0x1b4] ss:$24 sps:$4 sm:$0xff]   ;;  %v6177_v11 = vld [vmem:[#allocation6 + $0x1b0] ss:$24 sps:$4 sm:$0xff]  }
 0x697   : > { %v6091_v36 = vadd.f32 %v2367_v24, %v2365_v59  ;;  %v6180_v24 = vld [vmem:[#allocation6 + $0x1e4] ss:$24 sps:$4 sm:$0xff]   ;;  %v6185_v59 = vld [vmem:[#allocation6 + $0x1e0] ss:$24 sps:$4 sm:$0xff]  }
 0x698   : > { %v6093_v53 = vadd.f32 %v2368_v56, %v2366_v1  ;;  %v6227_v1 = vld [vmem:[#allocation6 + $0x9c] ss:$24 sps:$4 sm:$0xff]   ;;  %v6230_v56 = vld [vmem:[#allocation6 + $0x98] ss:$24 sps:$4 sm:$0xff]  }
 0x699   : > { %v6099_v30 = vpack.c.bf16 %v6091_v36, %v6091_v36  ;;  %7092 = vst [vmem:[#allocation69_spill] sm:$0xff] %v6227_v1  ;;  %7093 = vst [vmem:[#allocation36_spill] sm:$0xff] %v6230_v56 }
 0x69a   : > { %v2380_v54 = vpack.c.bf16 %v6093_v53, %v6093_v53 }
 0x69c   : > { %2413 = vmatprep.mubr.bf16.mxu0 %v2380_v54  ;;  %2454 = vmatprep.mubr.bf16.mxu1 %v2380_v54 }
 0x69d   : > { %2414 = vmatmul.mubr.bf16.vlgmr.msra.gmra.mrb[60].mxu0 %v6099_v30  ;;  %2455 = vmatmul.mubr.bf16.vlgmr.msra.gmra.mrb[48].mxu1 %v6099_v30 }
 0x69e   : > { %2464 = vmatpush1.bf16.msra.mxu0 %v5620_v5  ;;  %2495 = vmatprep.mubr.bf16.mxu0 %v2380_v54  ;;  %v6116_v5 = vld [vmem:[#allocation6 + $0x64] ss:$24 sps:$4 sm:$0xff]  }
 0x69f   : > { %2465 = vmatprep.subr.bf16.mxu0 %v5623_v50  ;;  %2559 = vmatpush1.bf16.msra.mxu1 %v6105_v46  ;;  %v6121_v50 = vld [vmem:[#allocation6 + $0x60] ss:$24 sps:$4 sm:$0xff]   ;;  %v6233_v54 = vld [vmem:[#allocation6 + $0xcc] ss:$24 sps:$4 sm:$0xff]  }
 0x6a0   : > { %2560 = vmatprep.subr.bf16.mxu1 %v6108_v38  ;;  %7094 = vst [vmem:[#allocation31_spill] sm:$0xff] %v6233_v54 }
 0x6a2   : > { %2466 = vmatpush1.bf16.msra.mxu0 %v5628_v48  ;;  %v6129_v48 = vld [vmem:[#allocation6 + $0x90] ss:$24 sps:$4 sm:$0xff]  }
 0x6a3   : > { %2467 = vmatprep.subr.bf16.mxu0 %v5631_v25  ;;  %2561 = vmatpush1.bf16.msra.mxu1 %v6113_v23  ;;  %v6132_v25 = vld [vmem:[#allocation6 + $0xc4] ss:$24 sps:$4 sm:$0xff]  }
 0x6a4   : > { %2562 = vmatprep.subr.bf16.mxu1 %v6116_v5 }
 0x6a6   : > { %2468 = vmatpush1.bf16.msra.mxu0 %v5636_v27  ;;  %v6137_v27 = vld [vmem:[#allocation6 + $0xc0] ss:$24 sps:$4 sm:$0xff]  }
 0x6a7   : > { %2469 = vmatprep.subr.bf16.mxu0 %v5639_v17  ;;  %2563 = vmatpush1.bf16.msra.mxu1 %v6121_v50  ;;  %v6140_v17 = vld [vmem:[#allocation6 + $0xf4] ss:$24 sps:$4 sm:$0xff]  }
 0x6a8   : > { %2564 = vmatprep.subr.bf16.mxu1 %v6124_v12 }
 0x6aa   : > { %2470 = vmatpush1.bf16.msra.mxu0 %v5827_v34 }
 0x6ab   : > { %2471 = vmatprep.subr.bf16.mxu0 %v5830_v21  ;;  %2565 = vmatpush1.bf16.msra.mxu1 %v6129_v48 }
 0x6ac   : > { %2566 = vmatprep.subr.bf16.mxu1 %v6132_v25 }
 0x6ae   : > { %2472 = vmatpush1.bf16.msra.mxu0 %v5835_v20 }
 0x6af   : > { %2473 = vmatprep.subr.bf16.mxu0 %v5838_v58  ;;  %2567 = vmatpush1.bf16.msra.mxu1 %v6137_v27 }
 0x6b0   : > { %2568 = vmatprep.subr.bf16.mxu1 %v6140_v17 }
 0x6b2   : > { %2474 = vmatpush1.bf16.msra.mxu0 %v5843_v61 }
 0x6b3   : > { %2475 = vmatprep.subr.bf16.mxu0 %v5846_v52  ;;  %2569 = vmatpush1.bf16.msra.mxu1 %v6145_v44 }
 0x6b4   : > { %2570 = vmatprep.subr.bf16.mxu1 %v6148_v9 }
 0x6b6   : > { %2476 = vmatpush1.bf16.msra.mxu0 %v5851_v4 }
 0x6b7   : > { %2477 = vmatprep.subr.bf16.mxu0 %v5854_v63  ;;  %2571 = vmatpush1.bf16.msra.mxu1 %v6153_v19 }
 0x6b8   : > { %2572 = vmatprep.subr.bf16.mxu1 %v6156_v2 }
 0x6ba   : > { %2478 = vmatpush1.bf16.msra.mxu0 %v5859_v6 }
 0x6bb   : > { %2479 = vmatprep.subr.bf16.mxu0 %v5862_v60  ;;  %2573 = vmatpush1.bf16.msra.mxu1 %v6161_v31 }
 0x6bc   : > { %2574 = vmatprep.subr.bf16.mxu1 %v6164_v7 }
 0x6be   : > { %2480 = vmatpush1.bf16.msra.mxu0 %v5867_v0 }
 0x6bf   : > { %2481 = vmatprep.subr.bf16.mxu0 %v5870_v57  ;;  %2575 = vmatpush1.bf16.msra.mxu1 %v6169_v35 }
 0x6c0   : > { %2576 = vmatprep.subr.bf16.mxu1 %v6172_v14 }
 0x6c2   : > { %2482 = vmatpush1.bf16.msra.mxu0 %v5875_v26 }
 0x6c3   : > { %2483 = vmatprep.subr.bf16.mxu0 %v5878_v62  ;;  %2577 = vmatpush1.bf16.msra.mxu1 %v6177_v11 }
 0x6c4   : > { %2578 = vmatprep.subr.bf16.mxu1 %v6180_v24 }
 0x6c6   : > { %2484 = vmatpush1.bf16.msra.mxu0 %v7021_v33 }
 0x6c7   : > { %2485 = vmatprep.subr.bf16.mxu0 %v7022_v10  ;;  %2579 = vmatpush1.bf16.msra.mxu1 %v6185_v59 }
 0x6c8   : > { %2580 = vmatprep.subr.bf16.mxu1 %v7024_v39  ;;  %v7083_v39 = vld [vmem:[#allocation110_spill] sm:$0xff] }
 0x6ca   : > { %2486 = vmatpush1.bf16.msra.mxu0 %v7025_v37 }
 0x6cb   : > { %2487 = vmatprep.subr.bf16.mxu0 %v7026_v28  ;;  %2581 = vmatpush1.bf16.msra.mxu1 %v7027_v43  ;;  %v6206_v43 = vld [vmem:[#allocation6 + $0xc] ss:$24 sps:$4 sm:$0xff]  }
 0x6cc   : > { %2582 = vmatprep.subr.bf16.mxu1 %v7028_v42  ;;  %7084 = vst [vmem:[#allocation64_spill] sm:$0xff] %v6206_v43  ;;  %v7085_v42 = vld [vmem:[#allocation51_spill] sm:$0xff] }
 0x6ce   : > { %2488 = vmatpush1.bf16.msra.mxu0 %v7029_v15 }
 0x6cf   : > { %2489 = vmatprep.subr.bf16.mxu0 %v7030_v40  ;;  %2583 = vmatpush1.bf16.msra.mxu1 %v7031_v49  ;;  %v7086_v49 = vld [vmem:[#allocation50_spill] sm:$0xff] }
 0x6d0   : > { %2584 = vmatprep.subr.bf16.mxu1 %v7032_v32  ;;  %v6212_v32 = vld [vmem:[#allocation6 + $0x8] ss:$24 sps:$4 sm:$0xff]  }
 0x6d1   : > { %7087 = vst [vmem:[#allocation65_spill] sm:$0xff] %v6212_v32 }
 0x6d2   : > { %2490 = vmatpush1.bf16.msra.mxu0 %v7033_v45 }
 0x6d3   : > { %2491 = vmatprep.subr.bf16.mxu0 %v7034_v8  ;;  %2585 = vmatpush1.bf16.msra.mxu1 %v7035_v29  ;;  %v6215_v29 = vld [vmem:[#allocation6 + $0x3c] ss:$24 sps:$4 sm:$0xff]  }
 0x6d4   : > { %2586 = vmatprep.subr.bf16.mxu1 %v7036_v41  ;;  %7088 = vst [vmem:[#allocation81_spill] sm:$0xff] %v6215_v29  ;;  %v6218_v41 = vld [vmem:[#allocation6 + $0x38] ss:$24 sps:$4 sm:$0xff]  }
 0x6d5   : > { %7089 = vst [vmem:[#allocation84_spill] sm:$0xff] %v6218_v41 }
 0x6d6   : > { %2492 = vmatpush1.bf16.msra.mxu0 %v7037_v55 }
 0x6d7   : > { %2493 = vmatprep.subr.bf16.mxu0 %v7038_v51  ;;  %2587 = vmatpush1.bf16.msra.mxu1 %v7039_v16  ;;  %v6221_v16 = vld [vmem:[#allocation6 + $0x6c] ss:$24 sps:$4 sm:$0xff]   ;;  %v7121_v51 = vld [vmem:[#allocation57_spill] sm:$0xff] }
 0x6d8   : > { %2588 = vmatprep.subr.bf16.mxu1 %v7040_v18  ;;  %7090 = vst [vmem:[#allocation34_spill] sm:$0xff] %v6221_v16  ;;  %v6224_v18 = vld [vmem:[#allocation6 + $0x68] ss:$24 sps:$4 sm:$0xff]  }
 0x6d9   : > { %7091 = vst [vmem:[#allocation68_spill] sm:$0xff] %v6224_v18 }
 0x6da   : > { %2494 = vmatpush1.bf16.msra.mxu0 %v7083_v39  ;;  %v7120_v39 = vld [vmem:[#allocation56_spill] sm:$0xff] }
 0x6db   : > { %2599 = vmatprep.subr.bf16.mxu0 %v6206_v43  ;;  %2589 = vmatpush1.bf16.msra.mxu1 %v7085_v42  ;;  %v6239_v42 = vld [vmem:[#allocation6 + $0xfc] ss:$24 sps:$4 sm:$0xff]  }
 0x6dc   : > { %2640 = vmatprep.subr.bf16.mxu1 %v7086_v49  ;;  %7096 = vst [vmem:[#allocation86_spill] sm:$0xff] %v6239_v42  ;;  %v7097_v49 = vld [vmem:[#allocation72_spill] sm:$0xff] }
 0x6dd   : > { %2496 = vmatmul.mubr.bf16.vlgmr.msra.gmra.mrb[64].mxu0 %v6099_v30  ;;  %v6236_v30 = vld [vmem:[#allocation6 + $0xc8] ss:$24 sps:$4 sm:$0xff]  }
 0x6de   : > { %2600 = vmatpush1.bf16.msra.mxu0 %v6212_v32  ;;  %7095 = vst [vmem:[#allocation79_spill] sm:$0xff] %v6236_v30  ;;  %v7119_v32 = vld [vmem:[#allocation67_spill] sm:$0xff] }
 0x6df   : > { %2601 = vmatprep.subr.bf16.mxu0 %v6215_v29  ;;  %v7118_v29 = vld [vmem:[#allocation66_spill] sm:$0xff] }
 0x6e2   : > { %2602 = vmatpush1.bf16.msra.mxu0 %v6218_v41  ;;  %v7106_v41 = vld [vmem:[#allocation30_spill] sm:$0xff] }
 0x6e3   : > { %2603 = vmatprep.subr.bf16.mxu0 %v6221_v16  ;;  %v7104_v16 = vld [vmem:[#allocation26_spill] sm:$0xff] }
 0x6e6   : > { %2604 = vmatpush1.bf16.msra.mxu0 %v6224_v18  ;;  %v7102_v18 = vld [vmem:[#allocation23_spill] sm:$0xff] }
 0x6e7   : > { %2605 = vmatprep.subr.bf16.mxu0 %v6227_v1  ;;  %v7100_v1 = vld [vmem:[#allocation88_spill] sm:$0xff] }
 0x6ea   : > { %2606 = vmatpush1.bf16.msra.mxu0 %v6230_v56  ;;  %v7101_v56 = vld [vmem:[#allocation21_spill] sm:$0xff] }
 0x6eb   : > { %2607 = vmatprep.subr.bf16.mxu0 %v6233_v54  ;;  %v7103_v54 = vld [vmem:[#allocation24_spill] sm:$0xff] }
 0x6ee   : > { %2608 = vmatpush1.bf16.msra.mxu0 %v6236_v30  ;;  %v7105_v30 = vld [vmem:[#allocation28_spill] sm:$0xff] }
 0x6ef   : > { %2609 = vmatprep.subr.bf16.mxu0 %v6239_v42  ;;  %v7107_v42 = vld [vmem:[#allocation32_spill] sm:$0xff] }
 0x6f2   : > { %2610 = vmatpush1.bf16.msra.mxu0 %v7097_v49  ;;  %v7108_v49 = vld [vmem:[#allocation94_spill] sm:$0xff] }
 0x6f3   : > { %2611 = vmatprep.subr.bf16.mxu0 %v7098_v13  ;;  %v7109_v13 = vld [vmem:[#allocation95_spill] sm:$0xff] }
 0x6f6   : > { %2612 = vmatpush1.bf16.msra.mxu0 %v7099_v3  ;;  %v7110_v3 = vld [vmem:[#allocation96_spill] sm:$0xff] }
 0x6f7   : > { %2613 = vmatprep.subr.bf16.mxu0 %v7100_v1  ;;  %v7111_v1 = vld [vmem:[#allocation97_spill] sm:$0xff] }
 0x6fa   : > { %2614 = vmatpush1.bf16.msra.mxu0 %v7101_v56  ;;  %v7112_v56 = vld [vmem:[#allocation98_spill] sm:$0xff] }
 0x6fb   : > { %2615 = vmatprep.subr.bf16.mxu0 %v7102_v18  ;;  %v7113_v18 = vld [vmem:[#allocation99_spill] sm:$0xff] }
 0x6fe   : > { %2616 = vmatpush1.bf16.msra.mxu0 %v7103_v54  ;;  %v7114_v54 = vld [vmem:[#allocation100_spill] sm:$0xff] }
 0x6ff   : > { %2617 = vmatprep.subr.bf16.mxu0 %v7104_v16  ;;  %v7115_v16 = vld [vmem:[#allocation101_spill] sm:$0xff] }
 0x702   : > { %2618 = vmatpush1.bf16.msra.mxu0 %v7105_v30  ;;  %v7116_v30 = vld [vmem:[#allocation102_spill] sm:$0xff] }
 0x703   : > { %2619 = vmatprep.subr.bf16.mxu0 %v7106_v41  ;;  %v7117_v41 = vld [vmem:[#allocation103_spill] sm:$0xff] }
 0x706   : > { %2620 = vmatpush1.bf16.msra.mxu0 %v7107_v42  ;;  %v4262_v42 = vld [vmem:[#allocation6 + $0x4] ss:$24 sps:$4 sm:$0xff]  }
 0x707   : > { %2621 = vmatprep.subr.bf16.mxu0 %v7108_v49 }
 0x70a   : > { %2622 = vmatpush1.bf16.msra.mxu0 %v7109_v13 }
 0x70b   : > { %2623 = vmatprep.subr.bf16.mxu0 %v7110_v3 }
 0x70e   : > { %2624 = vmatpush1.bf16.msra.mxu0 %v7111_v1 }
 0x70f   : > { %2625 = vmatprep.subr.bf16.mxu0 %v7112_v56 }
 0x712   : > { %2626 = vmatpush1.bf16.msra.mxu0 %v7113_v18 }
 0x713   : > { %2627 = vmatprep.subr.bf16.mxu0 %v7114_v54 }
 0x716   : > { %2628 = vmatpush1.bf16.msra.mxu0 %v7115_v16 }
 0x717   : > { %2629 = vmatprep.subr.bf16.mxu0 %v7116_v30 }
 0x71a   : > { %2630 = vmatpush1.bf16.msra.mxu0 %v7117_v41 }
 0x71b   : > { %2735 = vmatprep.subr.bf16.mxu0 %v4262_v42 }
 0x770   : > { %v2415_v49 = vpop.f32.mrb[60].mxu0  ;;  %v2456_v13 = vpop.f32.mrb[48].mxu1 }
 0x771   : > { %v2504_v3 = vadd.f32 %v2415_v49, %v7118_v29  ;;  %v2518_v1 = vadd.f32 %v2456_v13, %v7119_v32  ;;  %v2417_v43 = vpop.f32.mrb[61].mxu0  ;;  %v2458_v56 = vpop.f32.mrb[49].mxu1 }
 0x772   : > { %v2505_v18 = vadd.f32 %v2417_v43, %v7120_v39  ;;  %v2519_v54 = vadd.f32 %v2458_v56, %v7121_v51  ;;  %v2419_v55 = vpop.f32.mrb[62].mxu0  ;;  %v2460_v16 = vpop.f32.mrb[50].mxu1 }
 0x773   : > { %v2420_v8 = vpop.f32.mrb[63].mxu0  ;;  %v2461_v30 = vpop.f32.mrb[51].mxu1  ;;  %v3583_v45 = vmul.f32 -1.442695, %v2504_v3  ;;  %v3585_v42 = vmul.f32 -1.442695, %v2518_v1 }
 0x774   : > { %v3584_v41 = vmul.f32 -1.442695, %v2505_v18  ;;  %v3586_v40 = vmul.f32 -1.442695, %v2519_v54  ;;  %v7122_v16 = vld [vmem:[#allocation85_spill] sm:$0xff] }
 0x775   : > { %4024 = vpow2.f32 %v3583_v45 }
 0x776   : > { %4026 = vpow2.f32 %v3584_v41  ;;  %v7123_v41 = vld [vmem:[#allocation80_spill] sm:$0xff] }
 0x777   : > { %4028 = vpow2.f32 %v3585_v42 }
 0x778   : > { %4030 = vpow2.f32 %v3586_v40 }
 0x77f   : > { %v4025_v15 = vpop.eup %4024 }
 0x780   : > { %v4027_v29 = vpop.eup %4026  ;;  %v2512_v32 = vadd.f32 1.0, %v4025_v15 }
 0x781   : > { %v2513_v49 = vadd.f32 1.0, %v4027_v29  ;;  %v4029_v39 = vpop.eup %4028 }
 0x782   : > { %4032 = vrcp.f32 %v2512_v32  ;;  %v4031_v51 = vpop.eup %4030  ;;  %v2526_v55 = vadd.f32 1.0, %v4029_v39 }
 0x783   : > { %4034 = vrcp.f32 %v2513_v49  ;;  %v2527_v43 = vadd.f32 1.0, %v4031_v51 }
 0x784   : > { %4036 = vrcp.f32 %v2526_v55 }
 0x785   : > { %4038 = vrcp.f32 %v2527_v43 }
 0x78c   : > { %v4033_v45 = vpop.eup %4032 }
 0x78d   : > { %v4035_v18 = vpop.eup %4034 }
 0x78e   : > { %v4037_v29 = vpop.eup %4036 }
 0x78f   : > { %v4039_v32 = vpop.eup %4038  ;;  %v2540_v49 = vsub.f32 1.0, %v4037_v29 }
 0x790   : > { %v2541_v51 = vsub.f32 1.0, %v4039_v32 }
 0x7b0   : > { %v2497_v8 = vpop.f32.mrb[64].mxu0 }
 0x7b1   : > { %v2532_v13 = vadd.f32 %v2497_v8, %v5410_v22  ;;  %v2499_v3 = vpop.f32.mrb[65].mxu0 }
 0x7b2   : > { %v2533_v1 = vadd.f32 %v2499_v3, %v5414_v47  ;;  %v2501_v56 = vpop.f32.mrb[66].mxu0  ;;  %v2544_v3 = vmul.f32 %v4037_v29, %v6091_v36  ;;  %v4291_v29 = vld [vmem:[#allocation6 + $0x21c] ss:$24 sps:$4 sm:$0xff]  }
 0x7b3   : > { %v2534_v54 = vmul.f32 %v4033_v45, %v2532_v13  ;;  %v2502_v40 = vpop.f32.mrb[67].mxu0  ;;  %v2545_v13 = vmul.f32 %v4039_v32, %v6093_v53  ;;  %v4292_v32 = vld [vmem:[#allocation6 + $0x218] ss:$24 sps:$4 sm:$0xff]  }
 0x7b4   : > { %v2535_v15 = vmul.f32 %v4035_v18, %v2533_v1  ;;  %v6288_v40 = vld [vmem:[#allocation6 + $0x44] ss:$24 sps:$4 sm:$0xff]  }
 0x7b5   : > { %v2536_v30 = vadd.f32 %v2534_v54, %v7122_v16  ;;  %v6285_v54 = vld [vmem:[#allocation6 + $0x10] ss:$24 sps:$4 sm:$0xff]   ;;  %v6296_v16 = vld [vmem:[#allocation6 + $0x74] ss:$24 sps:$4 sm:$0xff]  }
 0x7b6   : > { %v2537_v42 = vadd.f32 %v2535_v15, %v7123_v41  ;;  %v6293_v15 = vld [vmem:[#allocation6 + $0x40] ss:$24 sps:$4 sm:$0xff]   ;;  %v6304_v41 = vld [vmem:[#allocation6 + $0xa4] ss:$24 sps:$4 sm:$0xff]  }
 0x7b7   : > { %4040 = vtanh.f32 %v2536_v30  ;;  %v6301_v30 = vld [vmem:[#allocation6 + $0x70] ss:$24 sps:$4 sm:$0xff]  }
 0x7b8   : > { %4042 = vtanh.f32 %v2537_v42  ;;  %v4290_v42 = vld [vmem:[#allocation6 + $0x1e8] ss:$24 sps:$4 sm:$0xff]  }
 0x7c1   : > { %v4041_v39 = vpop.eup %4040 }
 0x7c2   : > { %v4043_v8 = vpop.eup %4042  ;;  %v2542_v56 = vmul.f32 %v4041_v39, %v2540_v49  ;;  %v4293_v49 = vld [vmem:[#allocation6 + $0x24c] ss:$24 sps:$4 sm:$0xff]   ;;  %v4294_v39 = vld [vmem:[#allocation6 + $0x248] ss:$24 sps:$4 sm:$0xff]  }
 0x7c3   : > { %v2543_v55 = vmul.f32 %v4043_v8, %v2541_v51  ;;  %v4295_v51 = vld [vmem:[#allocation6 + $0x27c] ss:$24 sps:$4 sm:$0xff]   ;;  %v4296_v8 = vld [vmem:[#allocation6 + $0x278] ss:$24 sps:$4 sm:$0xff]  }
 0x7c4   : > { %v6273_v43 = vadd.f32 %v2544_v3, %v2542_v56  ;;  %v4297_v3 = vld [vmem:[#allocation6 + $0x2ac] ss:$24 sps:$4 sm:$0xff]   ;;  %v4298_v56 = vld [vmem:[#allocation6 + $0x2a8] ss:$24 sps:$4 sm:$0xff]  }
 0x7c5   : > { %v6275_v45 = vadd.f32 %v2545_v13, %v2543_v55  ;;  %v4299_v55 = vld [vmem:[#allocation6 + $0x2dc] ss:$24 sps:$4 sm:$0xff]   ;;  %v4300_v13 = vld [vmem:[#allocation6 + $0x2d8] ss:$24 sps:$4 sm:$0xff]  }
 0x7c6   : > { %v6281_v18 = vpack.c.bf16 %v6273_v43, %v6273_v43 }
 0x7c7   : > { %v2557_v1 = vpack.c.bf16 %v6275_v45, %v6275_v45 }
 0x7c9   : > { %2590 = vmatprep.mubr.bf16.mxu1 %v2557_v1  ;;  %2631 = vmatprep.mubr.bf16.mxu0 %v2557_v1 }
 0x7ca   : > { %2591 = vmatmul.mubr.bf16.vlgmr.msra.gmra.mrb[52].mxu1 %v6281_v18  ;;  %2632 = vmatmul.mubr.bf16.vlgmr.msra.gmra.mrb[68].mxu0 %v6281_v18 }
 0x7cb   : > { %2641 = vmatpush1.bf16.msra.mxu1 %v6285_v54  ;;  %2672 = vmatprep.mubr.bf16.mxu1 %v2557_v1 }
 0x7cc   : > { %2642 = vmatprep.subr.bf16.mxu1 %v6288_v40  ;;  %2736 = vmatpush1.bf16.msra.mxu0 %v6105_v46  ;;  %v4279_v46 = vld [vmem:[#allocation6 + $0x14] ss:$24 sps:$4 sm:$0xff]  }
 0x7cd   : > { %2737 = vmatprep.subr.bf16.mxu0 %v6108_v38  ;;  %v7132_v38 = vld [vmem:[#allocation65_spill] sm:$0xff] }
 0x7cf   : > { %2643 = vmatpush1.bf16.msra.mxu1 %v6293_v15 }
 0x7d0   : > { %2644 = vmatprep.subr.bf16.mxu1 %v6296_v16  ;;  %2738 = vmatpush1.bf16.msra.mxu0 %v6113_v23  ;;  %v7133_v23 = vld [vmem:[#allocation81_spill] sm:$0xff] }
 0x7d1   : > { %2739 = vmatprep.subr.bf16.mxu0 %v6116_v5  ;;  %v7134_v5 = vld [vmem:[#allocation84_spill] sm:$0xff] }
 0x7d3   : > { %2645 = vmatpush1.bf16.msra.mxu1 %v6301_v30 }
 0x7d4   : > { %2646 = vmatprep.subr.bf16.mxu1 %v6304_v41  ;;  %2740 = vmatpush1.bf16.msra.mxu0 %v6121_v50  ;;  %v7135_v50 = vld [vmem:[#allocation34_spill] sm:$0xff] }
 0x7d5   : > { %2741 = vmatprep.subr.bf16.mxu0 %v6124_v12  ;;  %v7136_v12 = vld [vmem:[#allocation68_spill] sm:$0xff] }
 0x7d7   : > { %2647 = vmatpush1.bf16.msra.mxu1 %v5827_v34  ;;  %v4269_v34 = vld [vmem:[#allocation6 + $0x214] ss:$24 sps:$4 sm:$0xff]  }
 0x7d8   : > { %2648 = vmatprep.subr.bf16.mxu1 %v5830_v21  ;;  %2742 = vmatpush1.bf16.msra.mxu0 %v6129_v48  ;;  %v4270_v21 = vld [vmem:[#allocation6 + $0x210] ss:$24 sps:$4 sm:$0xff]   ;;  %v7137_v48 = vld [vmem:[#allocation69_spill] sm:$0xff] }
 0x7d9   : > { %2743 = vmatprep.subr.bf16.mxu0 %v6132_v25  ;;  %v7138_v25 = vld [vmem:[#allocation36_spill] sm:$0xff] }
 0x7db   : > { %2649 = vmatpush1.bf16.msra.mxu1 %v5835_v20  ;;  %v4271_v20 = vld [vmem:[#allocation6 + $0x244] ss:$24 sps:$4 sm:$0xff]  }
 0x7dc   : > { %2650 = vmatprep.subr.bf16.mxu1 %v5838_v58  ;;  %2744 = vmatpush1.bf16.msra.mxu0 %v6137_v27  ;;  %v7124_v58 = vld [vmem:[#allocation104_spill] sm:$0xff]  ;;  %v7139_v27 = vld [vmem:[#allocation31_spill] sm:$0xff] }
 0x7dd   : > { %2745 = vmatprep.subr.bf16.mxu0 %v6140_v17  ;;  %v7140_v17 = vld [vmem:[#allocation79_spill] sm:$0xff] }
 0x7df   : > { %2651 = vmatpush1.bf16.msra.mxu1 %v5843_v61  ;;  %v7125_v61 = vld [vmem:[#allocation105_spill] sm:$0xff] }
 0x7e0   : > { %2652 = vmatprep.subr.bf16.mxu1 %v5846_v52  ;;  %2746 = vmatpush1.bf16.msra.mxu0 %v6145_v44  ;;  %v4272_v52 = vld [vmem:[#allocation6 + $0x240] ss:$24 sps:$4 sm:$0xff]  }
 0x7e1   : > { %2747 = vmatprep.subr.bf16.mxu0 %v6148_v9  ;;  %v7141_v44 = vld [vmem:[#allocation86_spill] sm:$0xff]  ;;  %v4280_v9 = vld [vmem:[#allocation6 + $0xf8] ss:$24 sps:$4 sm:$0xff]  }
 0x7e3   : > { %2653 = vmatpush1.bf16.msra.mxu1 %v5851_v4  ;;  %v4273_v4 = vld [vmem:[#allocation6 + $0x274] ss:$24 sps:$4 sm:$0xff]  }
 0x7e4   : > { %2654 = vmatprep.subr.bf16.mxu1 %v5854_v63  ;;  %2748 = vmatpush1.bf16.msra.mxu0 %v6153_v19  ;;  %v7126_v63 = vld [vmem:[#allocation106_spill] sm:$0xff] }
 0x7e5   : > { %2749 = vmatprep.subr.bf16.mxu0 %v6156_v2  ;;  %v4281_v19 = vld [vmem:[#allocation6 + $0x12c] ss:$24 sps:$4 sm:$0xff]   ;;  %v4282_v2 = vld [vmem:[#allocation6 + $0x128] ss:$24 sps:$4 sm:$0xff]  }
 0x7e7   : > { %2655 = vmatpush1.bf16.msra.mxu1 %v5859_v6  ;;  %v7127_v6 = vld [vmem:[#allocation107_spill] sm:$0xff] }
 0x7e8   : > { %2656 = vmatprep.subr.bf16.mxu1 %v5862_v60  ;;  %2750 = vmatpush1.bf16.msra.mxu0 %v6161_v31  ;;  %v4274_v60 = vld [vmem:[#allocation6 + $0x270] ss:$24 sps:$4 sm:$0xff]   ;;  %v4283_v31 = vld [vmem:[#allocation6 + $0x15c] ss:$24 sps:$4 sm:$0xff]  }
 0x7e9   : > { %2751 = vmatprep.subr.bf16.mxu0 %v6164_v7  ;;  %v4284_v7 = vld [vmem:[#allocation6 + $0x158] ss:$24 sps:$4 sm:$0xff]  }
 0x7eb   : > { %2657 = vmatpush1.bf16.msra.mxu1 %v5867_v0  ;;  %v4275_v0 = vld [vmem:[#allocation6 + $0x2a4] ss:$24 sps:$4 sm:$0xff]  }
 0x7ec   : > { %2658 = vmatprep.subr.bf16.mxu1 %v5870_v57  ;;  %2752 = vmatpush1.bf16.msra.mxu0 %v6169_v35  ;;  %v7128_v57 = vld [vmem:[#allocation108_spill] sm:$0xff]  ;;  %v4285_v35 = vld [vmem:[#allocation6 + $0x18c] ss:$24 sps:$4 sm:$0xff]  }
 0x7ed   : > { %2753 = vmatprep.subr.bf16.mxu0 %v6172_v14  ;;  %v4286_v14 = vld [vmem:[#allocation6 + $0x188] ss:$24 sps:$4 sm:$0xff]  }
 0x7ef   : > { %2659 = vmatpush1.bf16.msra.mxu1 %v5875_v26  ;;  %v7129_v26 = vld [vmem:[#allocation109_spill] sm:$0xff] }
 0x7f0   : > { %2660 = vmatprep.subr.bf16.mxu1 %v5878_v62  ;;  %2754 = vmatpush1.bf16.msra.mxu0 %v6177_v11  ;;  %v4276_v62 = vld [vmem:[#allocation6 + $0x2a0] ss:$24 sps:$4 sm:$0xff]   ;;  %v4287_v11 = vld [vmem:[#allocation6 + $0x1bc] ss:$24 sps:$4 sm:$0xff]  }
 0x7f1   : > { %2755 = vmatprep.subr.bf16.mxu0 %v6180_v24  ;;  %v4288_v24 = vld [vmem:[#allocation6 + $0x1b8] ss:$24 sps:$4 sm:$0xff]  }
 0x7f3   : > { %2661 = vmatpush1.bf16.msra.mxu1 %v7021_v33  ;;  %v4277_v33 = vld [vmem:[#allocation6 + $0x2d4] ss:$24 sps:$4 sm:$0xff]  }
 0x7f4   : > { %2662 = vmatprep.subr.bf16.mxu1 %v7022_v10  ;;  %2756 = vmatpush1.bf16.msra.mxu0 %v6185_v59  ;;  %v7130_v10 = vld [vmem:[#allocation110_spill] sm:$0xff] }
 0x7f5   : > { %2757 = vmatprep.subr.bf16.mxu0 %v4269_v34  ;;  %v4289_v59 = vld [vmem:[#allocation6 + $0x1ec] ss:$24 sps:$4 sm:$0xff]  }
 0x7f6   : > { %v7142_v34 = vld [vmem:[#allocation70_spill] sm:$0xff] }
 0x7f7   : > { %2663 = vmatpush1.bf16.msra.mxu1 %v7025_v37  ;;  %v7131_v37 = vld [vmem:[#allocation64_spill] sm:$0xff] }
 0x7f8   : > { %2664 = vmatprep.subr.bf16.mxu1 %v7026_v28  ;;  %2758 = vmatpush1.bf16.msra.mxu0 %v4270_v21  ;;  %v4278_v28 = vld [vmem:[#allocation6 + $0x2d0] ss:$24 sps:$4 sm:$0xff]  }
 0x7f9   : > { %2759 = vmatprep.subr.bf16.mxu0 %v4271_v20  ;;  %v7143_v20 = vld [vmem:[#allocation71_spill] sm:$0xff] }
 0x7fb   : > { %2665 = vmatpush1.bf16.msra.mxu1 %v7124_v58 }
 0x7fc   : > { %2666 = vmatprep.subr.bf16.mxu1 %v7125_v61  ;;  %2760 = vmatpush1.bf16.msra.mxu0 %v4272_v52 }
 0x7fd   : > { %2761 = vmatprep.subr.bf16.mxu0 %v4273_v4  ;;  %v7144_v4 = vld [vmem:[#allocation53_spill] sm:$0xff] }
 0x7ff   : > { %2667 = vmatpush1.bf16.msra.mxu1 %v7126_v63 }
 0x800   : > { %2668 = vmatprep.subr.bf16.mxu1 %v7127_v6  ;;  %2762 = vmatpush1.bf16.msra.mxu0 %v4274_v60  ;;  %v7145_v6 = vld [vmem:[#allocation52_spill] sm:$0xff] }
 0x801   : > { %2763 = vmatprep.subr.bf16.mxu0 %v4275_v0 }
 0x803   : > { %2669 = vmatpush1.bf16.msra.mxu1 %v7128_v57 }
 0x804   : > { %2670 = vmatprep.subr.bf16.mxu1 %v7129_v26  ;;  %2764 = vmatpush1.bf16.msra.mxu0 %v4276_v62 }
 0x805   : > { %2765 = vmatprep.subr.bf16.mxu0 %v4277_v33 }
 0x807   : > { %2671 = vmatpush1.bf16.msra.mxu1 %v7130_v10 }
 0x808   : > { %2776 = vmatprep.subr.bf16.mxu1 %v7131_v37  ;;  %2766 = vmatpush1.bf16.msra.mxu0 %v4278_v28 }
 0x809   : > { %2817 = vmatprep.subr.bf16.mxu0 %v4279_v46 }
 0x80a   : > { %2673 = vmatmul.mubr.bf16.vlgmr.msra.gmra.mrb[56].mxu1 %v6281_v18 }
 0x80b   : > { %2777 = vmatpush1.bf16.msra.mxu1 %v7132_v38 }
 0x80c   : > { %2778 = vmatprep.subr.bf16.mxu1 %v7133_v23 }
 0x80f   : > { %2779 = vmatpush1.bf16.msra.mxu1 %v7134_v5 }
 0x810   : > { %2780 = vmatprep.subr.bf16.mxu1 %v7135_v50 }
 0x813   : > { %2781 = vmatpush1.bf16.msra.mxu1 %v7136_v12 }
 0x814   : > { %2782 = vmatprep.subr.bf16.mxu1 %v7137_v48 }
 0x817   : > { %2783 = vmatpush1.bf16.msra.mxu1 %v7138_v25 }
 0x818   : > { %2784 = vmatprep.subr.bf16.mxu1 %v7139_v27 }
 0x81b   : > { %2785 = vmatpush1.bf16.msra.mxu1 %v7140_v17 }
 0x81c   : > { %2786 = vmatprep.subr.bf16.mxu1 %v7141_v44 }
 0x81f   : > { %2787 = vmatpush1.bf16.msra.mxu1 %v4280_v9 }
 0x820   : > { %2788 = vmatprep.subr.bf16.mxu1 %v4281_v19 }
 0x823   : > { %2789 = vmatpush1.bf16.msra.mxu1 %v4282_v2 }
 0x824   : > { %2790 = vmatprep.subr.bf16.mxu1 %v4283_v31 }
 0x827   : > { %2791 = vmatpush1.bf16.msra.mxu1 %v4284_v7 }
 0x828   : > { %2792 = vmatprep.subr.bf16.mxu1 %v4285_v35 }
 0x82b   : > { %2793 = vmatpush1.bf16.msra.mxu1 %v4286_v14 }
 0x82c   : > { %2794 = vmatprep.subr.bf16.mxu1 %v4287_v11  ;;  %v7146_v11 = vld [vmem:[#allocation87_spill] sm:$0xff] }
 0x82f   : > { %2795 = vmatpush1.bf16.msra.mxu1 %v4288_v24 }
 0x830   : > { %2796 = vmatprep.subr.bf16.mxu1 %v4289_v59  ;;  %v7147_v59 = vld [vmem:[#allocation78_spill] sm:$0xff] }
 0x833   : > { %2797 = vmatpush1.bf16.msra.mxu1 %v4290_v42 }
 0x834   : > { %2798 = vmatprep.subr.bf16.mxu1 %v4291_v29 }
 0x837   : > { %2799 = vmatpush1.bf16.msra.mxu1 %v4292_v32 }
 0x838   : > { %2800 = vmatprep.subr.bf16.mxu1 %v4293_v49 }
 0x83b   : > { %2801 = vmatpush1.bf16.msra.mxu1 %v4294_v39 }
 0x83c   : > { %2802 = vmatprep.subr.bf16.mxu1 %v4295_v51 }
 0x83f   : > { %2803 = vmatpush1.bf16.msra.mxu1 %v4296_v8 }
 0x840   : > { %2804 = vmatprep.subr.bf16.mxu1 %v4297_v3 }
 0x843   : > { %2805 = vmatpush1.bf16.msra.mxu1 %v4298_v56 }
 0x844   : > { %2806 = vmatprep.subr.bf16.mxu1 %v4299_v55 }
 0x847   : > { %2807 = vmatpush1.bf16.msra.mxu1 %v4300_v13 }
 0x89d   : > { %v2592_v1 = vpop.f32.mrb[52].mxu1  ;;  %v2633_v18 = vpop.f32.mrb[68].mxu0 }
 0x89e   : > { %v2681_v21 = vadd.f32 %v2592_v1, %v7142_v34  ;;  %v2695_v58 = vadd.f32 %v2633_v18, %v7143_v20  ;;  %v2594_v61 = vpop.f32.mrb[53].mxu1  ;;  %v2635_v52 = vpop.f32.mrb[69].mxu0  ;;  %v4301_v20 = vld [vmem:[#allocation6 + $0xa0] ss:$24 sps:$4 sm:$0xff]  }
 0x89f   : > { %v2682_v63 = vadd.f32 %v2594_v61, %v7144_v4  ;;  %v2696_v60 = vadd.f32 %v2635_v52, %v7145_v6  ;;  %v2596_v0 = vpop.f32.mrb[54].mxu1  ;;  %v2637_v57 = vpop.f32.mrb[70].mxu0  ;;  %v4303_v61 = vld [vmem:[#allocation6 + $0xd0] ss:$24 sps:$4 sm:$0xff]   ;;  %v4304_v52 = vld [vmem:[#allocation6 + $0x104] ss:$24 sps:$4 sm:$0xff]  }
 0x8a0   : > { %v2597_v26 = vpop.f32.mrb[55].mxu1  ;;  %v2638_v62 = vpop.f32.mrb[71].mxu0  ;;  %v3587_v33 = vmul.f32 -1.442695, %v2681_v21  ;;  %v3589_v37 = vmul.f32 -1.442695, %v2695_v58 }
 0x8a1   : > { %v3588_v10 = vmul.f32 -1.442695, %v2682_v63  ;;  %v3590_v28 = vmul.f32 -1.442695, %v2696_v60  ;;  %v4302_v58 = vld [vmem:[#allocation6 + $0xd4] ss:$24 sps:$4 sm:$0xff]  }
 0x8a2   : > { %4044 = vpow2.f32 %v3587_v33  ;;  %v4306_v4 = vld [vmem:[#allocation6 + $0x134] ss:$24 sps:$4 sm:$0xff]   ;;  %v4312_v63 = vld [vmem:[#allocation6 + $0x1c4] ss:$24 sps:$4 sm:$0xff]   ;;  %v4313_v6 = vld [vmem:[#allocation6 + $0x1c0] ss:$24 sps:$4 sm:$0xff]  }
 0x8a3   : > { %4046 = vpow2.f32 %v3588_v10  ;;  %v4314_v60 = vld [vmem:[#allocation6 + $0x1f4] ss:$24 sps:$4 sm:$0xff]   ;;  %v4315_v0 = vld [vmem:[#allocation6 + $0x1f0] ss:$24 sps:$4 sm:$0xff]   ;;  %v4316_v57 = vld [vmem:[#allocation6 + $0x224] ss:$24 sps:$4 sm:$0xff]  }
 0x8a4   : > { %4048 = vpow2.f32 %v3589_v37  ;;  %v4317_v26 = vld [vmem:[#allocation6 + $0x220] ss:$24 sps:$4 sm:$0xff]   ;;  %v4318_v62 = vld [vmem:[#allocation6 + $0x254] ss:$24 sps:$4 sm:$0xff]   ;;  %v4319_v33 = vld [vmem:[#allocation6 + $0x250] ss:$24 sps:$4 sm:$0xff]  }
 0x8a5   : > { %4050 = vpow2.f32 %v3590_v28  ;;  %v4320_v10 = vld [vmem:[#allocation6 + $0x284] ss:$24 sps:$4 sm:$0xff]   ;;  %v4321_v37 = vld [vmem:[#allocation6 + $0x280] ss:$24 sps:$4 sm:$0xff]   ;;  %v4322_v28 = vld [vmem:[#allocation6 + $0x2b4] ss:$24 sps:$4 sm:$0xff]  }
 0x8ac   : > { %v4045_v46 = vpop.eup %4044 }
 0x8ad   : > { %v4047_v38 = vpop.eup %4046  ;;  %v2689_v23 = vadd.f32 1.0, %v4045_v46  ;;  %v4323_v46 = vld [vmem:[#allocation6 + $0x2b0] ss:$24 sps:$4 sm:$0xff]  }
 0x8ae   : > { %v2690_v5 = vadd.f32 1.0, %v4047_v38  ;;  %v4049_v50 = vpop.eup %4048  ;;  %v4324_v38 = vld [vmem:[#allocation6 + $0x2e4] ss:$24 sps:$4 sm:$0xff]  }
 0x8af   : > { %4052 = vrcp.f32 %v2689_v23  ;;  %v4051_v12 = vpop.eup %4050  ;;  %v2703_v48 = vadd.f32 1.0, %v4049_v50  ;;  %v4325_v23 = vld [vmem:[#allocation6 + $0x2e0] ss:$24 sps:$4 sm:$0xff]  }
 0x8b0   : > { %4054 = vrcp.f32 %v2690_v5  ;;  %v2704_v25 = vadd.f32 1.0, %v4051_v12  ;;  %v3908_v5 = vld [vmem:[#allocation8 + $0x40] sm:$0xff]   ;;  %v3910_v12 = vld [vmem:[#allocation8 + $0x48] sm:$0xff]  }
 0x8b1   : > { %4056 = vrcp.f32 %v2703_v48  ;;  %v3909_v50 = vld [vmem:[#allocation8] sm:$0xff]   ;;  %3625 = vmatprep.subr.bf16.mxu1 %v3908_v5  ;;  %v3911_v48 = vld [vmem:[#allocation8 + $0x8] sm:$0xff]   ;;  %v7153_v5 = vld [vmem:[#allocation76_spill] sm:$0xff] }
 0x8b2   : > { %4058 = vrcp.f32 %v2704_v25  ;;  %v3912_v25 = vld [vmem:[#allocation8 + $0x50] sm:$0xff]  }
 0x8b9   : > { %v4053_v9 = vpop.eup %4052 }
 0x8ba   : > { %v4055_v31 = vpop.eup %4054 }
 0x8bb   : > { %v4057_v29 = vpop.eup %4056 }
 0x8bc   : > { %v4059_v32 = vpop.eup %4058  ;;  %v2717_v49 = vsub.f32 1.0, %v4057_v29  ;;  %v2721_v3 = vmul.f32 %v4057_v29, %v6273_v43 }
 0x8bd   : > { %v2718_v51 = vsub.f32 1.0, %v4059_v32  ;;  %v2722_v13 = vmul.f32 %v4059_v32, %v6275_v45  ;;  %v7149_v32 = vld [vmem:[#allocation75_spill] sm:$0xff] }
 0x8dd   : > { %v2674_v27 = vpop.f32.mrb[56].mxu1 }
 0x8de   : > { %v2709_v17 = vadd.f32 %v2674_v27, %v5410_v22  ;;  %v2676_v44 = vpop.f32.mrb[57].mxu1  ;;  %v3913_v27 = vld [vmem:[#allocation8 + $0x10] sm:$0xff]  }
 0x8df   : > { %v2710_v19 = vadd.f32 %v2676_v44, %v5414_v47  ;;  %v2678_v2 = vpop.f32.mrb[58].mxu1  ;;  %v3915_v44 = vld [vmem:[#allocation8 + $0x18] sm:$0xff]  }
 0x8e0   : > { %v2711_v7 = vmul.f32 %v4053_v9, %v2709_v17  ;;  %v2679_v35 = vpop.f32.mrb[59].mxu1  ;;  %v3914_v17 = vld [vmem:[#allocation8 + $0x58] sm:$0xff]   ;;  %v3916_v9 = vld [vmem:[#allocation8 + $0x60] sm:$0xff]   ;;  %v3918_v2 = vld [vmem:[#allocation8 + $0x68] sm:$0xff]  }
 0x8e1   : > { %v2712_v14 = vmul.f32 %v4055_v31, %v2710_v19  ;;  %v3917_v19 = vld [vmem:[#allocation8 + $0x20] sm:$0xff]   ;;  %v3919_v31 = vld [vmem:[#allocation8 + $0x28] sm:$0xff]   ;;  %v3921_v35 = vld [vmem:[#allocation8 + $0x30] sm:$0xff]  }
 0x8e2   : > { %v2713_v24 = vadd.f32 %v2711_v7, %v7146_v11  ;;  %v3920_v7 = vld [vmem:[#allocation8 + $0x70] sm:$0xff]   ;;  %v3923_v11 = vld [vmem:[#allocation8 + $0x38] sm:$0xff]  }
 0x8e3   : > { %v2714_v42 = vadd.f32 %v2712_v14, %v7147_v59  ;;  %v3922_v14 = vld [vmem:[#allocation8 + $0x78] sm:$0xff]  }
 0x8e4   : > { %4060 = vtanh.f32 %v2713_v24 }
 0x8e5   : > { %4062 = vtanh.f32 %v2714_v42  ;;  %v7148_v42 = vld [vmem:[#allocation74_spill] sm:$0xff] }
 0x8ee   : > { %v4061_v39 = vpop.eup %4060 }
 0x8ef   : > { %v4063_v8 = vpop.eup %4062  ;;  %v2719_v56 = vmul.f32 %v4061_v39, %v2717_v49 }
 0x8f0   : > { %v2720_v55 = vmul.f32 %v4063_v8, %v2718_v51  ;;  %v7150_v8 = vld [vmem:[#allocation22_spill] sm:$0xff] }
 0x8f1   : > { %v6371_v1 = vadd.f32 %v2721_v3, %v2719_v56  ;;  %v7151_v56 = vld [vmem:[#allocation20_spill] sm:$0xff] }
 0x8f2   : > { %v6373_v18 = vadd.f32 %v2722_v13, %v2720_v55 }
 0x8f3   : > { %v2733_v21 = vpack.c.bf16 %v6371_v1, %v6371_v1 }
 0x8f4   : > { %v2734_v34 = vpack.c.bf16 %v6373_v18, %v6373_v18 }
 0x8f6   : > { %2767 = vmatprep.mubr.bf16.mxu0 %v2734_v34  ;;  %2808 = vmatprep.mubr.bf16.mxu1 %v2734_v34 }
 0x8f7   : > { %2768 = vmatmul.mubr.bf16.vlgmr.msra.gmra.mrb[72].mxu0 %v2733_v21  ;;  %2809 = vmatmul.mubr.bf16.vlgmr.msra.gmra.mrb[60].mxu1 %v2733_v21 }
 0x8f8   : > { %2818 = vmatpush1.bf16.msra.mxu0 %v6285_v54  ;;  %2849 = vmatprep.mubr.bf16.mxu0 %v2734_v34  ;;  %v4305_v54 = vld [vmem:[#allocation6 + $0x100] ss:$24 sps:$4 sm:$0xff]  }
 0x8f9   : > { %2819 = vmatprep.subr.bf16.mxu0 %v6288_v40  ;;  %v4307_v40 = vld [vmem:[#allocation6 + $0x130] ss:$24 sps:$4 sm:$0xff]   ;;  %3626 = vmatpush3.bf16.msra.mxu1 %v3909_v50 }
 0x8fa   : > { %3627 = vmatprep.subr.bf16.mxu1 %v3910_v12 }
 0x8fc   : > { %2820 = vmatpush1.bf16.msra.mxu0 %v6293_v15  ;;  %v4308_v15 = vld [vmem:[#allocation6 + $0x164] ss:$24 sps:$4 sm:$0xff]  }
 0x8fd   : > { %2821 = vmatprep.subr.bf16.mxu0 %v6296_v16  ;;  %v4309_v16 = vld [vmem:[#allocation6 + $0x160] ss:$24 sps:$4 sm:$0xff]   ;;  %3628 = vmatpush3.bf16.msra.mxu1 %v3911_v48 }
 0x8fe   : > { %3629 = vmatprep.subr.bf16.mxu1 %v3912_v25 }
 0x900   : > { %2822 = vmatpush1.bf16.msra.mxu0 %v6301_v30  ;;  %v4310_v30 = vld [vmem:[#allocation6 + $0x194] ss:$24 sps:$4 sm:$0xff]  }
 0x901   : > { %2823 = vmatprep.subr.bf16.mxu0 %v6304_v41  ;;  %v4311_v41 = vld [vmem:[#allocation6 + $0x190] ss:$24 sps:$4 sm:$0xff]   ;;  %3630 = vmatpush3.bf16.msra.mxu1 %v3913_v27 }
 0x902   : > { %3631 = vmatprep.subr.bf16.mxu1 %v3914_v17 }
 0x904   : > { %2824 = vmatpush1.bf16.msra.mxu0 %v4301_v20 }
 0x905   : > { %2825 = vmatprep.subr.bf16.mxu0 %v4302_v58  ;;  %3632 = vmatpush3.bf16.msra.mxu1 %v3915_v44 }
 0x906   : > { %3633 = vmatprep.subr.bf16.mxu1 %v3916_v9 }
 0x908   : > { %2826 = vmatpush1.bf16.msra.mxu0 %v4303_v61 }
 0x909   : > { %2827 = vmatprep.subr.bf16.mxu0 %v4304_v52  ;;  %3634 = vmatpush3.bf16.msra.mxu1 %v3917_v19 }
 0x90a   : > { %3635 = vmatprep.subr.bf16.mxu1 %v3918_v2 }
 0x90c   : > { %2828 = vmatpush1.bf16.msra.mxu0 %v4305_v54 }
 0x90d   : > { %2829 = vmatprep.subr.bf16.mxu0 %v4306_v4  ;;  %3636 = vmatpush3.bf16.msra.mxu1 %v3919_v31 }
 0x90e   : > { %3637 = vmatprep.subr.bf16.mxu1 %v3920_v7 }
 0x910   : > { %2830 = vmatpush1.bf16.msra.mxu0 %v4307_v40 }
 0x911   : > { %2831 = vmatprep.subr.bf16.mxu0 %v4308_v15  ;;  %3638 = vmatpush3.bf16.msra.mxu1 %v3921_v35  ;;  %v7154_v35 = vld [vmem:[#allocation19_spill] sm:$0xff] }
 0x912   : > { %3639 = vmatprep.subr.bf16.mxu1 %v3922_v14  ;;  %v7155_v14 = vld [vmem:[#allocation27_spill] sm:$0xff] }
 0x914   : > { %2832 = vmatpush1.bf16.msra.mxu0 %v4309_v16 }
 0x915   : > { %2833 = vmatprep.subr.bf16.mxu0 %v4310_v30  ;;  %3640 = vmatpush3.bf16.msra.mxu1 %v3923_v11  ;;  %v2922_v11 = vpack.c.bf16 %v7155_v14, %v7154_v35 }
 0x918   : > { %2834 = vmatpush1.bf16.msra.mxu0 %v4311_v41 }
 0x919   : > { %2835 = vmatprep.subr.bf16.mxu0 %v4312_v63 }
 0x91c   : > { %2836 = vmatpush1.bf16.msra.mxu0 %v4313_v6 }
 0x91d   : > { %2837 = vmatprep.subr.bf16.mxu0 %v4314_v60 }
 0x920   : > { %2838 = vmatpush1.bf16.msra.mxu0 %v4315_v0 }
 0x921   : > { %2839 = vmatprep.subr.bf16.mxu0 %v4316_v57 }
 0x924   : > { %2840 = vmatpush1.bf16.msra.mxu0 %v4317_v26 }
 0x925   : > { %2841 = vmatprep.subr.bf16.mxu0 %v4318_v62 }
 0x928   : > { %2842 = vmatpush1.bf16.msra.mxu0 %v4319_v33 }
 0x929   : > { %2843 = vmatprep.subr.bf16.mxu0 %v4320_v10 }
 0x92c   : > { %2844 = vmatpush1.bf16.msra.mxu0 %v4321_v37 }
 0x92d   : > { %2845 = vmatprep.subr.bf16.mxu0 %v4322_v28 }
 0x930   : > { %2846 = vmatpush1.bf16.msra.mxu0 %v4323_v46 }
 0x931   : > { %2847 = vmatprep.subr.bf16.mxu0 %v4324_v38  ;;  %v7152_v38 = vld [vmem:[#allocation89_spill] sm:$0xff] }
 0x934   : > { %2848 = vmatpush1.bf16.msra.mxu0 %v4325_v23 }
 0x937   : > { %2850 = vmatmul.mubr.bf16.vlgmr.msra.gmra.mrb[76].mxu0 %v2733_v21 }
 0x9ca   : > { %v2769_v24 = vpop.f32.mrb[72].mxu0  ;;  %v2810_v59 = vpop.f32.mrb[60].mxu1 }
 0x9cb   : > { %v2858_v29 = vadd.f32 %v2769_v24, %v7148_v42  ;;  %v2872_v49 = vadd.f32 %v2810_v59, %v7149_v32  ;;  %v2771_v39 = vpop.f32.mrb[73].mxu0  ;;  %v2812_v51 = vpop.f32.mrb[61].mxu1  ;;  %v2925_v24 = vpack.c.bf16 %v6093_v53, %v6275_v45  ;;  %v7156_v59 = vld [vmem:[#allocation54_spill] sm:$0xff]  ;;  %v7158_v32 = vld [vmem:[#allocation59_spill] sm:$0xff] }
 0x9cc   : > { %v2859_v3 = vadd.f32 %v2771_v39, %v7150_v8  ;;  %v2873_v55 = vadd.f32 %v2812_v51, %v7151_v56  ;;  %v2773_v13 = vpop.f32.mrb[74].mxu0  ;;  %v2814_v34 = vpop.f32.mrb[62].mxu1  ;;  %v7157_v42 = vld [vmem:[#allocation58_spill] sm:$0xff]  ;;  %v2926_v51 = vpack.c.bf16 %v6273_v43, %v6091_v36  ;;  %v7160_v8 = vld [vmem:[#allocation29_spill] sm:$0xff] }
 0x9cd   : > { %v2774_v21 = vpop.f32.mrb[75].mxu0  ;;  %v2815_v20 = vpop.f32.mrb[63].mxu1  ;;  %v3591_v58 = vmul.f32 -1.442695, %v2858_v29  ;;  %v3593_v52 = vmul.f32 -1.442695, %v2872_v49  ;;  %v2924_v29 = vpack.c.bf16 %v7157_v42, %v7156_v59 }
 0x9ce   : > { %v3592_v61 = vmul.f32 -1.442695, %v2859_v3  ;;  %v3594_v54 = vmul.f32 -1.442695, %v2873_v55  ;;  %v7159_v49 = vld [vmem:[#allocation55_spill] sm:$0xff]  ;;  %v7161_v3 = vld [vmem:[#allocation18_spill] sm:$0xff] }
 0x9cf   : > { %4064 = vpow2.f32 %v3591_v58  ;;  %v2927_v39 = vpack.c.bf16 %v7159_v49, %v7158_v32  ;;  %v2929_v56 = vpack.c.bf16 %v7161_v3, %v7160_v8  ;;  %v3595_v34 = vld [vmem:[%s6528_s7] ss:$0 sm:$0xff] }
 0x9d0   : > { %4066 = vpow2.f32 %v3592_v61 }
 0x9d1   : > { %4068 = vpow2.f32 %v3593_v52 }
 0x9d2   : > { %4070 = vpow2.f32 %v3594_v54 }
 0x9d9   : > { %v4065_v4 = vpop.eup %4064 }
 0x9da   : > { %v4067_v40 = vpop.eup %4066  ;;  %v2866_v15 = vadd.f32 1.0, %v4065_v4 }
 0x9db   : > { %v2867_v16 = vadd.f32 1.0, %v4067_v40  ;;  %v4069_v30 = vpop.eup %4068 }
 0x9dc   : > { %4072 = vrcp.f32 %v2866_v15  ;;  %v4071_v41 = vpop.eup %4070  ;;  %v2880_v63 = vadd.f32 1.0, %v4069_v30 }
 0x9dd   : > { %4074 = vrcp.f32 %v2867_v16  ;;  %v2881_v6 = vadd.f32 1.0, %v4071_v41 }
 0x9de   : > { %4076 = vrcp.f32 %v2880_v63 }
 0x9df   : > { %4078 = vrcp.f32 %v2881_v6 }
 0x9e6   : > { %v4073_v26 = vpop.eup %4072 }
 0x9e7   : > { %v4075_v10 = vpop.eup %4074 }
 0x9e8   : > { %v4077_v12 = vpop.eup %4076 }
 0x9e9   : > { %v2894_v48 = vsub.f32 1.0, %v4077_v12  ;;  %v2898_v44 = vmul.f32 %v4077_v12, %v6371_v1 }
 0xa0a   : > { %v2851_v60 = vpop.f32.mrb[76].mxu0 }
 0xa0b   : > { %v2886_v0 = vadd.f32 %v2851_v60, %v5410_v22  ;;  %v2853_v57 = vpop.f32.mrb[77].mxu0  ;;  %v4079_v22 = vpop.eup %4078 }
 0xa0c   : > { %v2887_v62 = vadd.f32 %v2853_v57, %v5414_v47  ;;  %v2855_v33 = vpop.f32.mrb[78].mxu0  ;;  %v2895_v27 = vsub.f32 1.0, %v4079_v22  ;;  %v2899_v19 = vmul.f32 %v4079_v22, %v6373_v18 }
 0xa0d   : > { %v2888_v37 = vmul.f32 %v4073_v26, %v2886_v0  ;;  %v2856_v28 = vpop.f32.mrb[79].mxu0  ;;  %v3612_v0 = vld [vmem:[%s6529_s8] ss:$0 sm:$0xff] }
 0xa0e   : > { %v2889_v46 = vmul.f32 %v4075_v10, %v2887_v62 }
 0xa0f   : > { %v2890_v23 = vadd.f32 %v2888_v37, %v7152_v38 }
 0xa10   : > { %v2891_v50 = vadd.f32 %v2889_v46, %v7153_v5 }
 0xa11   : > { %4080 = vtanh.f32 %v2890_v23 }
 0xa12   : > { %4082 = vtanh.f32 %v2891_v50 }
 0xa1b   : > { %v4081_v25 = vpop.eup %4080 }
 0xa1c   : > { %v4083_v47 = vpop.eup %4082  ;;  %v2896_v17 = vmul.f32 %v4081_v25, %v2894_v48 }
 0xa1d   : > { %v2897_v9 = vmul.f32 %v4083_v47, %v2895_v27 }
 0xa1e   : > { %v6395_v2 = vadd.f32 %v2898_v44, %v2896_v17 }
 0xa1f   : > { %v6397_v31 = vadd.f32 %v2899_v19, %v2897_v9 }
 0xa20   : > { %2904 = vst [vmem:[%s6400_s20] sm:$0xff] %v6395_v2  ;;  %v2928_v55 = vpack.c.bf16 %v6395_v2, %v6371_v1 }
 0xa21   : > { %v2923_v7 = vpack.c.bf16 %v6373_v18, %v6397_v31  ;;  %2905 = vst [vmem:[%s6400_s20 + $0x8] sm:$0xff] %v6397_v31 }
 0xa23   : > { %3097 = vmatprep.mubr.bf16.mxu1 %v2923_v7 }
 0xa24   : > { %3098 = vmatmul.mubr.bf16.vlgmr.msra.gmra.mrb[64].mxu1 %v2922_v11 }
 0xa25   : > { %3105 = vmatprep.mubr.bf16.mxu1 %v2925_v24 }
 0xa2c   : > { %3106 = vmatmul.mubr.bf16.gmra.mrb[68].mxu1 %v2924_v29 }
 0xa2d   : > { %3113 = vmatprep.mubr.bf16.mxu1 %v2927_v39 }
 0xa34   : > { %3114 = vmatmul.mubr.bf16.gmra.mrb[72].mxu1 %v2926_v51 }
 0xa35   : > { %3121 = vmatprep.mubr.bf16.mxu1 %v2929_v56 }
 0xa3c   : > { %3122 = vmatmul.mubr.bf16.gmra.mrb[76].mxu1 %v2928_v55 }
 0xaf7   : > { %v3641_v13 = vpop.f32.mrb[64].mxu1 }
 0xaf8   : > { %v3642_v21 = vpop.f32.mrb[65].mxu1 }
 0xaf9   : > { %v3643_v20 = vadd.f32 %v3642_v21, %v3641_v13  ;;  %v3644_v58 = vpop.f32.mrb[66].mxu1 }
 0xafa   : > { %v3645_v61 = vpop.f32.mrb[67].mxu1 }
 0xafb   : > { %v3100_v52 = vadd.f32 %v3643_v20, %v3595_v34  ;;  %v3646_v54 = vadd.f32 %v3645_v61, %v3644_v58 }
 0xafd   : > { %4084 = vtanh.f32 %v3100_v52  ;;  %v3103_v4 = vadd.f32 %v3646_v54, %v3595_v34 }
 0xaff   : > { %4086 = vtanh.f32 %v3103_v4  ;;  %v3647_v40 = vpop.f32.mrb[68].mxu1 }
 0xb00   : > { %v3648_v15 = vpop.f32.mrb[69].mxu1 }
 0xb01   : > { %v3649_v16 = vadd.f32 %v3648_v15, %v3647_v40  ;;  %v3650_v30 = vpop.f32.mrb[70].mxu1 }
 0xb02   : > { %v3651_v41 = vpop.f32.mrb[71].mxu1 }
 0xb03   : > { %v3108_v63 = vadd.f32 %v3649_v16, %v3595_v34  ;;  %v3652_v6 = vadd.f32 %v3651_v41, %v3650_v30 }
 0xb05   : > { %4088 = vtanh.f32 %v3108_v63  ;;  %v3111_v60 = vadd.f32 %v3652_v6, %v3595_v34 }
 0xb07   : > { %v4085_v57 = vpop.eup %4084  ;;  %4090 = vtanh.f32 %v3111_v60  ;;  %v3653_v26 = vpop.f32.mrb[72].mxu1 }
 0xb08   : > { %v3654_v62 = vpop.f32.mrb[73].mxu1  ;;  %v3145_v33 = vmul.f32 %v4085_v57, %v3612_v0 }
 0xb09   : > { %v4087_v10 = vpop.eup %4086  ;;  %v3655_v37 = vadd.f32 %v3654_v62, %v3653_v26  ;;  %v3656_v28 = vpop.f32.mrb[74].mxu1 }
 0xb0a   : > { %v3657_v46 = vpop.f32.mrb[75].mxu1  ;;  %3153 = vadd.xlane.f32.xlu0 %v3145_v33  ;;  %v3146_v5 = vmul.f32 %v4087_v10, %v3612_v0 }
 0xb0b   : > { %v3116_v38 = vadd.f32 %v3655_v37, %v3595_v34  ;;  %v3658_v23 = vadd.f32 %v3657_v46, %v3656_v28 }
 0xb0d   : > { %4092 = vtanh.f32 %v3116_v38  ;;  %v3119_v50 = vadd.f32 %v3658_v23, %v3595_v34 }
 0xb0e   : > { %3155 = vadd.xlane.f32.xlu0 %v3146_v5 }
 0xb0f   : > { %v4089_v12 = vpop.eup %4088  ;;  %4094 = vtanh.f32 %v3119_v50  ;;  %v3659_v22 = vpop.f32.mrb[76].mxu1 }
 0xb10   : > { %v3660_v48 = vpop.f32.mrb[77].mxu1  ;;  %v3147_v25 = vmul.f32 %v4089_v12, %v3612_v0 }
 0xb11   : > { %v4091_v27 = vpop.eup %4090  ;;  %v3661_v47 = vadd.f32 %v3660_v48, %v3659_v22  ;;  %v3662_v17 = vpop.f32.mrb[78].mxu1 }
 0xb12   : > { %v3663_v44 = vpop.f32.mrb[79].mxu1  ;;  %3157 = vadd.xlane.f32.xlu1 %v3147_v25  ;;  %v3148_v7 = vmul.f32 %v4091_v27, %v3612_v0 }
 0xb13   : > { %v3124_v9 = vadd.f32 %v3661_v47, %v3595_v34  ;;  %v3664_v19 = vadd.f32 %v3663_v44, %v3662_v17 }
 0xb15   : > { %4096 = vtanh.f32 %v3124_v9  ;;  %v3127_v11 = vadd.f32 %v3664_v19, %v3595_v34 }
 0xb16   : > { %3159 = vadd.xlane.f32.xlu1 %v3148_v7 }
 0xb17   : > { %v4093_v24 = vpop.eup %4092  ;;  %4098 = vtanh.f32 %v3127_v11 }
 0xb18   : > { %v3149_v29 = vmul.f32 %v4093_v24, %v3612_v0 }
 0xb19   : > { %v4095_v39 = vpop.eup %4094 }
 0xb1a   : > { %3161 = vadd.xlane.f32.xlu0 %v3149_v29  ;;  %v3150_v51 = vmul.f32 %v4095_v39, %v3612_v0 }
 0xb1c   : > { %3163 = vadd.xlane.f32.xlu1 %v3150_v51 }
 0xb1f   : > { %v4097_v56 = vpop.eup %4096 }
 0xb20   : > { %v3151_v55 = vmul.f32 %v4097_v56, %v3612_v0 }
 0xb21   : > { %v4099_v13 = vpop.eup %4098 }
 0xb22   : > { %3165 = vadd.xlane.f32.xlu0 %v3151_v55  ;;  %v3152_v21 = vmul.f32 %v4099_v13, %v3612_v0 }
 0xb24   : > { %3167 = vadd.xlane.f32.xlu1 %v3152_v21 }
 0xb25   : > { %4425 = shalt.err (!%p4422_p13)
}
 0xb26   : > { %s4426_s20 = scalar_lea.hbm %s6434_s23, 256  ;;  %s4430_s18 = scalar_lea.hbm %s6531_s10, 512 }
 0xb27   : > { %p4427_p6 = scmp.ne.s32.totalorder %s6434_s23, %s4426_s20  ;;  %p4431_p7 = scmp.lt.u32.totalorder %s6434_s23, %s6531_s10 }
 0xb28   : > { %p4432_p8 = scmp.lt.u32.totalorder %s4430_s18, %s4426_s20  ;;  %p4434_p0 = scmp.lt.u32.totalorder %s4426_s20, %s6434_s23 }
 0xb29   : > { %p4428_p10 = pnand %p4427_p6, %p7162_p1 }
 0xb2a   : > { %p4433_p11 = por %p4432_p8, %p4431_p7 }
 0xb2b   : > { %p4429_p4 = pneg %p4428_p10 }
 0xb2c   : > { %p4435_p3 = por %p4434_p0, %p4433_p11 }
 0xb2e   : > { %p4436_p5 = pnand %p4435_p3, %p4429_p4 }
 0xb30   : > { %4439 = shalt.err (!%p4436_p5)
}
 0xb31   : > { %3676 = dma.vmem_to_hbm [thread:$0]  (%p7162_p1), %s3291_s1, 256, %s6434_s23, %s3262_s24  }
 0xb32   : > { %s423_s23 = scalar_lea.vmem [#allocation9], %s4753_s22  ;;  %s6477_s21 = scalar_lea.hbm %s6530_s9, %s3623_s27 }
 0xb33   : > { %s3276_s1 = sshll.u32 %s423_s23, 4  ;;  %s3257_s22 = scalar_lea.sflag [#allocation5], %s4750_s30  ;;  %s6479_s1 = int_to_ptr.vmem [resolvable:$true] %s3276_s1 }
 0xb34   : > { %s4440_s20 = scalar_lea.vmem %s6479_s1, 256  ;;  %s4525_s19 = smov [#allocation9]  }
 0xb35   : > { %p4441_p9 = scmp.ne.s32.totalorder %s6479_s1, %s4440_s20  ;;  %s4444_s17 = sshll.u32 %s4525_s19, 4  ;;  %s4445_s17 = int_to_ptr.vmem [resolvable:$false] %s4444_s17 }
 0xb36   : > { %s4446_s26 = scalar_lea.vmem %s4445_s17, 512  ;;  %p4447_p13 = scmp.lt.s32.totalorder %s6479_s1, %s4445_s17 }
 0xb37   : > { %p4442_p12 = pnand %p4441_p9, %p7162_p1  ;;  %p4448_p6 = scmp.lt.s32.totalorder %s4446_s26, %s4440_s20 }
 0xb39   : > { %p4443_p2 = pneg %p4442_p12  ;;  %p4449_p10 = por %p4448_p6, %p4447_p13 }
 0xb3b   : > { %p4450_p4 = pnand %p4449_p10, %p4443_p2 }
 0xb97   : > { %v3154_v34 = vpop.xlane.xlu0 %3153 }
 0xb9b   : > { %v3156_v20 = vpop.xlane.xlu0 %3155 }
 0xb9c   : > { %4100 = vtanh.f32 %v3156_v20 }
 0xb9d   : > { %4102 = vtanh.f32 %v3154_v34 }
 0xb9f   : > { %v3158_v58 = vpop.xlane.xlu1 %3157 }
 0xba0   : > { %4104 = vtanh.f32 %v3158_v58 }
 0xba3   : > { %v3160_v61 = vpop.xlane.xlu1 %3159 }
 0xba4   : > { %4106 = vtanh.f32 %v3160_v61 }
 0xba6   : > { %v4101_v4 = vpop.eup %4100 }
 0xba7   : > { %v3162_v52 = vpop.xlane.xlu0 %3161  ;;  %v4103_v40 = vpop.eup %4102 }
 0xba8   : > { %4108 = vtanh.f32 %v3162_v52  ;;  %v3177_v16 = vmax.f32 %v4103_v40, %v4101_v4 }
 0xba9   : > { %v3164_v54 = vpop.xlane.xlu1 %3163 }
 0xbaa   : > { %4110 = vtanh.f32 %v3164_v54  ;;  %v4105_v15 = vpop.eup %4104 }
 0xbab   : > { %v3178_v63 = vmax.f32 %v3177_v16, %v4105_v15 }
 0xbae   : > { %v4107_v41 = vpop.eup %4106 }
 0xbaf   : > { %v3166_v30 = vpop.xlane.xlu0 %3165  ;;  %v3179_v0 = vmax.f32 %v3178_v63, %v4107_v41 }
 0xbb0   : > { %4112 = vtanh.f32 %v3166_v30 }
 0xbb1   : > { %v3168_v6 = vpop.xlane.xlu1 %3167 }
 0xbb2   : > { %v4109_v60 = vpop.eup %4108  ;;  %4114 = vtanh.f32 %v3168_v6 }
 0xbb3   : > { %v3180_v57 = vmax.f32 %v3179_v0, %v4109_v60 }
 0xbb4   : > { %v4111_v26 = vpop.eup %4110 }
 0xbb5   : > { %v3181_v62 = vmax.f32 %v3180_v57, %v4111_v26 }
 0xbba   : > { %v4113_v33 = vpop.eup %4112 }
 0xbbb   : > { %v3182_v10 = vmax.f32 %v3181_v62, %v4113_v33 }
 0xbbc   : > { %v4115_v37 = vpop.eup %4114 }
 0xbbd   : > { %v3183_v28 = vmax.f32 %v3182_v10, %v4115_v37 }
 0xbbf   : > { %v3184_v46 = vsub.f32 %v4103_v40, %v3183_v28  ;;  %v3185_v38 = vsub.f32 %v4101_v4, %v3183_v28  ;;  %v3186_v23 = vsub.f32 %v4105_v15, %v3183_v28  ;;  %v3187_v5 = vsub.f32 %v4107_v41, %v3183_v28 }
 0xbc0   : > { %v3188_v22 = vsub.f32 %v4109_v60, %v3183_v28  ;;  %v3189_v25 = vsub.f32 %v4111_v26, %v3183_v28  ;;  %v3190_v47 = vsub.f32 %v4113_v33, %v3183_v28  ;;  %v3191_v44 = vsub.f32 %v4115_v37, %v3183_v28 }
 0xbc1   : > { %v3192_v50 = vmul.f32 1.442695, %v3184_v46  ;;  %v3194_v12 = vmul.f32 1.442695, %v3185_v38  ;;  %v3196_v48 = vmul.f32 1.442695, %v3186_v23 }
 0xbc2   : > { %v3198_v27 = vmul.f32 1.442695, %v3187_v5  ;;  %v3200_v17 = vmul.f32 1.442695, %v3188_v22  ;;  %v3202_v9 = vmul.f32 1.442695, %v3189_v25 }
 0xbc3   : > { %4116 = vpow2.f32 %v3192_v50  ;;  %v3204_v19 = vmul.f32 1.442695, %v3190_v47  ;;  %v3206_v7 = vmul.f32 1.442695, %v3191_v44 }
 0xbc4   : > { %4118 = vpow2.f32 %v3194_v12 }
 0xbc5   : > { %4120 = vpow2.f32 %v3196_v48 }
 0xbc6   : > { %4122 = vpow2.f32 %v3198_v27 }
 0xbc7   : > { %4124 = vpow2.f32 %v3200_v17 }
 0xbc8   : > { %4126 = vpow2.f32 %v3202_v9 }
 0xbc9   : > { %4128 = vpow2.f32 %v3204_v19 }
 0xbca   : > { %4130 = vpow2.f32 %v3206_v7 }
 0xbcd   : > { %v4117_v11 = vpop.eup %4116 }
 0xbce   : > { %v4119_v24 = vpop.eup %4118 }
 0xbcf   : > { %v3208_v29 = vadd.f32 %v4119_v24, %v4117_v11  ;;  %v4121_v39 = vpop.eup %4120 }
 0xbd0   : > { %v4123_v56 = vpop.eup %4122 }
 0xbd1   : > { %v3209_v51 = vadd.f32 %v4121_v39, %v3208_v29  ;;  %v4125_v13 = vpop.eup %4124 }
 0xbd2   : > { %v4127_v34 = vpop.eup %4126 }
 0xbd3   : > { %v3210_v55 = vadd.f32 %v4123_v56, %v3209_v51  ;;  %v4129_v58 = vpop.eup %4128 }
 0xbd4   : > { %v4131_v52 = vpop.eup %4130 }
 0xbd5   : > { %v3211_v21 = vadd.f32 %v4125_v13, %v3210_v55 }
 0xbd7   : > { %v3212_v20 = vadd.f32 %v4127_v34, %v3211_v21 }
 0xbd9   : > { %v3213_v61 = vadd.f32 %v4129_v58, %v3212_v20 }
 0xbdb   : > { %v3214_v54 = vadd.f32 %v4131_v52, %v3213_v61 }
 0xbdd   : > { %4132 = vrcp.f32 %v3214_v54 }
 0xbe7   : > { %v4133_v4 = vpop.eup %4132 }
 0xbe8   : > { %v3216_v40 = vmul.f32 %v4133_v4, %v4117_v11  ;;  %v3217_v15 = vmul.f32 %v4133_v4, %v4119_v24  ;;  %v3218_v16 = vmul.f32 %v4133_v4, %v4121_v39  ;;  %v3219_v60 = vmul.f32 %v4133_v4, %v4123_v56 }
 0xbe9   : > { %v3220_v0 = vmul.f32 %v4133_v4, %v4125_v13  ;;  %v3221_v10 = vmul.f32 %v4133_v4, %v4127_v34  ;;  %v3222_v46 = vmul.f32 %v4133_v4, %v4129_v58 }
 0xbea   : > { %v3224_v30 = vmul.f32 %v3216_v40, %v7154_v35  ;;  %v3225_v41 = vmul.f32 %v3216_v40, %v6397_v31  ;;  %v3226_v63 = vmul.f32 %v3217_v15, %v7155_v14  ;;  %v3227_v6 = vmul.f32 %v3217_v15, %v6373_v18 }
 0xbeb   : > { %v3228_v57 = vmul.f32 %v3218_v16, %v7156_v59  ;;  %v3229_v26 = vmul.f32 %v3218_v16, %v6275_v45  ;;  %v3230_v37 = vmul.f32 %v3219_v60, %v7157_v42  ;;  %v3231_v28 = vmul.f32 %v3219_v60, %v6093_v53 }
 0xbec   : > { %v3240_v62 = vadd.f32 %v3226_v63, %v3224_v30  ;;  %v3241_v33 = vadd.f32 %v3227_v6, %v3225_v41  ;;  %v3232_v14 = vmul.f32 %v3220_v0, %v6091_v36  ;;  %v3233_v18 = vmul.f32 %v3220_v0, %v7158_v32 }
 0xbed   : > { %v3223_v59 = vmul.f32 %v4133_v4, %v4131_v52  ;;  %v3234_v45 = vmul.f32 %v3221_v10, %v6273_v43  ;;  %v3235_v5 = vmul.f32 %v3221_v10, %v7159_v49  ;;  %v3236_v53 = vmul.f32 %v3222_v46, %v6371_v1 }
 0xbee   : > { %v3242_v35 = vadd.f32 %v3240_v62, %v3228_v57  ;;  %v3243_v31 = vadd.f32 %v3241_v33, %v3229_v26  ;;  %v3237_v12 = vmul.f32 %v3222_v46, %v7160_v8 }
 0xbef   : > { %v3238_v36 = vmul.f32 %v3223_v59, %v6395_v2  ;;  %v3239_v32 = vmul.f32 %v3223_v59, %v7161_v3 }
 0xbf0   : > { %v3244_v38 = vadd.f32 %v3242_v35, %v3230_v37  ;;  %v3245_v23 = vadd.f32 %v3243_v31, %v3231_v28 }
 0xbf2   : > { %v3246_v50 = vadd.f32 %v3244_v38, %v3232_v14  ;;  %v3247_v42 = vadd.f32 %v3245_v23, %v3233_v18 }
 0xbf4   : > { %v3248_v22 = vadd.f32 %v3246_v50, %v3234_v45  ;;  %v3249_v48 = vadd.f32 %v3247_v42, %v3235_v5 }
 0xbf6   : > { %v3250_v43 = vadd.f32 %v3248_v22, %v3236_v53  ;;  %v3251_v25 = vadd.f32 %v3249_v48, %v3237_v12 }
 0xbf8   : > { %v3252_v27 = vadd.f32 %v3250_v43, %v3238_v36  ;;  %v3253_v49 = vadd.f32 %v3251_v25, %v3239_v32 }
 0xbfa   : > { %3254 = vst [vmem:[%s423_s23] sm:$0xff] %v3252_v27  ;;  %3255 = vst [vmem:[%s423_s23 + $0x8] sm:$0xff] %v3253_v49 }
 0xbfb   : > { %4453 = shalt.err (!%p4450_p4)
}
 0xbfc   : > { %s4454_s30 = scalar_lea.hbm %s6477_s21, 256  ;;  %s4458_s13 = scalar_lea.hbm %s6530_s9, 512 }
 0xbfd   : > { %p4455_p7 = scmp.ne.s32.totalorder %s6477_s21, %s4454_s30  ;;  %p4459_p0 = scmp.lt.u32.totalorder %s6477_s21, %s6530_s9 }
 0xbfe   : > { %p4460_p3 = scmp.lt.u32.totalorder %s4458_s13, %s4454_s30  ;;  %p4462_p9 = scmp.lt.u32.totalorder %s4454_s30, %s6477_s21 }
 0xbff   : > { %p4456_p8 = pnand %p4455_p7, %p7162_p1 }
 0xc00   : > { %p4461_p5 = por %p4460_p3, %p4459_p0 }
 0xc01   : > { %p4457_p11 = pneg %p4456_p8 }
 0xc02   : > { %p4463_p12 = por %p4462_p9, %p4461_p5 }
 0xc04   : > { %p4464_p2 = pnand %p4463_p12, %p4457_p11 }
 0xc06   : > { %4467 = shalt.err (!%p4464_p2)
}
 0xc07   : > { %3675 = dma.vmem_to_hbm [thread:$0]  (%p7162_p1), %s6479_s1, 256, %s6477_s21, %s3257_s22  }
 0xc08 PF: > { %s7163_s24 = sld [smem:[#allocation16_spill]]  ;;  %s7164_s29 = sld [smem:[#allocation17_spill]] }
 0xc09   : > { %p7166_p6 = scmp.ge.s32.totalorder %s4514_s16, 2 }
 0xc0e   : > { %s3302_s20 = sand.u32 1, %s7163_s24   ;;  %p7165_p13 = scmp.ne.s32.totalorder %s7164_s29, 0 }
 0xc0f   : > { %s3303_s19 = scalar_lea.sflag [#allocation5], %s3302_s20 }
 0xc10   : > { %p3691_p10 = pnand %p7166_p6, %p7165_p13 }
 0xc12   : > { %4493 = dma.done.wait (!%p3691_p10), %s3303_s19, 256  }
 0xc13   : > { %4495 = vsyncadd (!%p3691_p10), %s3303_s19, 4294967040  ;;  %s3312_s17 = scalar_lea.sflag [#allocation11], %s3302_s20 }
 0xc14   : > { %4497 = dma.done.wait (!%p3691_p10), %s3312_s17, 256  }
 0xc15   : > { %4499 = vsyncadd (!%p3691_p10), %s3312_s17, 4294967040  ;;  %p28_p1 = scmp.ge.s32.totalorder %s4691_s28, 4   ;;  %s7167_s13 = smov %s4506_s14 }
 0xc16   : > { %s7168_s14 = smov %s4510_s15  ;;  %s7169_s15 = smov %s4700_s11 }
 0xc17   : > { %s7170_s16 = smov %s4691_s28  ;;  %30 = sbr.rel (!%p28_p1) target bundleno = 10 (0xa), region = 129 }
 0xc1e   :  { %3317 = vsyncpa [#allocation4], 1 }
 0xc1f   :  { %3319 = vsyncpa [#allocation4 + $0x1], 1 }
 0xc20   :  { %3320 = vsyncpa [#allocation7], 1 }
 0xc21   :  { %3321 = vsyncpa [#allocation5], 1 }
 0xc22   :  { %3323 = vsyncpa [#allocation5 + $0x1], 1 }
 0xc23   :  { %3324 = vsyncpa [#allocation11], 1 }
 0xc24   :  { %3326 = vsyncpa [#allocation11 + $0x1], 1 }

</bundles_post_ra>
